<compile_context>
chip_gen: v6e
topology: v6e:2x2x1
jax: 0.10.0
libtpu: 0.0.40
codegen_flags: <defaults>
</compile_context>

<pallas_src>
import jax
import jax.numpy as jnp
from jax import lax
from jax.experimental import pallas as pl
from jax.experimental.pallas import tpu as pltpu


# ---------------------------------------------------------------------------
# Fused kernel: GRU layer 0 -> GRU layer 1 -> classifier, single invocation.
# ---------------------------------------------------------------------------
def rnn_seq_kernel(x_ref,
                   wih0_ref, whh0_ref, bih0_ref, bhh0_ref,
                   wih1_ref, whh1_ref, bih1_ref, bhh1_ref,
                   wcls_ref, bcls_ref,
                   out_ref,
                   gi_ref, h0_ref, h1_ref):
    T, H = h0_ref.shape
    unroll = T <= 16  # small fixed trip count -> give LLO scheduler visibility

    def run_layer(whh_ref, bhh_ref, hseq_ref):
        """Serial GRU recurrence over precomputed GI (in gi_ref)."""
        whh = whh_ref[...]          # (H, 3H)
        bhh = bhh_ref[...]          # (1, 3H)

        def step(t, h_prev):
            gi_t = gi_ref[pl.ds(t, 1), :]                       # (1, 3H)
            gh = jnp.dot(h_prev, whh,
                         preferred_element_type=jnp.float32) + bhh
            r = jax.nn.sigmoid(gi_t[:, 0:H] + gh[:, 0:H])
            z = jax.nn.sigmoid(gi_t[:, H:2 * H] + gh[:, H:2 * H])
            n = jnp.tanh(gi_t[:, 2 * H:3 * H] + r * gh[:, 2 * H:3 * H])
            h_new = (1.0 - z) * n + z * h_prev
            hseq_ref[pl.ds(t, 1), :] = h_new
            return h_new

        h_init = jnp.zeros((1, H), jnp.float32)
        lax.fori_loop(0, T, step, h_init, unroll=unroll)

    # ---- Layer 0: batched input projection (one MXU call over all T) ----
    gi_ref[...] = (
        jnp.dot(x_ref[...], wih0_ref[...], preferred_element_type=jnp.float32)
        + bih0_ref[...]
    )
    run_layer(whh0_ref, bhh0_ref, h0_ref)

    # ---- Layer 1: batched input projection from layer-0 outputs ----
    gi_ref[...] = (
        jnp.dot(h0_ref[...], wih1_ref[...], preferred_element_type=jnp.float32)
        + bih1_ref[...]
    )
    run_layer(whh1_ref, bhh1_ref, h1_ref)

    # ---- Classifier: one (T, H) x (H, C_pad) matmul, lane-dense store ----
    out_ref[...] = (
        jnp.dot(h1_ref[...], wcls_ref[...], preferred_element_type=jnp.float32)
        + bcls_ref[...]
    ).astype(out_ref.dtype)


def rnn_seq_forward(x, params):
    """x: (T, in_size) float32 -> (T, n_classes) float32."""
    T, in_size = x.shape
    H = params["w_hh_l0"].shape[0]
    C = params["b_cls"].shape[0]

    # Keep gate slices lane-aligned (offsets 0, H, 2H must be lane multiples).
    assert H % 128 == 0, "hidden size must be a multiple of 128 for lane-aligned gates"
    assert in_size % 128 == 0, "in_size should be a multiple of 128 for dense lanes"

    # Lane-dense classifier output: pad to a multiple of 128 lanes, slice back.
    C_pad = max(128, ((C + 127) // 128) * 128)
    w_cls_p = jnp.zeros((H, C_pad), jnp.float32).at[:, :C].set(params["w_cls"])
    b_cls_p = jnp.zeros((1, C_pad), jnp.float32).at[0, :C].set(params["b_cls"])

    out_pad = pl.pallas_call(
        rnn_seq_kernel,
        out_shape=jax.ShapeDtypeStruct((T, C_pad), jnp.float32),
        scratch_shapes=[
            pltpu.VMEM((T, 3 * H), jnp.float32),  # GI scratch (reused per layer)
            pltpu.VMEM((T, H), jnp.float32),      # layer-0 output sequence
            pltpu.VMEM((T, H), jnp.float32),      # layer-1 output sequence
        ],
        compiler_params=pltpu.CompilerParams(
            # Full-model weights (in_size=2048, H=512) are ~22 MiB; raise the
            # scoped VMEM limit above the 16/32 MiB defaults, well under
            # physical VMEM on v5e/v6e (128 MiB) and v7x (64 MiB per TC).
            vmem_limit_bytes=48 * 1024 * 1024,
        ),
    )(
        x,
        params["w_ih_l0"], params["w_hh_l0"], params["b_ih_l0"], params["b_hh_l0"],
        params["w_ih_l1"], params["w_hh_l1"], params["b_ih_l1"], params["b_hh_l1"],
        w_cls_p, b_cls_p,
    )
    return out_pad[:, :C]


# ---------------------------------------------------------------------------
# Pure-JAX reference (matches PyTorch GRU eval-mode math).
# ---------------------------------------------------------------------------
def _gru_layer_ref(x, w_ih_t, w_hh_t, b_ih, b_hh):
    H = w_hh_t.shape[0]

    def step(h, x_t):
        gi = x_t[None, :] @ w_ih_t + b_ih
        gh = h @ w_hh_t + b_hh
        r = jax.nn.sigmoid(gi[:, 0:H] + gh[:, 0:H])
        z = jax.nn.sigmoid(gi[:, H:2 * H] + gh[:, H:2 * H])
        n = jnp.tanh(gi[:, 2 * H:3 * H] + r * gh[:, 2 * H:3 * H])
        h_new = (1.0 - z) * n + z * h
        return h_new, h_new[0]

    h0 = jnp.zeros((1, H), jnp.float32)
    _, ys = lax.scan(step, h0, x)
    return ys


def rnn_seq_ref(x, params):
    h0 = _gru_layer_ref(x, params["w_ih_l0"], params["w_hh_l0"],
                        params["b_ih_l0"], params["b_hh_l0"])
    h1 = _gru_layer_ref(h0, params["w_ih_l1"], params["w_hh_l1"],
                        params["b_ih_l1"], params["b_hh_l1"])
    return h1 @ params["w_cls"] + params["b_cls"].reshape(1, -1)


def init_params(key, in_size, hidden, n_classes):
    k = 1.0 / jnp.sqrt(hidden)
    ks = jax.random.split(key, 11)
    u = lambda kk, shape: jax.random.uniform(kk, shape, jnp.float32, -k, k)
    return {
        # layer 0 (in_size -> hidden), stored transposed
        "w_ih_l0": u(ks[0], (in_size, 3 * hidden)),
        "w_hh_l0": u(ks[1], (hidden, 3 * hidden)),
        "b_ih_l0": u(ks[2], (1, 3 * hidden)),
        "b_hh_l0": u(ks[3], (1, 3 * hidden)),
        # layer 1 (hidden -> hidden)
        "w_ih_l1": u(ks[4], (hidden, 3 * hidden)),
        "w_hh_l1": u(ks[5], (hidden, 3 * hidden)),
        "b_ih_l1": u(ks[6], (1, 3 * hidden)),
        "b_hh_l1": u(ks[7], (1, 3 * hidden)),
        # classifier (hidden -> n_classes), stored transposed
        "w_cls": u(ks[8], (hidden, n_classes)),
        "b_cls": u(ks[9], (n_classes,)),
    }


if __name__ == "__main__":
    # Small shapes consistent with the module's forward: x is (T, in_size).
    T, IN_SIZE, HIDDEN, N_CLASSES = 8, 256, 128, 11

    key = jax.random.PRNGKey(0)
    kx, kp = jax.random.split(key)
    x = jax.random.normal(kx, (T, IN_SIZE), jnp.float32)
    params = init_params(kp, IN_SIZE, HIDDEN, N_CLASSES)

    out = rnn_seq_forward(x, params)
    out = jax.block_until_ready(out)
    assert out.shape == (T, N_CLASSES), out.shape

    ref = rnn_seq_ref(x, params)
    if not bool(jnp.allclose(out, ref, atol=2e-4, rtol=2e-4)):
        raise AssertionError("Pallas fused GRU output mismatch vs JAX reference")

    print("KERNEL_OK")
</pallas_src>

<mosaic_0001>
module attributes {stable_mosaic.version = 11 : i64} {
  func.func @rnn_seq_kernel(%arg0: memref<8x256xf32, #tpu.memory_space<vmem>>, %arg1: memref<256x384xf32, #tpu.memory_space<vmem>>, %arg2: memref<128x384xf32, #tpu.memory_space<vmem>>, %arg3: memref<1x384xf32, #tpu.memory_space<vmem>>, %arg4: memref<1x384xf32, #tpu.memory_space<vmem>>, %arg5: memref<128x384xf32, #tpu.memory_space<vmem>>, %arg6: memref<128x384xf32, #tpu.memory_space<vmem>>, %arg7: memref<1x384xf32, #tpu.memory_space<vmem>>, %arg8: memref<1x384xf32, #tpu.memory_space<vmem>>, %arg9: memref<128x128xf32, #tpu.memory_space<vmem>>, %arg10: memref<1x128xf32, #tpu.memory_space<vmem>>, %arg11: memref<8x128xf32, #tpu.memory_space<vmem>>, %arg12: memref<8x384xf32, #tpu.memory_space<vmem>>, %arg13: memref<8x128xf32, #tpu.memory_space<vmem>>, %arg14: memref<8x128xf32, #tpu.memory_space<vmem>>) attributes {dimension_semantics = [], scalar_prefetch = 0 : i64, scratch_operands = 3 : i64, tpu.core_type = #tpu.core_type<tc>} {
    %c0 = arith.constant 0 : index
    %c0_0 = arith.constant 0 : index
    %0 = vector.load %arg0[%c0, %c0_0] : memref<8x256xf32, #tpu.memory_space<vmem>>, vector<8x256xf32>
    %c0_1 = arith.constant 0 : index
    %c0_2 = arith.constant 0 : index
    %1 = vector.load %arg1[%c0_1, %c0_2] : memref<256x384xf32, #tpu.memory_space<vmem>>, vector<256x384xf32>
    %cst = arith.constant dense<0.000000e+00> : vector<8x384xf32>
    %2 = tpu.matmul %0, %1, %cst {dimension_numbers = #tpu.dot_dimension_numbers<[1], [0], [0], [1], [0, 0, 1, 1], [], []>} : vector<8x256xf32>, vector<256x384xf32>, vector<8x384xf32> -> vector<8x384xf32>
    %c0_3 = arith.constant 0 : index
    %c0_4 = arith.constant 0 : index
    %3 = vector.load %arg3[%c0_3, %c0_4] : memref<1x384xf32, #tpu.memory_space<vmem>>, vector<1x384xf32>
    %4 = vector.broadcast %3 : vector<1x384xf32> to vector<8x384xf32>
    %5 = arith.addf %2, %4 : vector<8x384xf32>
    %c0_5 = arith.constant 0 : index
    %c0_6 = arith.constant 0 : index
    %6 = vector.load %arg12[%c0_5, %c0_6] : memref<8x384xf32, #tpu.memory_space<vmem>>, vector<8x384xf32>
    tpu.vector_store %arg12[%c0_5, %c0_6], %5 {strides = array<i32>} : memref<8x384xf32, #tpu.memory_space<vmem>>, vector<8x384xf32>,
    %c0_7 = arith.constant 0 : index
    %c0_8 = arith.constant 0 : index
    %7 = vector.load %arg2[%c0_7, %c0_8] : memref<128x384xf32, #tpu.memory_space<vmem>>, vector<128x384xf32>
    %c0_9 = arith.constant 0 : index
    %c0_10 = arith.constant 0 : index
    %8 = vector.load %arg4[%c0_9, %c0_10] : memref<1x384xf32, #tpu.memory_space<vmem>>, vector<1x384xf32>
    %cst_11 = arith.constant 0.000000e+00 : f32
    %9 = vector.broadcast %cst_11 : f32 to vector<1x128xf32>
    %c0_i32 = arith.constant 0 : i32
    %10 = arith.index_cast %c0_i32 : i32 to index
    %c0_12 = arith.constant 0 : index
    %11 = vector.load %arg12[%10, %c0_12] : memref<8x384xf32, #tpu.memory_space<vmem>>, vector<1x384xf32>
    %cst_13 = arith.constant dense<0.000000e+00> : vector<1x384xf32>
    %12 = tpu.matmul %9, %7, %cst_13 {dimension_numbers = #tpu.dot_dimension_numbers<[1], [0], [0], [1], [0, 0, 1, 1], [], []>} : vector<1x128xf32>, vector<128x384xf32>, vector<1x384xf32> -> vector<1x384xf32>
    %13 = arith.addf %12, %8 : vector<1x384xf32>
    %14 = vector.extract_strided_slice %11 {offsets = [0, 0], sizes = [1, 128], strides = [1, 1]} : vector<1x384xf32> to vector<1x128xf32>
    %15 = vector.extract_strided_slice %13 {offsets = [0, 0], sizes = [1, 128], strides = [1, 1]} : vector<1x384xf32> to vector<1x128xf32>
    %16 = arith.addf %14, %15 : vector<1x128xf32>
    %17 = arith.negf %16 : vector<1x128xf32>
    %18 = math.exp %17 : vector<1x128xf32>
    %cst_14 = arith.constant 1.000000e+00 : f32
    %19 = vector.broadcast %cst_14 : f32 to vector<1x128xf32>
    %20 = arith.addf %19, %18 : vector<1x128xf32>
    %21 = arith.divf %19, %20 : vector<1x128xf32>
    %22 = vector.extract_strided_slice %11 {offsets = [0, 128], sizes = [1, 128], strides = [1, 1]} : vector<1x384xf32> to vector<1x128xf32>
    %23 = vector.extract_strided_slice %13 {offsets = [0, 128], sizes = [1, 128], strides = [1, 1]} : vector<1x384xf32> to vector<1x128xf32>
    %24 = arith.addf %22, %23 : vector<1x128xf32>
    %25 = arith.negf %24 : vector<1x128xf32>
    %26 = math.exp %25 : vector<1x128xf32>
    %cst_15 = arith.constant 1.000000e+00 : f32
    %27 = vector.broadcast %cst_15 : f32 to vector<1x128xf32>
    %28 = arith.addf %27, %26 : vector<1x128xf32>
    %29 = arith.divf %27, %28 : vector<1x128xf32>
    %30 = vector.extract_strided_slice %11 {offsets = [0, 256], sizes = [1, 128], strides = [1, 1]} : vector<1x384xf32> to vector<1x128xf32>
    %31 = vector.extract_strided_slice %13 {offsets = [0, 256], sizes = [1, 128], strides = [1, 1]} : vector<1x384xf32> to vector<1x128xf32>
    %32 = arith.mulf %21, %31 : vector<1x128xf32>
    %33 = arith.addf %30, %32 : vector<1x128xf32>
    %34 = math.tanh %33 : vector<1x128xf32>
    %cst_16 = arith.constant 1.000000e+00 : f32
    %35 = vector.broadcast %cst_16 : f32 to vector<1x128xf32>
    %36 = arith.subf %35, %29 : vector<1x128xf32>
    %37 = arith.mulf %36, %34 : vector<1x128xf32>
    %38 = arith.mulf %29, %9 : vector<1x128xf32>
    %39 = arith.addf %37, %38 : vector<1x128xf32>
    %40 = arith.index_cast %c0_i32 : i32 to index
    %c0_17 = arith.constant 0 : index
    %41 = vector.load %arg13[%40, %c0_17] : memref<8x128xf32, #tpu.memory_space<vmem>>, vector<1x128xf32>
    tpu.vector_store %arg13[%40, %c0_17], %39 {strides = array<i32>} : memref<8x128xf32, #tpu.memory_space<vmem>>, vector<1x128xf32>,
    %c1_i32 = arith.constant 1 : i32
    %42 = arith.index_cast %c1_i32 : i32 to index
    %c0_18 = arith.constant 0 : index
    %43 = vector.load %arg12[%42, %c0_18] : memref<8x384xf32, #tpu.memory_space<vmem>>, vector<1x384xf32>
    %cst_19 = arith.constant dense<0.000000e+00> : vector<1x384xf32>
    %44 = tpu.matmul %39, %7, %cst_19 {dimension_numbers = #tpu.dot_dimension_numbers<[1], [0], [0], [1], [0, 0, 1, 1], [], []>} : vector<1x128xf32>, vector<128x384xf32>, vector<1x384xf32> -> vector<1x384xf32>
    %45 = arith.addf %44, %8 : vector<1x384xf32>
    %46 = vector.extract_strided_slice %43 {offsets = [0, 0], sizes = [1, 128], strides = [1, 1]} : vector<1x384xf32> to vector<1x128xf32>
    %47 = vector.extract_strided_slice %45 {offsets = [0, 0], sizes = [1, 128], strides = [1, 1]} : vector<1x384xf32> to vector<1x128xf32>
    %48 = arith.addf %46, %47 : vector<1x128xf32>
    %49 = arith.negf %48 : vector<1x128xf32>
    %50 = math.exp %49 : vector<1x128xf32>
    %cst_20 = arith.constant 1.000000e+00 : f32
    %51 = vector.broadcast %cst_20 : f32 to vector<1x128xf32>
    %52 = arith.addf %51, %50 : vector<1x128xf32>
    %53 = arith.divf %51, %52 : vector<1x128xf32>
    %54 = vector.extract_strided_slice %43 {offsets = [0, 128], sizes = [1, 128], strides = [1, 1]} : vector<1x384xf32> to vector<1x128xf32>
    %55 = vector.extract_strided_slice %45 {offsets = [0, 128], sizes = [1, 128], strides = [1, 1]} : vector<1x384xf32> to vector<1x128xf32>
    %56 = arith.addf %54, %55 : vector<1x128xf32>
    %57 = arith.negf %56 : vector<1x128xf32>
    %58 = math.exp %57 : vector<1x128xf32>
    %cst_21 = arith.constant 1.000000e+00 : f32
    %59 = vector.broadcast %cst_21 : f32 to vector<1x128xf32>
    %60 = arith.addf %59, %58 : vector<1x128xf32>
    %61 = arith.divf %59, %60 : vector<1x128xf32>
    %62 = vector.extract_strided_slice %43 {offsets = [0, 256], sizes = [1, 128], strides = [1, 1]} : vector<1x384xf32> to vector<1x128xf32>
    %63 = vector.extract_strided_slice %45 {offsets = [0, 256], sizes = [1, 128], strides = [1, 1]} : vector<1x384xf32> to vector<1x128xf32>
    %64 = arith.mulf %53, %63 : vector<1x128xf32>
    %65 = arith.addf %62, %64 : vector<1x128xf32>
    %66 = math.tanh %65 : vector<1x128xf32>
    %cst_22 = arith.constant 1.000000e+00 : f32
    %67 = vector.broadcast %cst_22 : f32 to vector<1x128xf32>
    %68 = arith.subf %67, %61 : vector<1x128xf32>
    %69 = arith.mulf %68, %66 : vector<1x128xf32>
    %70 = arith.mulf %61, %39 : vector<1x128xf32>
    %71 = arith.addf %69, %70 : vector<1x128xf32>
    %72 = arith.index_cast %c1_i32 : i32 to index
    %c0_23 = arith.constant 0 : index
    %73 = vector.load %arg13[%72, %c0_23] : memref<8x128xf32, #tpu.memory_space<vmem>>, vector<1x128xf32>
    tpu.vector_store %arg13[%72, %c0_23], %71 {strides = array<i32>} : memref<8x128xf32, #tpu.memory_space<vmem>>, vector<1x128xf32>,
    %c2_i32 = arith.constant 2 : i32
    %74 = arith.index_cast %c2_i32 : i32 to index
    %c0_24 = arith.constant 0 : index
    %75 = vector.load %arg12[%74, %c0_24] : memref<8x384xf32, #tpu.memory_space<vmem>>, vector<1x384xf32>
    %cst_25 = arith.constant dense<0.000000e+00> : vector<1x384xf32>
    %76 = tpu.matmul %71, %7, %cst_25 {dimension_numbers = #tpu.dot_dimension_numbers<[1], [0], [0], [1], [0, 0, 1, 1], [], []>} : vector<1x128xf32>, vector<128x384xf32>, vector<1x384xf32> -> vector<1x384xf32>
    %77 = arith.addf %76, %8 : vector<1x384xf32>
    %78 = vector.extract_strided_slice %75 {offsets = [0, 0], sizes = [1, 128], strides = [1, 1]} : vector<1x384xf32> to vector<1x128xf32>
    %79 = vector.extract_strided_slice %77 {offsets = [0, 0], sizes = [1, 128], strides = [1, 1]} : vector<1x384xf32> to vector<1x128xf32>
    %80 = arith.addf %78, %79 : vector<1x128xf32>
    %81 = arith.negf %80 : vector<1x128xf32>
    %82 = math.exp %81 : vector<1x128xf32>
    %cst_26 = arith.constant 1.000000e+00 : f32
    %83 = vector.broadcast %cst_26 : f32 to vector<1x128xf32>
    %84 = arith.addf %83, %82 : vector<1x128xf32>
    %85 = arith.divf %83, %84 : vector<1x128xf32>
    %86 = vector.extract_strided_slice %75 {offsets = [0, 128], sizes = [1, 128], strides = [1, 1]} : vector<1x384xf32> to vector<1x128xf32>
    %87 = vector.extract_strided_slice %77 {offsets = [0, 128], sizes = [1, 128], strides = [1, 1]} : vector<1x384xf32> to vector<1x128xf32>
    %88 = arith.addf %86, %87 : vector<1x128xf32>
    %89 = arith.negf %88 : vector<1x128xf32>
    %90 = math.exp %89 : vector<1x128xf32>
    %cst_27 = arith.constant 1.000000e+00 : f32
    %91 = vector.broadcast %cst_27 : f32 to vector<1x128xf32>
    %92 = arith.addf %91, %90 : vector<1x128xf32>
    %93 = arith.divf %91, %92 : vector<1x128xf32>
    %94 = vector.extract_strided_slice %75 {offsets = [0, 256], sizes = [1, 128], strides = [1, 1]} : vector<1x384xf32> to vector<1x128xf32>
    %95 = vector.extract_strided_slice %77 {offsets = [0, 256], sizes = [1, 128], strides = [1, 1]} : vector<1x384xf32> to vector<1x128xf32>
    %96 = arith.mulf %85, %95 : vector<1x128xf32>
    %97 = arith.addf %94, %96 : vector<1x128xf32>
    %98 = math.tanh %97 : vector<1x128xf32>
    %cst_28 = arith.constant 1.000000e+00 : f32
    %99 = vector.broadcast %cst_28 : f32 to vector<1x128xf32>
    %100 = arith.subf %99, %93 : vector<1x128xf32>
    %101 = arith.mulf %100, %98 : vector<1x128xf32>
    %102 = arith.mulf %93, %71 : vector<1x128xf32>
    %103 = arith.addf %101, %102 : vector<1x128xf32>
    %104 = arith.index_cast %c2_i32 : i32 to index
    %c0_29 = arith.constant 0 : index
    %105 = vector.load %arg13[%104, %c0_29] : memref<8x128xf32, #tpu.memory_space<vmem>>, vector<1x128xf32>
    tpu.vector_store %arg13[%104, %c0_29], %103 {strides = array<i32>} : memref<8x128xf32, #tpu.memory_space<vmem>>, vector<1x128xf32>,
    %c3_i32 = arith.constant 3 : i32
    %106 = arith.index_cast %c3_i32 : i32 to index
    %c0_30 = arith.constant 0 : index
    %107 = vector.load %arg12[%106, %c0_30] : memref<8x384xf32, #tpu.memory_space<vmem>>, vector<1x384xf32>
    %cst_31 = arith.constant dense<0.000000e+00> : vector<1x384xf32>
    %108 = tpu.matmul %103, %7, %cst_31 {dimension_numbers = #tpu.dot_dimension_numbers<[1], [0], [0], [1], [0, 0, 1, 1], [], []>} : vector<1x128xf32>, vector<128x384xf32>, vector<1x384xf32> -> vector<1x384xf32>
    %109 = arith.addf %108, %8 : vector<1x384xf32>
    %110 = vector.extract_strided_slice %107 {offsets = [0, 0], sizes = [1, 128], strides = [1, 1]} : vector<1x384xf32> to vector<1x128xf32>
    %111 = vector.extract_strided_slice %109 {offsets = [0, 0], sizes = [1, 128], strides = [1, 1]} : vector<1x384xf32> to vector<1x128xf32>
    %112 = arith.addf %110, %111 : vector<1x128xf32>
    %113 = arith.negf %112 : vector<1x128xf32>
    %114 = math.exp %113 : vector<1x128xf32>
    %cst_32 = arith.constant 1.000000e+00 : f32
    %115 = vector.broadcast %cst_32 : f32 to vector<1x128xf32>
    %116 = arith.addf %115, %114 : vector<1x128xf32>
    %117 = arith.divf %115, %116 : vector<1x128xf32>
    %118 = vector.extract_strided_slice %107 {offsets = [0, 128], sizes = [1, 128], strides = [1, 1]} : vector<1x384xf32> to vector<1x128xf32>
    %119 = vector.extract_strided_slice %109 {offsets = [0, 128], sizes = [1, 128], strides = [1, 1]} : vector<1x384xf32> to vector<1x128xf32>
    %120 = arith.addf %118, %119 : vector<1x128xf32>
    %121 = arith.negf %120 : vector<1x128xf32>
    %122 = math.exp %121 : vector<1x128xf32>
    %cst_33 = arith.constant 1.000000e+00 : f32
    %123 = vector.broadcast %cst_33 : f32 to vector<1x128xf32>
    %124 = arith.addf %123, %122 : vector<1x128xf32>
    %125 = arith.divf %123, %124 : vector<1x128xf32>
    %126 = vector.extract_strided_slice %107 {offsets = [0, 256], sizes = [1, 128], strides = [1, 1]} : vector<1x384xf32> to vector<1x128xf32>
    %127 = vector.extract_strided_slice %109 {offsets = [0, 256], sizes = [1, 128], strides = [1, 1]} : vector<1x384xf32> to vector<1x128xf32>
    %128 = arith.mulf %117, %127 : vector<1x128xf32>
    %129 = arith.addf %126, %128 : vector<1x128xf32>
    %130 = math.tanh %129 : vector<1x128xf32>
    %cst_34 = arith.constant 1.000000e+00 : f32
    %131 = vector.broadcast %cst_34 : f32 to vector<1x128xf32>
    %132 = arith.subf %131, %125 : vector<1x128xf32>
    %133 = arith.mulf %132, %130 : vector<1x128xf32>
    %134 = arith.mulf %125, %103 : vector<1x128xf32>
    %135 = arith.addf %133, %134 : vector<1x128xf32>
    %136 = arith.index_cast %c3_i32 : i32 to index
    %c0_35 = arith.constant 0 : index
    %137 = vector.load %arg13[%136, %c0_35] : memref<8x128xf32, #tpu.memory_space<vmem>>, vector<1x128xf32>
    tpu.vector_store %arg13[%136, %c0_35], %135 {strides = array<i32>} : memref<8x128xf32, #tpu.memory_space<vmem>>, vector<1x128xf32>,
    %c4_i32 = arith.constant 4 : i32
    %138 = arith.index_cast %c4_i32 : i32 to index
    %c0_36 = arith.constant 0 : index
    %139 = vector.load %arg12[%138, %c0_36] : memref<8x384xf32, #tpu.memory_space<vmem>>, vector<1x384xf32>
    %cst_37 = arith.constant dense<0.000000e+00> : vector<1x384xf32>
    %140 = tpu.matmul %135, %7, %cst_37 {dimension_numbers = #tpu.dot_dimension_numbers<[1], [0], [0], [1], [0, 0, 1, 1], [], []>} : vector<1x128xf32>, vector<128x384xf32>, vector<1x384xf32> -> vector<1x384xf32>
    %141 = arith.addf %140, %8 : vector<1x384xf32>
    %142 = vector.extract_strided_slice %139 {offsets = [0, 0], sizes = [1, 128], strides = [1, 1]} : vector<1x384xf32> to vector<1x128xf32>
    %143 = vector.extract_strided_slice %141 {offsets = [0, 0], sizes = [1, 128], strides = [1, 1]} : vector<1x384xf32> to vector<1x128xf32>
    %144 = arith.addf %142, %143 : vector<1x128xf32>
    %145 = arith.negf %144 : vector<1x128xf32>
    %146 = math.exp %145 : vector<1x128xf32>
    %cst_38 = arith.constant 1.000000e+00 : f32
    %147 = vector.broadcast %cst_38 : f32 to vector<1x128xf32>
    %148 = arith.addf %147, %146 : vector<1x128xf32>
    %149 = arith.divf %147, %148 : vector<1x128xf32>
    %150 = vector.extract_strided_slice %139 {offsets = [0, 128], sizes = [1, 128], strides = [1, 1]} : vector<1x384xf32> to vector<1x128xf32>
    %151 = vector.extract_strided_slice %141 {offsets = [0, 128], sizes = [1, 128], strides = [1, 1]} : vector<1x384xf32> to vector<1x128xf32>
    %152 = arith.addf %150, %151 : vector<1x128xf32>
    %153 = arith.negf %152 : vector<1x128xf32>
    %154 = math.exp %153 : vector<1x128xf32>
    %cst_39 = arith.constant 1.000000e+00 : f32
    %155 = vector.broadcast %cst_39 : f32 to vector<1x128xf32>
    %156 = arith.addf %155, %154 : vector<1x128xf32>
    %157 = arith.divf %155, %156 : vector<1x128xf32>
    %158 = vector.extract_strided_slice %139 {offsets = [0, 256], sizes = [1, 128], strides = [1, 1]} : vector<1x384xf32> to vector<1x128xf32>
    %159 = vector.extract_strided_slice %141 {offsets = [0, 256], sizes = [1, 128], strides = [1, 1]} : vector<1x384xf32> to vector<1x128xf32>
    %160 = arith.mulf %149, %159 : vector<1x128xf32>
    %161 = arith.addf %158, %160 : vector<1x128xf32>
    %162 = math.tanh %161 : vector<1x128xf32>
    %cst_40 = arith.constant 1.000000e+00 : f32
    %163 = vector.broadcast %cst_40 : f32 to vector<1x128xf32>
    %164 = arith.subf %163, %157 : vector<1x128xf32>
    %165 = arith.mulf %164, %162 : vector<1x128xf32>
    %166 = arith.mulf %157, %135 : vector<1x128xf32>
    %167 = arith.addf %165, %166 : vector<1x128xf32>
    %168 = arith.index_cast %c4_i32 : i32 to index
    %c0_41 = arith.constant 0 : index
    %169 = vector.load %arg13[%168, %c0_41] : memref<8x128xf32, #tpu.memory_space<vmem>>, vector<1x128xf32>
    tpu.vector_store %arg13[%168, %c0_41], %167 {strides = array<i32>} : memref<8x128xf32, #tpu.memory_space<vmem>>, vector<1x128xf32>,
    %c5_i32 = arith.constant 5 : i32
    %170 = arith.index_cast %c5_i32 : i32 to index
    %c0_42 = arith.constant 0 : index
    %171 = vector.load %arg12[%170, %c0_42] : memref<8x384xf32, #tpu.memory_space<vmem>>, vector<1x384xf32>
    %cst_43 = arith.constant dense<0.000000e+00> : vector<1x384xf32>
    %172 = tpu.matmul %167, %7, %cst_43 {dimension_numbers = #tpu.dot_dimension_numbers<[1], [0], [0], [1], [0, 0, 1, 1], [], []>} : vector<1x128xf32>, vector<128x384xf32>, vector<1x384xf32> -> vector<1x384xf32>
    %173 = arith.addf %172, %8 : vector<1x384xf32>
    %174 = vector.extract_strided_slice %171 {offsets = [0, 0], sizes = [1, 128], strides = [1, 1]} : vector<1x384xf32> to vector<1x128xf32>
    %175 = vector.extract_strided_slice %173 {offsets = [0, 0], sizes = [1, 128], strides = [1, 1]} : vector<1x384xf32> to vector<1x128xf32>
    %176 = arith.addf %174, %175 : vector<1x128xf32>
    %177 = arith.negf %176 : vector<1x128xf32>
    %178 = math.exp %177 : vector<1x128xf32>
    %cst_44 = arith.constant 1.000000e+00 : f32
    %179 = vector.broadcast %cst_44 : f32 to vector<1x128xf32>
    %180 = arith.addf %179, %178 : vector<1x128xf32>
    %181 = arith.divf %179, %180 : vector<1x128xf32>
    %182 = vector.extract_strided_slice %171 {offsets = [0, 128], sizes = [1, 128], strides = [1, 1]} : vector<1x384xf32> to vector<1x128xf32>
    %183 = vector.extract_strided_slice %173 {offsets = [0, 128], sizes = [1, 128], strides = [1, 1]} : vector<1x384xf32> to vector<1x128xf32>
    %184 = arith.addf %182, %183 : vector<1x128xf32>
    %185 = arith.negf %184 : vector<1x128xf32>
    %186 = math.exp %185 : vector<1x128xf32>
    %cst_45 = arith.constant 1.000000e+00 : f32
    %187 = vector.broadcast %cst_45 : f32 to vector<1x128xf32>
    %188 = arith.addf %187, %186 : vector<1x128xf32>
    %189 = arith.divf %187, %188 : vector<1x128xf32>
    %190 = vector.extract_strided_slice %171 {offsets = [0, 256], sizes = [1, 128], strides = [1, 1]} : vector<1x384xf32> to vector<1x128xf32>
    %191 = vector.extract_strided_slice %173 {offsets = [0, 256], sizes = [1, 128], strides = [1, 1]} : vector<1x384xf32> to vector<1x128xf32>
    %192 = arith.mulf %181, %191 : vector<1x128xf32>
    %193 = arith.addf %190, %192 : vector<1x128xf32>
    %194 = math.tanh %193 : vector<1x128xf32>
    %cst_46 = arith.constant 1.000000e+00 : f32
    %195 = vector.broadcast %cst_46 : f32 to vector<1x128xf32>
    %196 = arith.subf %195, %189 : vector<1x128xf32>
    %197 = arith.mulf %196, %194 : vector<1x128xf32>
    %198 = arith.mulf %189, %167 : vector<1x128xf32>
    %199 = arith.addf %197, %198 : vector<1x128xf32>
    %200 = arith.index_cast %c5_i32 : i32 to index
    %c0_47 = arith.constant 0 : index
    %201 = vector.load %arg13[%200, %c0_47] : memref<8x128xf32, #tpu.memory_space<vmem>>, vector<1x128xf32>
    tpu.vector_store %arg13[%200, %c0_47], %199 {strides = array<i32>} : memref<8x128xf32, #tpu.memory_space<vmem>>, vector<1x128xf32>,
    %c6_i32 = arith.constant 6 : i32
    %202 = arith.index_cast %c6_i32 : i32 to index
    %c0_48 = arith.constant 0 : index
    %203 = vector.load %arg12[%202, %c0_48] : memref<8x384xf32, #tpu.memory_space<vmem>>, vector<1x384xf32>
    %cst_49 = arith.constant dense<0.000000e+00> : vector<1x384xf32>
    %204 = tpu.matmul %199, %7, %cst_49 {dimension_numbers = #tpu.dot_dimension_numbers<[1], [0], [0], [1], [0, 0, 1, 1], [], []>} : vector<1x128xf32>, vector<128x384xf32>, vector<1x384xf32> -> vector<1x384xf32>
    %205 = arith.addf %204, %8 : vector<1x384xf32>
    %206 = vector.extract_strided_slice %203 {offsets = [0, 0], sizes = [1, 128], strides = [1, 1]} : vector<1x384xf32> to vector<1x128xf32>
    %207 = vector.extract_strided_slice %205 {offsets = [0, 0], sizes = [1, 128], strides = [1, 1]} : vector<1x384xf32> to vector<1x128xf32>
    %208 = arith.addf %206, %207 : vector<1x128xf32>
    %209 = arith.negf %208 : vector<1x128xf32>
    %210 = math.exp %209 : vector<1x128xf32>
    %cst_50 = arith.constant 1.000000e+00 : f32
    %211 = vector.broadcast %cst_50 : f32 to vector<1x128xf32>
    %212 = arith.addf %211, %210 : vector<1x128xf32>
    %213 = arith.divf %211, %212 : vector<1x128xf32>
    %214 = vector.extract_strided_slice %203 {offsets = [0, 128], sizes = [1, 128], strides = [1, 1]} : vector<1x384xf32> to vector<1x128xf32>
    %215 = vector.extract_strided_slice %205 {offsets = [0, 128], sizes = [1, 128], strides = [1, 1]} : vector<1x384xf32> to vector<1x128xf32>
    %216 = arith.addf %214, %215 : vector<1x128xf32>
    %217 = arith.negf %216 : vector<1x128xf32>
    %218 = math.exp %217 : vector<1x128xf32>
    %cst_51 = arith.constant 1.000000e+00 : f32
    %219 = vector.broadcast %cst_51 : f32 to vector<1x128xf32>
    %220 = arith.addf %219, %218 : vector<1x128xf32>
    %221 = arith.divf %219, %220 : vector<1x128xf32>
    %222 = vector.extract_strided_slice %203 {offsets = [0, 256], sizes = [1, 128], strides = [1, 1]} : vector<1x384xf32> to vector<1x128xf32>
    %223 = vector.extract_strided_slice %205 {offsets = [0, 256], sizes = [1, 128], strides = [1, 1]} : vector<1x384xf32> to vector<1x128xf32>
    %224 = arith.mulf %213, %223 : vector<1x128xf32>
    %225 = arith.addf %222, %224 : vector<1x128xf32>
    %226 = math.tanh %225 : vector<1x128xf32>
    %cst_52 = arith.constant 1.000000e+00 : f32
    %227 = vector.broadcast %cst_52 : f32 to vector<1x128xf32>
    %228 = arith.subf %227, %221 : vector<1x128xf32>
    %229 = arith.mulf %228, %226 : vector<1x128xf32>
    %230 = arith.mulf %221, %199 : vector<1x128xf32>
    %231 = arith.addf %229, %230 : vector<1x128xf32>
    %232 = arith.index_cast %c6_i32 : i32 to index
    %c0_53 = arith.constant 0 : index
    %233 = vector.load %arg13[%232, %c0_53] : memref<8x128xf32, #tpu.memory_space<vmem>>, vector<1x128xf32>
    tpu.vector_store %arg13[%232, %c0_53], %231 {strides = array<i32>} : memref<8x128xf32, #tpu.memory_space<vmem>>, vector<1x128xf32>,
    %c7_i32 = arith.constant 7 : i32
    %234 = arith.index_cast %c7_i32 : i32 to index
    %c0_54 = arith.constant 0 : index
    %235 = vector.load %arg12[%234, %c0_54] : memref<8x384xf32, #tpu.memory_space<vmem>>, vector<1x384xf32>
    %cst_55 = arith.constant dense<0.000000e+00> : vector<1x384xf32>
    %236 = tpu.matmul %231, %7, %cst_55 {dimension_numbers = #tpu.dot_dimension_numbers<[1], [0], [0], [1], [0, 0, 1, 1], [], []>} : vector<1x128xf32>, vector<128x384xf32>, vector<1x384xf32> -> vector<1x384xf32>
    %237 = arith.addf %236, %8 : vector<1x384xf32>
    %238 = vector.extract_strided_slice %235 {offsets = [0, 0], sizes = [1, 128], strides = [1, 1]} : vector<1x384xf32> to vector<1x128xf32>
    %239 = vector.extract_strided_slice %237 {offsets = [0, 0], sizes = [1, 128], strides = [1, 1]} : vector<1x384xf32> to vector<1x128xf32>
    %240 = arith.addf %238, %239 : vector<1x128xf32>
    %241 = arith.negf %240 : vector<1x128xf32>
    %242 = math.exp %241 : vector<1x128xf32>
    %cst_56 = arith.constant 1.000000e+00 : f32
    %243 = vector.broadcast %cst_56 : f32 to vector<1x128xf32>
    %244 = arith.addf %243, %242 : vector<1x128xf32>
    %245 = arith.divf %243, %244 : vector<1x128xf32>
    %246 = vector.extract_strided_slice %235 {offsets = [0, 128], sizes = [1, 128], strides = [1, 1]} : vector<1x384xf32> to vector<1x128xf32>
    %247 = vector.extract_strided_slice %237 {offsets = [0, 128], sizes = [1, 128], strides = [1, 1]} : vector<1x384xf32> to vector<1x128xf32>
    %248 = arith.addf %246, %247 : vector<1x128xf32>
    %249 = arith.negf %248 : vector<1x128xf32>
    %250 = math.exp %249 : vector<1x128xf32>
    %cst_57 = arith.constant 1.000000e+00 : f32
    %251 = vector.broadcast %cst_57 : f32 to vector<1x128xf32>
    %252 = arith.addf %251, %250 : vector<1x128xf32>
    %253 = arith.divf %251, %252 : vector<1x128xf32>
    %254 = vector.extract_strided_slice %235 {offsets = [0, 256], sizes = [1, 128], strides = [1, 1]} : vector<1x384xf32> to vector<1x128xf32>
    %255 = vector.extract_strided_slice %237 {offsets = [0, 256], sizes = [1, 128], strides = [1, 1]} : vector<1x384xf32> to vector<1x128xf32>
    %256 = arith.mulf %245, %255 : vector<1x128xf32>
    %257 = arith.addf %254, %256 : vector<1x128xf32>
    %258 = math.tanh %257 : vector<1x128xf32>
    %cst_58 = arith.constant 1.000000e+00 : f32
    %259 = vector.broadcast %cst_58 : f32 to vector<1x128xf32>
    %260 = arith.subf %259, %253 : vector<1x128xf32>
    %261 = arith.mulf %260, %258 : vector<1x128xf32>
    %262 = arith.mulf %253, %231 : vector<1x128xf32>
    %263 = arith.addf %261, %262 : vector<1x128xf32>
    %264 = arith.index_cast %c7_i32 : i32 to index
    %c0_59 = arith.constant 0 : index
    %265 = vector.load %arg13[%264, %c0_59] : memref<8x128xf32, #tpu.memory_space<vmem>>, vector<1x128xf32>
    tpu.vector_store %arg13[%264, %c0_59], %263 {strides = array<i32>} : memref<8x128xf32, #tpu.memory_space<vmem>>, vector<1x128xf32>,
    %c8_i32 = arith.constant 8 : i32
    %c0_60 = arith.constant 0 : index
    %c0_61 = arith.constant 0 : index
    %266 = vector.load %arg13[%c0_60, %c0_61] : memref<8x128xf32, #tpu.memory_space<vmem>>, vector<8x128xf32>
    %c0_62 = arith.constant 0 : index
    %c0_63 = arith.constant 0 : index
    %267 = vector.load %arg5[%c0_62, %c0_63] : memref<128x384xf32, #tpu.memory_space<vmem>>, vector<128x384xf32>
    %cst_64 = arith.constant dense<0.000000e+00> : vector<8x384xf32>
    %268 = tpu.matmul %266, %267, %cst_64 {dimension_numbers = #tpu.dot_dimension_numbers<[1], [0], [0], [1], [0, 0, 1, 1], [], []>} : vector<8x128xf32>, vector<128x384xf32>, vector<8x384xf32> -> vector<8x384xf32>
    %c0_65 = arith.constant 0 : index
    %c0_66 = arith.constant 0 : index
    %269 = vector.load %arg7[%c0_65, %c0_66] : memref<1x384xf32, #tpu.memory_space<vmem>>, vector<1x384xf32>
    %270 = vector.broadcast %269 : vector<1x384xf32> to vector<8x384xf32>
    %271 = arith.addf %268, %270 : vector<8x384xf32>
    %c0_67 = arith.constant 0 : index
    %c0_68 = arith.constant 0 : index
    %272 = vector.load %arg12[%c0_67, %c0_68] : memref<8x384xf32, #tpu.memory_space<vmem>>, vector<8x384xf32>
    tpu.vector_store %arg12[%c0_67, %c0_68], %271 {strides = array<i32>} : memref<8x384xf32, #tpu.memory_space<vmem>>, vector<8x384xf32>,
    %c0_69 = arith.constant 0 : index
    %c0_70 = arith.constant 0 : index
    %273 = vector.load %arg6[%c0_69, %c0_70] : memref<128x384xf32, #tpu.memory_space<vmem>>, vector<128x384xf32>
    %c0_71 = arith.constant 0 : index
    %c0_72 = arith.constant 0 : index
    %274 = vector.load %arg8[%c0_71, %c0_72] : memref<1x384xf32, #tpu.memory_space<vmem>>, vector<1x384xf32>
    %cst_73 = arith.constant 0.000000e+00 : f32
    %275 = vector.broadcast %cst_73 : f32 to vector<1x128xf32>
    %c0_i32_74 = arith.constant 0 : i32
    %276 = arith.index_cast %c0_i32_74 : i32 to index
    %c0_75 = arith.constant 0 : index
    %277 = vector.load %arg12[%276, %c0_75] : memref<8x384xf32, #tpu.memory_space<vmem>>, vector<1x384xf32>
    %cst_76 = arith.constant dense<0.000000e+00> : vector<1x384xf32>
    %278 = tpu.matmul %275, %273, %cst_76 {dimension_numbers = #tpu.dot_dimension_numbers<[1], [0], [0], [1], [0, 0, 1, 1], [], []>} : vector<1x128xf32>, vector<128x384xf32>, vector<1x384xf32> -> vector<1x384xf32>
    %279 = arith.addf %278, %274 : vector<1x384xf32>
    %280 = vector.extract_strided_slice %277 {offsets = [0, 0], sizes = [1, 128], strides = [1, 1]} : vector<1x384xf32> to vector<1x128xf32>
    %281 = vector.extract_strided_slice %279 {offsets = [0, 0], sizes = [1, 128], strides = [1, 1]} : vector<1x384xf32> to vector<1x128xf32>
    %282 = arith.addf %280, %281 : vector<1x128xf32>
    %283 = arith.negf %282 : vector<1x128xf32>
    %284 = math.exp %283 : vector<1x128xf32>
    %cst_77 = arith.constant 1.000000e+00 : f32
    %285 = vector.broadcast %cst_77 : f32 to vector<1x128xf32>
    %286 = arith.addf %285, %284 : vector<1x128xf32>
    %287 = arith.divf %285, %286 : vector<1x128xf32>
    %288 = vector.extract_strided_slice %277 {offsets = [0, 128], sizes = [1, 128], strides = [1, 1]} : vector<1x384xf32> to vector<1x128xf32>
    %289 = vector.extract_strided_slice %279 {offsets = [0, 128], sizes = [1, 128], strides = [1, 1]} : vector<1x384xf32> to vector<1x128xf32>
    %290 = arith.addf %288, %289 : vector<1x128xf32>
    %291 = arith.negf %290 : vector<1x128xf32>
    %292 = math.exp %291 : vector<1x128xf32>
    %cst_78 = arith.constant 1.000000e+00 : f32
    %293 = vector.broadcast %cst_78 : f32 to vector<1x128xf32>
    %294 = arith.addf %293, %292 : vector<1x128xf32>
    %295 = arith.divf %293, %294 : vector<1x128xf32>
    %296 = vector.extract_strided_slice %277 {offsets = [0, 256], sizes = [1, 128], strides = [1, 1]} : vector<1x384xf32> to vector<1x128xf32>
    %297 = vector.extract_strided_slice %279 {offsets = [0, 256], sizes = [1, 128], strides = [1, 1]} : vector<1x384xf32> to vector<1x128xf32>
    %298 = arith.mulf %287, %297 : vector<1x128xf32>
    %299 = arith.addf %296, %298 : vector<1x128xf32>
    %300 = math.tanh %299 : vector<1x128xf32>
    %cst_79 = arith.constant 1.000000e+00 : f32
    %301 = vector.broadcast %cst_79 : f32 to vector<1x128xf32>
    %302 = arith.subf %301, %295 : vector<1x128xf32>
    %303 = arith.mulf %302, %300 : vector<1x128xf32>
    %304 = arith.mulf %295, %275 : vector<1x128xf32>
    %305 = arith.addf %303, %304 : vector<1x128xf32>
    %306 = arith.index_cast %c0_i32_74 : i32 to index
    %c0_80 = arith.constant 0 : index
    %307 = vector.load %arg14[%306, %c0_80] : memref<8x128xf32, #tpu.memory_space<vmem>>, vector<1x128xf32>
    tpu.vector_store %arg14[%306, %c0_80], %305 {strides = array<i32>} : memref<8x128xf32, #tpu.memory_space<vmem>>, vector<1x128xf32>,
    %c1_i32_81 = arith.constant 1 : i32
    %308 = arith.index_cast %c1_i32_81 : i32 to index
    %c0_82 = arith.constant 0 : index
    %309 = vector.load %arg12[%308, %c0_82] : memref<8x384xf32, #tpu.memory_space<vmem>>, vector<1x384xf32>
    %cst_83 = arith.constant dense<0.000000e+00> : vector<1x384xf32>
    %310 = tpu.matmul %305, %273, %cst_83 {dimension_numbers = #tpu.dot_dimension_numbers<[1], [0], [0], [1], [0, 0, 1, 1], [], []>} : vector<1x128xf32>, vector<128x384xf32>, vector<1x384xf32> -> vector<1x384xf32>
    %311 = arith.addf %310, %274 : vector<1x384xf32>
    %312 = vector.extract_strided_slice %309 {offsets = [0, 0], sizes = [1, 128], strides = [1, 1]} : vector<1x384xf32> to vector<1x128xf32>
    %313 = vector.extract_strided_slice %311 {offsets = [0, 0], sizes = [1, 128], strides = [1, 1]} : vector<1x384xf32> to vector<1x128xf32>
    %314 = arith.addf %312, %313 : vector<1x128xf32>
    %315 = arith.negf %314 : vector<1x128xf32>
    %316 = math.exp %315 : vector<1x128xf32>
    %cst_84 = arith.constant 1.000000e+00 : f32
    %317 = vector.broadcast %cst_84 : f32 to vector<1x128xf32>
    %318 = arith.addf %317, %316 : vector<1x128xf32>
    %319 = arith.divf %317, %318 : vector<1x128xf32>
    %320 = vector.extract_strided_slice %309 {offsets = [0, 128], sizes = [1, 128], strides = [1, 1]} : vector<1x384xf32> to vector<1x128xf32>
    %321 = vector.extract_strided_slice %311 {offsets = [0, 128], sizes = [1, 128], strides = [1, 1]} : vector<1x384xf32> to vector<1x128xf32>
    %322 = arith.addf %320, %321 : vector<1x128xf32>
    %323 = arith.negf %322 : vector<1x128xf32>
    %324 = math.exp %323 : vector<1x128xf32>
    %cst_85 = arith.constant 1.000000e+00 : f32
    %325 = vector.broadcast %cst_85 : f32 to vector<1x128xf32>
    %326 = arith.addf %325, %324 : vector<1x128xf32>
    %327 = arith.divf %325, %326 : vector<1x128xf32>
    %328 = vector.extract_strided_slice %309 {offsets = [0, 256], sizes = [1, 128], strides = [1, 1]} : vector<1x384xf32> to vector<1x128xf32>
    %329 = vector.extract_strided_slice %311 {offsets = [0, 256], sizes = [1, 128], strides = [1, 1]} : vector<1x384xf32> to vector<1x128xf32>
    %330 = arith.mulf %319, %329 : vector<1x128xf32>
    %331 = arith.addf %328, %330 : vector<1x128xf32>
    %332 = math.tanh %331 : vector<1x128xf32>
    %cst_86 = arith.constant 1.000000e+00 : f32
    %333 = vector.broadcast %cst_86 : f32 to vector<1x128xf32>
    %334 = arith.subf %333, %327 : vector<1x128xf32>
    %335 = arith.mulf %334, %332 : vector<1x128xf32>
    %336 = arith.mulf %327, %305 : vector<1x128xf32>
    %337 = arith.addf %335, %336 : vector<1x128xf32>
    %338 = arith.index_cast %c1_i32_81 : i32 to index
    %c0_87 = arith.constant 0 : index
    %339 = vector.load %arg14[%338, %c0_87] : memref<8x128xf32, #tpu.memory_space<vmem>>, vector<1x128xf32>
    tpu.vector_store %arg14[%338, %c0_87], %337 {strides = array<i32>} : memref<8x128xf32, #tpu.memory_space<vmem>>, vector<1x128xf32>,
    %c2_i32_88 = arith.constant 2 : i32
    %340 = arith.index_cast %c2_i32_88 : i32 to index
    %c0_89 = arith.constant 0 : index
    %341 = vector.load %arg12[%340, %c0_89] : memref<8x384xf32, #tpu.memory_space<vmem>>, vector<1x384xf32>
    %cst_90 = arith.constant dense<0.000000e+00> : vector<1x384xf32>
    %342 = tpu.matmul %337, %273, %cst_90 {dimension_numbers = #tpu.dot_dimension_numbers<[1], [0], [0], [1], [0, 0, 1, 1], [], []>} : vector<1x128xf32>, vector<128x384xf32>, vector<1x384xf32> -> vector<1x384xf32>
    %343 = arith.addf %342, %274 : vector<1x384xf32>
    %344 = vector.extract_strided_slice %341 {offsets = [0, 0], sizes = [1, 128], strides = [1, 1]} : vector<1x384xf32> to vector<1x128xf32>
    %345 = vector.extract_strided_slice %343 {offsets = [0, 0], sizes = [1, 128], strides = [1, 1]} : vector<1x384xf32> to vector<1x128xf32>
    %346 = arith.addf %344, %345 : vector<1x128xf32>
    %347 = arith.negf %346 : vector<1x128xf32>
    %348 = math.exp %347 : vector<1x128xf32>
    %cst_91 = arith.constant 1.000000e+00 : f32
    %349 = vector.broadcast %cst_91 : f32 to vector<1x128xf32>
    %350 = arith.addf %349, %348 : vector<1x128xf32>
    %351 = arith.divf %349, %350 : vector<1x128xf32>
    %352 = vector.extract_strided_slice %341 {offsets = [0, 128], sizes = [1, 128], strides = [1, 1]} : vector<1x384xf32> to vector<1x128xf32>
    %353 = vector.extract_strided_slice %343 {offsets = [0, 128], sizes = [1, 128], strides = [1, 1]} : vector<1x384xf32> to vector<1x128xf32>
    %354 = arith.addf %352, %353 : vector<1x128xf32>
    %355 = arith.negf %354 : vector<1x128xf32>
    %356 = math.exp %355 : vector<1x128xf32>
    %cst_92 = arith.constant 1.000000e+00 : f32
    %357 = vector.broadcast %cst_92 : f32 to vector<1x128xf32>
    %358 = arith.addf %357, %356 : vector<1x128xf32>
    %359 = arith.divf %357, %358 : vector<1x128xf32>
    %360 = vector.extract_strided_slice %341 {offsets = [0, 256], sizes = [1, 128], strides = [1, 1]} : vector<1x384xf32> to vector<1x128xf32>
    %361 = vector.extract_strided_slice %343 {offsets = [0, 256], sizes = [1, 128], strides = [1, 1]} : vector<1x384xf32> to vector<1x128xf32>
    %362 = arith.mulf %351, %361 : vector<1x128xf32>
    %363 = arith.addf %360, %362 : vector<1x128xf32>
    %364 = math.tanh %363 : vector<1x128xf32>
    %cst_93 = arith.constant 1.000000e+00 : f32
    %365 = vector.broadcast %cst_93 : f32 to vector<1x128xf32>
    %366 = arith.subf %365, %359 : vector<1x128xf32>
    %367 = arith.mulf %366, %364 : vector<1x128xf32>
    %368 = arith.mulf %359, %337 : vector<1x128xf32>
    %369 = arith.addf %367, %368 : vector<1x128xf32>
    %370 = arith.index_cast %c2_i32_88 : i32 to index
    %c0_94 = arith.constant 0 : index
    %371 = vector.load %arg14[%370, %c0_94] : memref<8x128xf32, #tpu.memory_space<vmem>>, vector<1x128xf32>
    tpu.vector_store %arg14[%370, %c0_94], %369 {strides = array<i32>} : memref<8x128xf32, #tpu.memory_space<vmem>>, vector<1x128xf32>,
    %c3_i32_95 = arith.constant 3 : i32
    %372 = arith.index_cast %c3_i32_95 : i32 to index
    %c0_96 = arith.constant 0 : index
    %373 = vector.load %arg12[%372, %c0_96] : memref<8x384xf32, #tpu.memory_space<vmem>>, vector<1x384xf32>
    %cst_97 = arith.constant dense<0.000000e+00> : vector<1x384xf32>
    %374 = tpu.matmul %369, %273, %cst_97 {dimension_numbers = #tpu.dot_dimension_numbers<[1], [0], [0], [1], [0, 0, 1, 1], [], []>} : vector<1x128xf32>, vector<128x384xf32>, vector<1x384xf32> -> vector<1x384xf32>
    %375 = arith.addf %374, %274 : vector<1x384xf32>
    %376 = vector.extract_strided_slice %373 {offsets = [0, 0], sizes = [1, 128], strides = [1, 1]} : vector<1x384xf32> to vector<1x128xf32>
    %377 = vector.extract_strided_slice %375 {offsets = [0, 0], sizes = [1, 128], strides = [1, 1]} : vector<1x384xf32> to vector<1x128xf32>
    %378 = arith.addf %376, %377 : vector<1x128xf32>
    %379 = arith.negf %378 : vector<1x128xf32>
    %380 = math.exp %379 : vector<1x128xf32>
    %cst_98 = arith.constant 1.000000e+00 : f32
    %381 = vector.broadcast %cst_98 : f32 to vector<1x128xf32>
    %382 = arith.addf %381, %380 : vector<1x128xf32>
    %383 = arith.divf %381, %382 : vector<1x128xf32>
    %384 = vector.extract_strided_slice %373 {offsets = [0, 128], sizes = [1, 128], strides = [1, 1]} : vector<1x384xf32> to vector<1x128xf32>
    %385 = vector.extract_strided_slice %375 {offsets = [0, 128], sizes = [1, 128], strides = [1, 1]} : vector<1x384xf32> to vector<1x128xf32>
    %386 = arith.addf %384, %385 : vector<1x128xf32>
    %387 = arith.negf %386 : vector<1x128xf32>
    %388 = math.exp %387 : vector<1x128xf32>
    %cst_99 = arith.constant 1.000000e+00 : f32
    %389 = vector.broadcast %cst_99 : f32 to vector<1x128xf32>
    %390 = arith.addf %389, %388 : vector<1x128xf32>
    %391 = arith.divf %389, %390 : vector<1x128xf32>
    %392 = vector.extract_strided_slice %373 {offsets = [0, 256], sizes = [1, 128], strides = [1, 1]} : vector<1x384xf32> to vector<1x128xf32>
    %393 = vector.extract_strided_slice %375 {offsets = [0, 256], sizes = [1, 128], strides = [1, 1]} : vector<1x384xf32> to vector<1x128xf32>
    %394 = arith.mulf %383, %393 : vector<1x128xf32>
    %395 = arith.addf %392, %394 : vector<1x128xf32>
    %396 = math.tanh %395 : vector<1x128xf32>
    %cst_100 = arith.constant 1.000000e+00 : f32
    %397 = vector.broadcast %cst_100 : f32 to vector<1x128xf32>
    %398 = arith.subf %397, %391 : vector<1x128xf32>
    %399 = arith.mulf %398, %396 : vector<1x128xf32>
    %400 = arith.mulf %391, %369 : vector<1x128xf32>
    %401 = arith.addf %399, %400 : vector<1x128xf32>
    %402 = arith.index_cast %c3_i32_95 : i32 to index
    %c0_101 = arith.constant 0 : index
    %403 = vector.load %arg14[%402, %c0_101] : memref<8x128xf32, #tpu.memory_space<vmem>>, vector<1x128xf32>
    tpu.vector_store %arg14[%402, %c0_101], %401 {strides = array<i32>} : memref<8x128xf32, #tpu.memory_space<vmem>>, vector<1x128xf32>,
    %c4_i32_102 = arith.constant 4 : i32
    %404 = arith.index_cast %c4_i32_102 : i32 to index
    %c0_103 = arith.constant 0 : index
    %405 = vector.load %arg12[%404, %c0_103] : memref<8x384xf32, #tpu.memory_space<vmem>>, vector<1x384xf32>
    %cst_104 = arith.constant dense<0.000000e+00> : vector<1x384xf32>
    %406 = tpu.matmul %401, %273, %cst_104 {dimension_numbers = #tpu.dot_dimension_numbers<[1], [0], [0], [1], [0, 0, 1, 1], [], []>} : vector<1x128xf32>, vector<128x384xf32>, vector<1x384xf32> -> vector<1x384xf32>
    %407 = arith.addf %406, %274 : vector<1x384xf32>
    %408 = vector.extract_strided_slice %405 {offsets = [0, 0], sizes = [1, 128], strides = [1, 1]} : vector<1x384xf32> to vector<1x128xf32>
    %409 = vector.extract_strided_slice %407 {offsets = [0, 0], sizes = [1, 128], strides = [1, 1]} : vector<1x384xf32> to vector<1x128xf32>
    %410 = arith.addf %408, %409 : vector<1x128xf32>
    %411 = arith.negf %410 : vector<1x128xf32>
    %412 = math.exp %411 : vector<1x128xf32>
    %cst_105 = arith.constant 1.000000e+00 : f32
    %413 = vector.broadcast %cst_105 : f32 to vector<1x128xf32>
    %414 = arith.addf %413, %412 : vector<1x128xf32>
    %415 = arith.divf %413, %414 : vector<1x128xf32>
    %416 = vector.extract_strided_slice %405 {offsets = [0, 128], sizes = [1, 128], strides = [1, 1]} : vector<1x384xf32> to vector<1x128xf32>
    %417 = vector.extract_strided_slice %407 {offsets = [0, 128], sizes = [1, 128], strides = [1, 1]} : vector<1x384xf32> to vector<1x128xf32>
    %418 = arith.addf %416, %417 : vector<1x128xf32>
    %419 = arith.negf %418 : vector<1x128xf32>
    %420 = math.exp %419 : vector<1x128xf32>
    %cst_106 = arith.constant 1.000000e+00 : f32
    %421 = vector.broadcast %cst_106 : f32 to vector<1x128xf32>
    %422 = arith.addf %421, %420 : vector<1x128xf32>
    %423 = arith.divf %421, %422 : vector<1x128xf32>
    %424 = vector.extract_strided_slice %405 {offsets = [0, 256], sizes = [1, 128], strides = [1, 1]} : vector<1x384xf32> to vector<1x128xf32>
    %425 = vector.extract_strided_slice %407 {offsets = [0, 256], sizes = [1, 128], strides = [1, 1]} : vector<1x384xf32> to vector<1x128xf32>
    %426 = arith.mulf %415, %425 : vector<1x128xf32>
    %427 = arith.addf %424, %426 : vector<1x128xf32>
    %428 = math.tanh %427 : vector<1x128xf32>
    %cst_107 = arith.constant 1.000000e+00 : f32
    %429 = vector.broadcast %cst_107 : f32 to vector<1x128xf32>
    %430 = arith.subf %429, %423 : vector<1x128xf32>
    %431 = arith.mulf %430, %428 : vector<1x128xf32>
    %432 = arith.mulf %423, %401 : vector<1x128xf32>
    %433 = arith.addf %431, %432 : vector<1x128xf32>
    %434 = arith.index_cast %c4_i32_102 : i32 to index
    %c0_108 = arith.constant 0 : index
    %435 = vector.load %arg14[%434, %c0_108] : memref<8x128xf32, #tpu.memory_space<vmem>>, vector<1x128xf32>
    tpu.vector_store %arg14[%434, %c0_108], %433 {strides = array<i32>} : memref<8x128xf32, #tpu.memory_space<vmem>>, vector<1x128xf32>,
    %c5_i32_109 = arith.constant 5 : i32
    %436 = arith.index_cast %c5_i32_109 : i32 to index
    %c0_110 = arith.constant 0 : index
    %437 = vector.load %arg12[%436, %c0_110] : memref<8x384xf32, #tpu.memory_space<vmem>>, vector<1x384xf32>
    %cst_111 = arith.constant dense<0.000000e+00> : vector<1x384xf32>
    %438 = tpu.matmul %433, %273, %cst_111 {dimension_numbers = #tpu.dot_dimension_numbers<[1], [0], [0], [1], [0, 0, 1, 1], [], []>} : vector<1x128xf32>, vector<128x384xf32>, vector<1x384xf32> -> vector<1x384xf32>
    %439 = arith.addf %438, %274 : vector<1x384xf32>
    %440 = vector.extract_strided_slice %437 {offsets = [0, 0], sizes = [1, 128], strides = [1, 1]} : vector<1x384xf32> to vector<1x128xf32>
    %441 = vector.extract_strided_slice %439 {offsets = [0, 0], sizes = [1, 128], strides = [1, 1]} : vector<1x384xf32> to vector<1x128xf32>
    %442 = arith.addf %440, %441 : vector<1x128xf32>
    %443 = arith.negf %442 : vector<1x128xf32>
    %444 = math.exp %443 : vector<1x128xf32>
    %cst_112 = arith.constant 1.000000e+00 : f32
    %445 = vector.broadcast %cst_112 : f32 to vector<1x128xf32>
    %446 = arith.addf %445, %444 : vector<1x128xf32>
    %447 = arith.divf %445, %446 : vector<1x128xf32>
    %448 = vector.extract_strided_slice %437 {offsets = [0, 128], sizes = [1, 128], strides = [1, 1]} : vector<1x384xf32> to vector<1x128xf32>
    %449 = vector.extract_strided_slice %439 {offsets = [0, 128], sizes = [1, 128], strides = [1, 1]} : vector<1x384xf32> to vector<1x128xf32>
    %450 = arith.addf %448, %449 : vector<1x128xf32>
    %451 = arith.negf %450 : vector<1x128xf32>
    %452 = math.exp %451 : vector<1x128xf32>
    %cst_113 = arith.constant 1.000000e+00 : f32
    %453 = vector.broadcast %cst_113 : f32 to vector<1x128xf32>
    %454 = arith.addf %453, %452 : vector<1x128xf32>
    %455 = arith.divf %453, %454 : vector<1x128xf32>
    %456 = vector.extract_strided_slice %437 {offsets = [0, 256], sizes = [1, 128], strides = [1, 1]} : vector<1x384xf32> to vector<1x128xf32>
    %457 = vector.extract_strided_slice %439 {offsets = [0, 256], sizes = [1, 128], strides = [1, 1]} : vector<1x384xf32> to vector<1x128xf32>
    %458 = arith.mulf %447, %457 : vector<1x128xf32>
    %459 = arith.addf %456, %458 : vector<1x128xf32>
    %460 = math.tanh %459 : vector<1x128xf32>
    %cst_114 = arith.constant 1.000000e+00 : f32
    %461 = vector.broadcast %cst_114 : f32 to vector<1x128xf32>
    %462 = arith.subf %461, %455 : vector<1x128xf32>
    %463 = arith.mulf %462, %460 : vector<1x128xf32>
    %464 = arith.mulf %455, %433 : vector<1x128xf32>
    %465 = arith.addf %463, %464 : vector<1x128xf32>
    %466 = arith.index_cast %c5_i32_109 : i32 to index
    %c0_115 = arith.constant 0 : index
    %467 = vector.load %arg14[%466, %c0_115] : memref<8x128xf32, #tpu.memory_space<vmem>>, vector<1x128xf32>
    tpu.vector_store %arg14[%466, %c0_115], %465 {strides = array<i32>} : memref<8x128xf32, #tpu.memory_space<vmem>>, vector<1x128xf32>,
    %c6_i32_116 = arith.constant 6 : i32
    %468 = arith.index_cast %c6_i32_116 : i32 to index
    %c0_117 = arith.constant 0 : index
    %469 = vector.load %arg12[%468, %c0_117] : memref<8x384xf32, #tpu.memory_space<vmem>>, vector<1x384xf32>
    %cst_118 = arith.constant dense<0.000000e+00> : vector<1x384xf32>
    %470 = tpu.matmul %465, %273, %cst_118 {dimension_numbers = #tpu.dot_dimension_numbers<[1], [0], [0], [1], [0, 0, 1, 1], [], []>} : vector<1x128xf32>, vector<128x384xf32>, vector<1x384xf32> -> vector<1x384xf32>
    %471 = arith.addf %470, %274 : vector<1x384xf32>
    %472 = vector.extract_strided_slice %469 {offsets = [0, 0], sizes = [1, 128], strides = [1, 1]} : vector<1x384xf32> to vector<1x128xf32>
    %473 = vector.extract_strided_slice %471 {offsets = [0, 0], sizes = [1, 128], strides = [1, 1]} : vector<1x384xf32> to vector<1x128xf32>
    %474 = arith.addf %472, %473 : vector<1x128xf32>
    %475 = arith.negf %474 : vector<1x128xf32>
    %476 = math.exp %475 : vector<1x128xf32>
    %cst_119 = arith.constant 1.000000e+00 : f32
    %477 = vector.broadcast %cst_119 : f32 to vector<1x128xf32>
    %478 = arith.addf %477, %476 : vector<1x128xf32>
    %479 = arith.divf %477, %478 : vector<1x128xf32>
    %480 = vector.extract_strided_slice %469 {offsets = [0, 128], sizes = [1, 128], strides = [1, 1]} : vector<1x384xf32> to vector<1x128xf32>
    %481 = vector.extract_strided_slice %471 {offsets = [0, 128], sizes = [1, 128], strides = [1, 1]} : vector<1x384xf32> to vector<1x128xf32>
    %482 = arith.addf %480, %481 : vector<1x128xf32>
    %483 = arith.negf %482 : vector<1x128xf32>
    %484 = math.exp %483 : vector<1x128xf32>
    %cst_120 = arith.constant 1.000000e+00 : f32
    %485 = vector.broadcast %cst_120 : f32 to vector<1x128xf32>
    %486 = arith.addf %485, %484 : vector<1x128xf32>
    %487 = arith.divf %485, %486 : vector<1x128xf32>
    %488 = vector.extract_strided_slice %469 {offsets = [0, 256], sizes = [1, 128], strides = [1, 1]} : vector<1x384xf32> to vector<1x128xf32>
    %489 = vector.extract_strided_slice %471 {offsets = [0, 256], sizes = [1, 128], strides = [1, 1]} : vector<1x384xf32> to vector<1x128xf32>
    %490 = arith.mulf %479, %489 : vector<1x128xf32>
    %491 = arith.addf %488, %490 : vector<1x128xf32>
    %492 = math.tanh %491 : vector<1x128xf32>
    %cst_121 = arith.constant 1.000000e+00 : f32
    %493 = vector.broadcast %cst_121 : f32 to vector<1x128xf32>
    %494 = arith.subf %493, %487 : vector<1x128xf32>
    %495 = arith.mulf %494, %492 : vector<1x128xf32>
    %496 = arith.mulf %487, %465 : vector<1x128xf32>
    %497 = arith.addf %495, %496 : vector<1x128xf32>
    %498 = arith.index_cast %c6_i32_116 : i32 to index
    %c0_122 = arith.constant 0 : index
    %499 = vector.load %arg14[%498, %c0_122] : memref<8x128xf32, #tpu.memory_space<vmem>>, vector<1x128xf32>
    tpu.vector_store %arg14[%498, %c0_122], %497 {strides = array<i32>} : memref<8x128xf32, #tpu.memory_space<vmem>>, vector<1x128xf32>,
    %c7_i32_123 = arith.constant 7 : i32
    %500 = arith.index_cast %c7_i32_123 : i32 to index
    %c0_124 = arith.constant 0 : index
    %501 = vector.load %arg12[%500, %c0_124] : memref<8x384xf32, #tpu.memory_space<vmem>>, vector<1x384xf32>
    %cst_125 = arith.constant dense<0.000000e+00> : vector<1x384xf32>
    %502 = tpu.matmul %497, %273, %cst_125 {dimension_numbers = #tpu.dot_dimension_numbers<[1], [0], [0], [1], [0, 0, 1, 1], [], []>} : vector<1x128xf32>, vector<128x384xf32>, vector<1x384xf32> -> vector<1x384xf32>
    %503 = arith.addf %502, %274 : vector<1x384xf32>
    %504 = vector.extract_strided_slice %501 {offsets = [0, 0], sizes = [1, 128], strides = [1, 1]} : vector<1x384xf32> to vector<1x128xf32>
    %505 = vector.extract_strided_slice %503 {offsets = [0, 0], sizes = [1, 128], strides = [1, 1]} : vector<1x384xf32> to vector<1x128xf32>
    %506 = arith.addf %504, %505 : vector<1x128xf32>
    %507 = arith.negf %506 : vector<1x128xf32>
    %508 = math.exp %507 : vector<1x128xf32>
    %cst_126 = arith.constant 1.000000e+00 : f32
    %509 = vector.broadcast %cst_126 : f32 to vector<1x128xf32>
    %510 = arith.addf %509, %508 : vector<1x128xf32>
    %511 = arith.divf %509, %510 : vector<1x128xf32>
    %512 = vector.extract_strided_slice %501 {offsets = [0, 128], sizes = [1, 128], strides = [1, 1]} : vector<1x384xf32> to vector<1x128xf32>
    %513 = vector.extract_strided_slice %503 {offsets = [0, 128], sizes = [1, 128], strides = [1, 1]} : vector<1x384xf32> to vector<1x128xf32>
    %514 = arith.addf %512, %513 : vector<1x128xf32>
    %515 = arith.negf %514 : vector<1x128xf32>
    %516 = math.exp %515 : vector<1x128xf32>
    %cst_127 = arith.constant 1.000000e+00 : f32
    %517 = vector.broadcast %cst_127 : f32 to vector<1x128xf32>
    %518 = arith.addf %517, %516 : vector<1x128xf32>
    %519 = arith.divf %517, %518 : vector<1x128xf32>
    %520 = vector.extract_strided_slice %501 {offsets = [0, 256], sizes = [1, 128], strides = [1, 1]} : vector<1x384xf32> to vector<1x128xf32>
    %521 = vector.extract_strided_slice %503 {offsets = [0, 256], sizes = [1, 128], strides = [1, 1]} : vector<1x384xf32> to vector<1x128xf32>
    %522 = arith.mulf %511, %521 : vector<1x128xf32>
    %523 = arith.addf %520, %522 : vector<1x128xf32>
    %524 = math.tanh %523 : vector<1x128xf32>
    %cst_128 = arith.constant 1.000000e+00 : f32
    %525 = vector.broadcast %cst_128 : f32 to vector<1x128xf32>
    %526 = arith.subf %525, %519 : vector<1x128xf32>
    %527 = arith.mulf %526, %524 : vector<1x128xf32>
    %528 = arith.mulf %519, %497 : vector<1x128xf32>
    %529 = arith.addf %527, %528 : vector<1x128xf32>
    %530 = arith.index_cast %c7_i32_123 : i32 to index
    %c0_129 = arith.constant 0 : index
    %531 = vector.load %arg14[%530, %c0_129] : memref<8x128xf32, #tpu.memory_space<vmem>>, vector<1x128xf32>
    tpu.vector_store %arg14[%530, %c0_129], %529 {strides = array<i32>} : memref<8x128xf32, #tpu.memory_space<vmem>>, vector<1x128xf32>,
    %c8_i32_130 = arith.constant 8 : i32
    %c0_131 = arith.constant 0 : index
    %c0_132 = arith.constant 0 : index
    %532 = vector.load %arg14[%c0_131, %c0_132] : memref<8x128xf32, #tpu.memory_space<vmem>>, vector<8x128xf32>
    %c0_133 = arith.constant 0 : index
    %c0_134 = arith.constant 0 : index
    %533 = vector.load %arg9[%c0_133, %c0_134] : memref<128x128xf32, #tpu.memory_space<vmem>>, vector<128x128xf32>
    %cst_135 = arith.constant dense<0.000000e+00> : vector<8x128xf32>
    %534 = tpu.matmul %532, %533, %cst_135 {dimension_numbers = #tpu.dot_dimension_numbers<[1], [0], [0], [1], [0, 0, 1, 1], [], []>} : vector<8x128xf32>, vector<128x128xf32>, vector<8x128xf32> -> vector<8x128xf32>
    %c0_136 = arith.constant 0 : index
    %c0_137 = arith.constant 0 : index
    %535 = vector.load %arg10[%c0_136, %c0_137] : memref<1x128xf32, #tpu.memory_space<vmem>>, vector<1x128xf32>
    %536 = vector.broadcast %535 : vector<1x128xf32> to vector<8x128xf32>
    %537 = arith.addf %534, %536 : vector<8x128xf32>
    %c0_138 = arith.constant 0 : index
    %c0_139 = arith.constant 0 : index
    %538 = vector.load %arg11[%c0_138, %c0_139] : memref<8x128xf32, #tpu.memory_space<vmem>>, vector<8x128xf32>
    tpu.vector_store %arg11[%c0_138, %c0_139], %537 {strides = array<i32>} : memref<8x128xf32, #tpu.memory_space<vmem>>, vector<8x128xf32>,
    return
  }
}

</mosaic_0001>

<bundles_post_ra>
// kernel: tpu_custom_call.1
= control target key start
LH: loop header
LB: loop body
LE: loop exit
PB: predicated region body
PF: predicated region fallthrough
CT: control target
= control target key end

     0   :  { %16 = vsyncpa [#allocation6], 0  ;;  %s6753_s0 = inlined_call_operand.hbm [shape: f32[8,256], index: 0, kind: input, shape index: {}]   ;;  %s6754_s1 = inlined_call_operand.hbm [shape: f32[256,384], index: 1, kind: input, shape index: {}]   ;;  %s6755_s2 = inlined_call_operand.hbm [shape: f32[128,384], index: 2, kind: input, shape index: {}]   ;;  %s6756_s3 = inlined_call_operand.vmem [shape: f32[1,384], index: 3, kind: input, shape index: {}]   ;;  %s6757_s4 = inlined_call_operand.vmem [shape: f32[1,384], index: 4, kind: input, shape index: {}]   ;;  %s6758_s5 = inlined_call_operand.hbm [shape: f32[128,384], index: 5, kind: input, shape index: {}]   ;;  %s6759_s6 = inlined_call_operand.hbm [shape: f32[128,384], index: 6, kind: input, shape index: {}]   ;;  %s6760_s7 = inlined_call_operand.vmem [shape: f32[1,384], index: 7, kind: input, shape index: {}]   ;;  %s6761_s8 = inlined_call_operand.vmem [shape: f32[1,384], index: 8, kind: input, shape index: {}]   ;;  %s6762_s9 = inlined_call_operand.hbm [shape: f32[128,128], index: 9, kind: input, shape index: {}]   ;;  %s6763_s10 = inlined_call_operand.vmem [shape: f32[1,128], index: 10, kind: input, shape index: {}]   ;;  %s6764_s11 = inlined_call_operand.hbm [shape: f32[8,128], index: 11, kind: output, shape index: {}]  }
   0x1   :  { %17 = vsyncpa [#allocation9], 0 }
   0x2   :  { %18 = vsyncpa [#allocation12], 0 }
   0x3   :  { %19 = vsyncpa [#allocation15], 0 }
   0x4   :  { %20 = vsyncpa [#allocation7], 0  ;;  %s4965_s17 = smov [#allocation8]  }
   0x5   :  { %s36_s18 = sshll.u32 %s4965_s17, 4  ;;  %s37_s18 = int_to_ptr.vmem [resolvable:$true] %s36_s18 }
   0x6   :  { %s4823_s19 = scalar_lea.vmem %s37_s18, 12288  ;;  %p4828_p1 = scmp.lt.s32.totalorder %s37_s18, %s37_s18 }
   0x7   :  { %p4824_p0 = scmp.ne.s32.totalorder %s37_s18, %s4823_s19  ;;  %p4829_p2 = scmp.lt.s32.totalorder %s4823_s19, %s4823_s19 }
   0x9   :  { %p4830_p3 = por %p4829_p2, %p4828_p1 }
   0xb   :  { %p4831_p4 = pnand %p4830_p3, %p4824_p0 }
   0xd   :  { %4834 = shalt.err (!%p4831_p4)
}
   0xe   :  { %s4966_s20 = smov 384   ;;  %s4967_s21 = smov 24  }
   0xf   :  { %42 = dma.hbm_to_vmem [thread:$0]  %s6754_s1, 12288, %s37_s18, [#allocation9], %s4966_s20, %s4966_s20, %s4967_s21  }
  0x10   :  { %s4968_s24 = smov [#allocation11]   ;;  %s4969_s26 = smov [#allocation5]  }
  0x11   :  { %s64_s25 = sshll.u32 %s4968_s24, 4  ;;  %s27_s27 = sshll.u32 %s4969_s26, 4  ;;  %s65_s25 = int_to_ptr.vmem [resolvable:$true] %s64_s25  ;;  %s28_s27 = int_to_ptr.vmem [resolvable:$true] %s27_s27 }
  0x12   :  { %s4843_s28 = scalar_lea.vmem %s65_s25, 6144  ;;  %p4848_p6 = scmp.lt.s32.totalorder %s65_s25, %s65_s25 }
  0x13   :  { %p4844_p5 = scmp.ne.s32.totalorder %s65_s25, %s4843_s28  ;;  %p4849_p7 = scmp.lt.s32.totalorder %s4843_s28, %s4843_s28 }
  0x15   :  { %p4850_p8 = por %p4849_p7, %p4848_p6 }
  0x17   :  { %p4851_p9 = pnand %p4850_p8, %p4844_p5 }
  0x19   :  { %4854 = shalt.err (!%p4851_p9)
}
  0x1a   :  { %70 = dma.hbm_to_vmem [thread:$0]  %s6758_s5, 6144, %s65_s25, [#allocation12], %s4966_s20, %s4966_s20, %s4967_s21  }
  0x1b   :  { %s4863_s1 = scalar_lea.vmem %s28_s27, 256  ;;  %p4868_p11 = scmp.lt.s32.totalorder %s28_s27, %s28_s27 }
  0x1c   :  { %p4864_p10 = scmp.ne.s32.totalorder %s28_s27, %s4863_s1  ;;  %p4869_p12 = scmp.lt.s32.totalorder %s4863_s1, %s4863_s1 }
  0x1e   :  { %p4870_p13 = por %p4869_p12, %p4868_p11 }
  0x20   :  { %p4871_p0 = pnand %p4870_p13, %p4864_p10 }
  0x22   :  { %4874 = shalt.err (!%p4871_p0)
}
  0x23   :  { %30 = dma.hbm_to_vmem [thread:$0]  %s6753_s0, 256, %s28_s27, [#allocation6]  }
  0x24   :  { %s4970_s14 = smov [#allocation10]   ;;  %s4971_s16 = smov [#allocation13]  }
  0x25   :  { %s48_s15 = sshll.u32 %s4970_s14, 4  ;;  %s76_s17 = sshll.u32 %s4971_s16, 4  ;;  %s49_s15 = int_to_ptr.vmem [resolvable:$true] %s48_s15  ;;  %s77_s17 = int_to_ptr.vmem [resolvable:$true] %s76_s17 }
  0x26   :  { %s4883_s18 = scalar_lea.vmem %s49_s15, 6144  ;;  %p4888_p2 = scmp.lt.s32.totalorder %s49_s15, %s49_s15 }
  0x27   :  { %p4884_p1 = scmp.ne.s32.totalorder %s49_s15, %s4883_s18  ;;  %p4889_p3 = scmp.lt.s32.totalorder %s4883_s18, %s4883_s18 }
  0x29   :  { %p4890_p4 = por %p4889_p3, %p4888_p2 }
  0x2b   :  { %p4891_p5 = pnand %p4890_p4, %p4884_p1 }
  0x2d   :  { %4894 = shalt.err (!%p4891_p5)
}
  0x2e   :  { %54 = dma.hbm_to_vmem [thread:$0]  %s6755_s2, 6144, %s49_s15, [#allocation9], %s4966_s20, %s4966_s20, %s4967_s21  }
  0x2f   :  { %s4903_s0 = scalar_lea.vmem %s77_s17, 6144  ;;  %p4908_p7 = scmp.lt.s32.totalorder %s77_s17, %s77_s17 }
  0x30   :  { %p4904_p6 = scmp.ne.s32.totalorder %s77_s17, %s4903_s0  ;;  %p4909_p8 = scmp.lt.s32.totalorder %s4903_s0, %s4903_s0 }
  0x32   :  { %p4910_p9 = por %p4909_p8, %p4908_p7 }
  0x34   :  { %p4911_p10 = pnand %p4910_p9, %p4904_p6 }
  0x36   :  { %4914 = shalt.err (!%p4911_p10)
}
  0x37   :  { %82 = dma.hbm_to_vmem [thread:$0]  %s6759_s6, 6144, %s77_s17, [#allocation12], %s4966_s20, %s4966_s20, %s4967_s21  }
  0x38   :  { %s4972_s24 = smov [#allocation14]  }
  0x39   :  { %s92_s25 = sshll.u32 %s4972_s24, 4  ;;  %s93_s25 = int_to_ptr.vmem [resolvable:$true] %s92_s25 }
  0x3a   :  { %s4923_s26 = scalar_lea.vmem %s93_s25, 2048  ;;  %p4928_p12 = scmp.lt.s32.totalorder %s93_s25, %s93_s25 }
  0x3b   :  { %p4924_p11 = scmp.ne.s32.totalorder %s93_s25, %s4923_s26  ;;  %p4929_p13 = scmp.lt.s32.totalorder %s4923_s26, %s4923_s26 }
  0x3d   :  { %p4930_p0 = por %p4929_p13, %p4928_p12 }
  0x3f   :  { %p4931_p1 = pnand %p4930_p0, %p4924_p11 }
  0x41   :  { %4934 = shalt.err (!%p4931_p1)
}
  0x42   :  { %s4973_s2 = smov 128   ;;  %s4974_s27 = smov 8  }
  0x43   :  { %98 = dma.hbm_to_vmem [thread:$0]  %s6762_s9, 2048, %s93_s25, [#allocation15], %s4973_s2, %s4973_s2, %s4974_s27  }
  0x44   :  { %4955 = dma.done.wait [#allocation6], 256  }
  0x45   :  { %4956 = vsyncadd [#allocation6], 4294967040 }
  0x46   :  { %4957 = dma.done.wait [#allocation9], 18432  }
  0x47   :  { %4958 = vsyncadd [#allocation9], 4294948864 }
  0x48   :  { %4959 = dma.done.wait [#allocation12], 12288  }
  0x49   :  { %4960 = vsyncadd [#allocation12], 4294955008 }
  0x4a   :  { %4961 = dma.done.wait [#allocation15], 2048  }
  0x4b   :  { %4962 = vsyncadd [#allocation15], 4294965248  ;;  %v167_v0 = vld [vmem:[#allocation8 + $0x170] sm:$0xff]  ;;  %v166_v1 = vld [vmem:[#allocation8 + $0x168] sm:$0xff]  ;;  %vm4976_vm0 = vmmov 0   ;;  %s4977_s12 = smov [#allocation16]  }
  0x4c   :  { %v164_v2 = vld [vmem:[#allocation8 + $0x158] sm:$0xff]  ;;  %234 = vmatprep.subr.mxu0 %v167_v0  ;;  %v163_v3 = vld [vmem:[#allocation8 + $0x150] sm:$0xff]  ;;  %v161_v4 = vld [vmem:[#allocation8 + $0x140] sm:$0xff]  ;;  %s3530_s13 = sshll.u32 %s4977_s12, 4  ;;  %s3531_s13 = int_to_ptr.vmem [resolvable:$true] %s3530_s13 }
  0x4d   :  { %235 = vmatpush1.msra.mxu0 %v166_v1  ;;  %v160_v5 = vld [vmem:[#allocation8 + $0x138] sm:$0xff]  ;;  %v158_v8 = vld [vmem:[#allocation8 + $0x128] sm:$0xff]  ;;  %v213_v9 = vld [vmem:[#allocation8 + $0x2e0] sm:$0xff]  ;;  %s4935_s14 = scalar_lea.vmem %s3531_s13, 128  ;;  %p4940_p3 = scmp.lt.s32.totalorder %s3531_s13, %s3531_s13 }
  0x4e   :  { %236 = vmatprep.subr.mxu0 %v164_v2  ;;  %v216_v6 = vld [vmem:[#allocation8 + $0x2f8] sm:$0xff]  ;;  %v157_v10 = vld [vmem:[#allocation8 + $0x120] sm:$0xff]  ;;  %v210_v12 = vld [vmem:[#allocation8 + $0x2c8] sm:$0xff]  ;;  %p4936_p2 = scmp.ne.s32.totalorder %s3531_s13, %s4935_s14  ;;  %p4941_p4 = scmp.lt.s32.totalorder %s4935_s14, %s4935_s14 }
  0x4f   :  { %v168_v7 = vld [vmem:[#allocation8 + $0x178] sm:$0xff]  ;;  %237 = vmatpush1.msra.mxu0 %v163_v3  ;;  %3575 = vmatprep.subr.mxu1 %v216_v6  ;;  %v165_v11 = vld [vmem:[#allocation8 + $0x160] sm:$0xff]  ;;  %v155_v13 = vld [vmem:[#allocation8 + $0x110] sm:$0xff] }
  0x50   :  { %238 = vmatprep.subr.mxu0 %v161_v4  ;;  %3576 = vmatpush3.msra.mxu1 %v168_v7  ;;  %v162_v14 = vld [vmem:[#allocation8 + $0x148] sm:$0xff]  ;;  %v207_v16 = vld [vmem:[#allocation8 + $0x2b0] sm:$0xff]  ;;  %v152_v17 = vld [vmem:[#allocation8 + $0xf8] sm:$0xff]  ;;  %p4942_p5 = por %p4941_p4, %p4940_p3 }
  0x51   :  { %239 = vmatpush1.msra.mxu0 %v160_v5  ;;  %3577 = vmatprep.subr.mxu1 %v213_v9  ;;  %v154_v15 = vld [vmem:[#allocation8 + $0x108] sm:$0xff]  ;;  %v159_v18 = vld [vmem:[#allocation8 + $0x130] sm:$0xff]  ;;  %v204_v20 = vld [vmem:[#allocation8 + $0x298] sm:$0xff] }
  0x52   :  { %240 = vmatprep.subr.mxu0 %v158_v8  ;;  %3578 = vmatpush3.msra.mxu1 %v165_v11  ;;  %v151_v19 = vld [vmem:[#allocation8 + $0xf0] sm:$0xff]  ;;  %v149_v21 = vld [vmem:[#allocation8 + $0xe0] sm:$0xff]  ;;  %v156_v22 = vld [vmem:[#allocation8 + $0x118] sm:$0xff]  ;;  %p4943_p6 = pnand %p4942_p5, %p4936_p2 }
  0x53   :  { %241 = vmatpush1.msra.mxu0 %v157_v10  ;;  %3579 = vmatprep.subr.mxu1 %v210_v12  ;;  %v148_v23 = vld [vmem:[#allocation8 + $0xd8] sm:$0xff]  ;;  %v201_v24 = vld [vmem:[#allocation8 + $0x280] sm:$0xff]  ;;  %v146_v25 = vld [vmem:[#allocation8 + $0xc8] sm:$0xff] }
  0x54   :  { %242 = vmatprep.subr.mxu0 %v155_v13  ;;  %3580 = vmatpush3.msra.mxu1 %v162_v14  ;;  %v153_v26 = vld [vmem:[#allocation8 + $0x100] sm:$0xff]  ;;  %v198_v28 = vld [vmem:[#allocation8 + $0x268] sm:$0xff]  ;;  %v143_v29 = vld [vmem:[#allocation8 + $0xb0] sm:$0xff] }
  0x55   :  { %243 = vmatpush1.msra.mxu0 %v154_v15  ;;  %3581 = vmatprep.subr.mxu1 %v207_v16  ;;  %v145_v27 = vld [vmem:[#allocation8 + $0xc0] sm:$0xff]  ;;  %v150_v30 = vld [vmem:[#allocation8 + $0xe8] sm:$0xff]  ;;  %v195_v32 = vld [vmem:[#allocation8 + $0x250] sm:$0xff] }
  0x56   :  { %244 = vmatprep.subr.mxu0 %v152_v17  ;;  %3582 = vmatpush3.msra.mxu1 %v159_v18  ;;  %v142_v31 = vld [vmem:[#allocation8 + $0xa8] sm:$0xff]  ;;  %v140_v33 = vld [vmem:[#allocation8 + $0x98] sm:$0xff]  ;;  %v147_v34 = vld [vmem:[#allocation8 + $0xd0] sm:$0xff] }
  0x57   :  { %245 = vmatpush1.msra.mxu0 %v151_v19  ;;  %3583 = vmatprep.subr.mxu1 %v204_v20  ;;  %v139_v35 = vld [vmem:[#allocation8 + $0x90] sm:$0xff]  ;;  %v192_v36 = vld [vmem:[#allocation8 + $0x238] sm:$0xff]  ;;  %v137_v37 = vld [vmem:[#allocation8 + $0x80] sm:$0xff] }
  0x58   :  { %246 = vmatprep.subr.mxu0 %v149_v21  ;;  %3584 = vmatpush3.msra.mxu1 %v156_v22  ;;  %v144_v38 = vld [vmem:[#allocation8 + $0xb8] sm:$0xff]  ;;  %v189_v40 = vld [vmem:[#allocation8 + $0x220] sm:$0xff]  ;;  %v134_v41 = vld [vmem:[#allocation8 + $0x68] sm:$0xff] }
  0x59   :  { %247 = vmatpush1.msra.mxu0 %v148_v23  ;;  %3585 = vmatprep.subr.mxu1 %v201_v24  ;;  %v136_v39 = vld [vmem:[#allocation8 + $0x78] sm:$0xff]  ;;  %v141_v42 = vld [vmem:[#allocation8 + $0xa0] sm:$0xff]  ;;  %v186_v44 = vld [vmem:[#allocation8 + $0x208] sm:$0xff] }
  0x5a   :  { %248 = vmatprep.subr.mxu0 %v146_v25  ;;  %3586 = vmatpush3.msra.mxu1 %v153_v26  ;;  %v133_v43 = vld [vmem:[#allocation8 + $0x60] sm:$0xff]  ;;  %v131_v45 = vld [vmem:[#allocation8 + $0x50] sm:$0xff]  ;;  %v138_v46 = vld [vmem:[#allocation8 + $0x88] sm:$0xff] }
  0x5b   :  { %249 = vmatpush1.msra.mxu0 %v145_v27  ;;  %3587 = vmatprep.subr.mxu1 %v198_v28  ;;  %v130_v47 = vld [vmem:[#allocation8 + $0x48] sm:$0xff]  ;;  %v183_v48 = vld [vmem:[#allocation8 + $0x1f0] sm:$0xff]  ;;  %v128_v49 = vld [vmem:[#allocation8 + $0x38] sm:$0xff] }
  0x5c   :  { %250 = vmatprep.subr.mxu0 %v143_v29  ;;  %3588 = vmatpush3.msra.mxu1 %v150_v30  ;;  %v135_v50 = vld [vmem:[#allocation8 + $0x70] sm:$0xff]  ;;  %v180_v52 = vld [vmem:[#allocation8 + $0x1d8] sm:$0xff]  ;;  %v125_v53 = vld [vmem:[#allocation8 + $0x20] sm:$0xff] }
  0x5d   :  { %251 = vmatpush1.msra.mxu0 %v142_v31  ;;  %3589 = vmatprep.subr.mxu1 %v195_v32  ;;  %v127_v51 = vld [vmem:[#allocation8 + $0x30] sm:$0xff]  ;;  %v132_v54 = vld [vmem:[#allocation8 + $0x58] sm:$0xff]  ;;  %v177_v56 = vld [vmem:[#allocation8 + $0x1c0] sm:$0xff] }
  0x5e   :  { %252 = vmatprep.subr.mxu0 %v140_v33  ;;  %3590 = vmatpush3.msra.mxu1 %v147_v34  ;;  %v124_v55 = vld [vmem:[#allocation8 + $0x18] sm:$0xff]  ;;  %v122_v57 = vld [vmem:[#allocation8 + $0x8] sm:$0xff]  ;;  %v129_v58 = vld [vmem:[#allocation8 + $0x40] sm:$0xff] }
  0x5f   :  { %253 = vmatpush1.msra.mxu0 %v139_v35  ;;  %3591 = vmatprep.subr.mxu1 %v192_v36  ;;  %v121_v59 = vld [vmem:[#allocation8] sm:$0xff]  ;;  %v174_v60 = vld [vmem:[#allocation8 + $0x1a8] sm:$0xff]  ;;  %v215_v61 = vld [vmem:[#allocation8 + $0x2f0] sm:$0xff] }
  0x60   :  { %254 = vmatprep.subr.mxu0 %v137_v37  ;;  %3592 = vmatpush3.msra.mxu1 %v144_v38  ;;  %v126_v62 = vld [vmem:[#allocation8 + $0x28] sm:$0xff]  ;;  %v171_v0 = vld [vmem:[#allocation8 + $0x190] sm:$0xff]  ;;  %v212_v1 = vld [vmem:[#allocation8 + $0x2d8] sm:$0xff] }
  0x61   :  { %255 = vmatpush1.msra.mxu0 %v136_v39  ;;  %3593 = vmatprep.subr.mxu1 %v189_v40  ;;  %v214_v63 = vld [vmem:[#allocation8 + $0x2e8] sm:$0xff]  ;;  %v123_v2 = vld [vmem:[#allocation8 + $0x10] sm:$0xff]  ;;  %v5068_v4 = vld [vmem:[#allocation5 + $0x8] sm:$0xff] }
  0x62   :  { %256 = vmatprep.subr.mxu0 %v134_v41  ;;  %3594 = vmatpush3.msra.mxu1 %v141_v42  ;;  %v211_v3 = vld [vmem:[#allocation8 + $0x2d0] sm:$0xff]  ;;  %v209_v5 = vld [vmem:[#allocation8 + $0x2c0] sm:$0xff]  ;;  %v208_v7 = vld [vmem:[#allocation8 + $0x2b8] sm:$0xff] }
  0x63   :  { %257 = vmatpush1.msra.mxu0 %v133_v43  ;;  %3595 = vmatprep.subr.mxu1 %v186_v44  ;;  %v5070_v6 = vld [vmem:[#allocation10 + $0x170] sm:$0xff]  ;;  %v206_v9 = vld [vmem:[#allocation8 + $0x2a8] sm:$0xff]  ;;  %v205_v11 = vld [vmem:[#allocation8 + $0x2a0] sm:$0xff] }
  0x64   :  { %258 = vmatprep.subr.mxu0 %v131_v45  ;;  %3596 = vmatpush3.msra.mxu1 %v138_v46  ;;  %6819 = vst [vmem:[#allocation22_spill] sm:$0xff] %v5070_v6  ;;  %v5072_v8 = vld [vmem:[#allocation5] sm:$0xff]  ;;  %v5075_v10 = vld [vmem:[#allocation10 + $0x168] sm:$0xff]  ;;  %v5078_v12 = vld [vmem:[#allocation10 + $0x158] sm:$0xff] }
  0x65   :  { %259 = vmatpush1.msra.mxu0 %v130_v47  ;;  %3597 = vmatprep.subr.mxu1 %v183_v48  ;;  %v203_v13 = vld [vmem:[#allocation8 + $0x290] sm:$0xff]  ;;  %v202_v15 = vld [vmem:[#allocation8 + $0x288] sm:$0xff]  ;;  %v5084_v16 = vld [vmem:[#allocation10 + $0x140] sm:$0xff] }
  0x66   :  { %260 = vmatprep.subr.mxu0 %v128_v49  ;;  %3598 = vmatpush3.msra.mxu1 %v135_v50  ;;  %v5081_v14 = vld [vmem:[#allocation10 + $0x150] sm:$0xff]  ;;  %v200_v17 = vld [vmem:[#allocation8 + $0x278] sm:$0xff]  ;;  %v5090_v20 = vld [vmem:[#allocation10 + $0x128] sm:$0xff] }
  0x67   :  { %261 = vmatpush1.msra.mxu0 %v127_v51  ;;  %3599 = vmatprep.subr.mxu1 %v180_v52  ;;  %v5087_v18 = vld [vmem:[#allocation10 + $0x138] sm:$0xff]  ;;  %v199_v19 = vld [vmem:[#allocation8 + $0x270] sm:$0xff]  ;;  %v197_v21 = vld [vmem:[#allocation8 + $0x260] sm:$0xff] }
  0x68   :  { %262 = vmatprep.subr.mxu0 %v125_v53  ;;  %3600 = vmatpush3.msra.mxu1 %v132_v54  ;;  %v5093_v22 = vld [vmem:[#allocation10 + $0x120] sm:$0xff]  ;;  %v196_v23 = vld [vmem:[#allocation8 + $0x258] sm:$0xff]  ;;  %v5096_v24 = vld [vmem:[#allocation10 + $0x110] sm:$0xff] }
  0x69   :  { %263 = vmatpush1.msra.mxu0 %v124_v55  ;;  %3601 = vmatprep.subr.mxu1 %v177_v56  ;;  %v194_v25 = vld [vmem:[#allocation8 + $0x248] sm:$0xff]  ;;  %v193_v27 = vld [vmem:[#allocation8 + $0x240] sm:$0xff]  ;;  %v5102_v28 = vld [vmem:[#allocation10 + $0xf8] sm:$0xff] }
  0x6a   :  { %264 = vmatprep.subr.mxu0 %v122_v57  ;;  %3602 = vmatpush3.msra.mxu1 %v129_v58  ;;  %v5099_v26 = vld [vmem:[#allocation10 + $0x108] sm:$0xff]  ;;  %v191_v29 = vld [vmem:[#allocation8 + $0x230] sm:$0xff]  ;;  %v5108_v32 = vld [vmem:[#allocation10 + $0xe0] sm:$0xff] }
  0x6b   :  { %265 = vmatpush1.msra.mxu0 %v121_v59  ;;  %3603 = vmatprep.subr.mxu1 %v174_v60  ;;  %v5105_v30 = vld [vmem:[#allocation10 + $0xf0] sm:$0xff]  ;;  %v190_v31 = vld [vmem:[#allocation8 + $0x228] sm:$0xff]  ;;  %v188_v33 = vld [vmem:[#allocation8 + $0x218] sm:$0xff] }
  0x6c   :  { %266 = vmatprep.subr.mxu0 %v215_v61  ;;  %3604 = vmatpush3.msra.mxu1 %v126_v62  ;;  %v5111_v34 = vld [vmem:[#allocation10 + $0xd8] sm:$0xff]  ;;  %v187_v35 = vld [vmem:[#allocation8 + $0x210] sm:$0xff]  ;;  %v5114_v36 = vld [vmem:[#allocation10 + $0xc8] sm:$0xff] }
  0x6d   :  { %267 = vmatpush2.msra.mxu0 %v214_v63  ;;  %3605 = vmatprep.subr.mxu1 %v171_v0  ;;  %v185_v37 = vld [vmem:[#allocation8 + $0x200] sm:$0xff]  ;;  %v184_v39 = vld [vmem:[#allocation8 + $0x1f8] sm:$0xff]  ;;  %v5120_v40 = vld [vmem:[#allocation10 + $0xb0] sm:$0xff] }
  0x6e   :  { %268 = vmatprep.subr.mxu0 %v212_v1  ;;  %3606 = vmatpush3.msra.mxu1 %v123_v2  ;;  %v5117_v38 = vld [vmem:[#allocation10 + $0xc0] sm:$0xff]  ;;  %v182_v41 = vld [vmem:[#allocation8 + $0x1e8] sm:$0xff]  ;;  %v5126_v44 = vld [vmem:[#allocation10 + $0x98] sm:$0xff]  ;;  %v6765_v2 = vmov 0.0  }
  0x6f   :  { %269 = vmatpush2.msra.mxu0 %v211_v3  ;;  %369 = vmatprep.mubr.f32.mxu1 %v5068_v4  ;;  %v5123_v42 = vld [vmem:[#allocation10 + $0xa8] sm:$0xff]  ;;  %v181_v43 = vld [vmem:[#allocation8 + $0x1e0] sm:$0xff]  ;;  %v179_v45 = vld [vmem:[#allocation8 + $0x1d0] sm:$0xff] }
  0x70   :  { %270 = vmatprep.subr.mxu0 %v209_v5  ;;  %444 = vmatprep.subr.mxu1 %v5070_v6  ;;  %v5129_v46 = vld [vmem:[#allocation10 + $0x90] sm:$0xff]  ;;  %v178_v47 = vld [vmem:[#allocation8 + $0x1c8] sm:$0xff]  ;;  %v5132_v48 = vld [vmem:[#allocation10 + $0x80] sm:$0xff] }
  0x71   :  { %271 = vmatpush2.msra.mxu0 %v208_v7  ;;  %370 = vmatmul.mubr.f32.vlgmr.msra.gmra.mxu1 %v5072_v8  ;;  %v176_v49 = vld [vmem:[#allocation8 + $0x1b8] sm:$0xff]  ;;  %v175_v51 = vld [vmem:[#allocation8 + $0x1b0] sm:$0xff]  ;;  %v5138_v52 = vld [vmem:[#allocation10 + $0x68] sm:$0xff] }
  0x72   :  { %272 = vmatprep.subr.mxu0 %v206_v9  ;;  %445 = vmatpush1.msra.mxu1 %v5075_v10  ;;  %v5135_v50 = vld [vmem:[#allocation10 + $0x78] sm:$0xff]  ;;  %v173_v53 = vld [vmem:[#allocation8 + $0x1a0] sm:$0xff]  ;;  %v170_v56 = vld [vmem:[#allocation8 + $0x188] sm:$0xff] }
  0x73   :  { %273 = vmatpush2.msra.mxu0 %v205_v11  ;;  %446 = vmatprep.subr.mxu1 %v5078_v12  ;;  %v172_v54 = vld [vmem:[#allocation8 + $0x198] sm:$0xff]  ;;  %v5142_v55 = vld [vmem:[#allocation10 + $0x60] sm:$0xff]  ;;  %v5145_v57 = vld [vmem:[#allocation10 + $0x50] sm:$0xff] }
  0x74   :  { %274 = vmatprep.subr.mxu0 %v203_v13  ;;  %447 = vmatpush1.msra.mxu1 %v5081_v14  ;;  %v169_v58 = vld [vmem:[#allocation8 + $0x180] sm:$0xff]  ;;  %v5148_v59 = vld [vmem:[#allocation10 + $0x48] sm:$0xff]  ;;  %v5151_v60 = vld [vmem:[#allocation10 + $0x38] sm:$0xff] }
  0x75   :  { %275 = vmatpush2.msra.mxu0 %v202_v15  ;;  %448 = vmatprep.subr.mxu1 %v5084_v16  ;;  %v5154_v61 = vld [vmem:[#allocation10 + $0x30] sm:$0xff]  ;;  %v5157_v62 = vld [vmem:[#allocation10 + $0x20] sm:$0xff]  ;;  %v5161_v63 = vld [vmem:[#allocation10 + $0x18] sm:$0xff] }
  0x76   :  { %276 = vmatprep.subr.mxu0 %v200_v17  ;;  %449 = vmatpush1.msra.mxu1 %v5087_v18  ;;  %6820 = vst [vmem:[#allocation23_spill] sm:$0xff] %v5157_v62  ;;  %6821 = vst [vmem:[#allocation24_spill] sm:$0xff] %v5161_v63  ;;  %v5163_v0 = vld [vmem:[#allocation10 + $0x178] sm:$0xff]  ;;  %v5166_v1 = vld [vmem:[#allocation10 + $0x8] sm:$0xff] }
  0x77   :  { %277 = vmatpush2.msra.mxu0 %v199_v19  ;;  %450 = vmatprep.subr.mxu1 %v5090_v20  ;;  %6822 = vst [vmem:[#allocation25_spill] sm:$0xff] %v5166_v1  ;;  %v5170_v3 = vld [vmem:[#allocation10] sm:$0xff]  ;;  %v5179_v5 = vld [vmem:[#allocation10 + $0x148] sm:$0xff]  ;;  %v5185_v7 = vld [vmem:[#allocation10 + $0x130] sm:$0xff] }
  0x78   :  { %278 = vmatprep.subr.mxu0 %v197_v21  ;;  %451 = vmatpush1.msra.mxu1 %v5093_v22  ;;  %6823 = vst [vmem:[#allocation26_spill] sm:$0xff] %v5170_v3  ;;  %v5197_v9 = vld [vmem:[#allocation10 + $0x100] sm:$0xff]  ;;  %v5203_v11 = vld [vmem:[#allocation10 + $0xe8] sm:$0xff]  ;;  %v5209_v13 = vld [vmem:[#allocation10 + $0xd0] sm:$0xff] }
  0x79   :  { %279 = vmatpush2.msra.mxu0 %v196_v23  ;;  %452 = vmatprep.subr.mxu1 %v5096_v24  ;;  %v5215_v15 = vld [vmem:[#allocation10 + $0xb8] sm:$0xff]  ;;  %v5221_v17 = vld [vmem:[#allocation10 + $0xa0] sm:$0xff]  ;;  %v5227_v19 = vld [vmem:[#allocation10 + $0x88] sm:$0xff] }
  0x7a   :  { %280 = vmatprep.subr.mxu0 %v194_v25  ;;  %453 = vmatpush1.msra.mxu1 %v5099_v26  ;;  %v5233_v21 = vld [vmem:[#allocation10 + $0x70] sm:$0xff]  ;;  %v5239_v23 = vld [vmem:[#allocation10 + $0x58] sm:$0xff]  ;;  %v5245_v25 = vld [vmem:[#allocation10 + $0x40] sm:$0xff] }
  0x7b   :  { %281 = vmatpush2.msra.mxu0 %v193_v27  ;;  %454 = vmatprep.subr.mxu1 %v5102_v28  ;;  %v5251_v27 = vld [vmem:[#allocation10 + $0x28] sm:$0xff] }
  0x7c   :  { %282 = vmatprep.subr.mxu0 %v191_v29  ;;  %455 = vmatpush1.msra.mxu1 %v5105_v30  ;;  %6824 = vst [vmem:[#allocation27_spill] sm:$0xff] %v5251_v27  ;;  %v5257_v29 = vld [vmem:[#allocation10 + $0x10] sm:$0xff] }
  0x7d   :  { %283 = vmatpush2.msra.mxu0 %v190_v31  ;;  %456 = vmatprep.subr.mxu1 %v5108_v32  ;;  %6825 = vst [vmem:[#allocation28_spill] sm:$0xff] %v5257_v29  ;;  %v219_v31 = vlaneseq }
  0x7e   :  { %284 = vmatprep.subr.mxu0 %v188_v33  ;;  %457 = vmatpush1.msra.mxu1 %v5111_v34 }
  0x7f   :  { %285 = vmatpush2.msra.mxu0 %v187_v35  ;;  %458 = vmatprep.subr.mxu1 %v5114_v36  ;;  %v220_v33 = vshrl.u32 %v219_v31, 7  ;;  %v426_v31 = vld [vmem:[%s6757_s4] sm:$0x7] }
  0x80   :  { %286 = vmatprep.subr.mxu0 %v185_v37  ;;  %459 = vmatpush1.msra.mxu1 %v5117_v38  ;;  %v217_v37 = vld [vmem:[%s6756_s3] sm:$0x7] }
  0x81   :  { %287 = vmatpush2.msra.mxu0 %v184_v39  ;;  %460 = vmatprep.subr.mxu1 %v5120_v40  ;;  %v5310_v35 = vsub.s32 2, %v220_v33 }
  0x82   :  { %288 = vmatprep.subr.mxu0 %v182_v41  ;;  %461 = vmatpush1.msra.mxu1 %v5123_v42 }
  0x83   :  { %289 = vmatpush2.msra.mxu0 %v181_v43  ;;  %462 = vmatprep.subr.mxu1 %v5126_v44  ;;  %6826 = vst [vmem:[#allocation29_spill] sm:$0xff] %v5310_v35  ;;  %v230_v41 = vrot.slane %v217_v37, %v5310_v35 }
  0x84   :  { %290 = vmatprep.subr.mxu0 %v179_v45  ;;  %463 = vmatpush1.msra.mxu1 %v5129_v46 }
  0x85   :  { %291 = vmatpush2.msra.mxu0 %v178_v47  ;;  %464 = vmatprep.subr.mxu1 %v5132_v48 }
  0x86   :  { %292 = vmatprep.subr.mxu0 %v176_v49  ;;  %465 = vmatpush1.msra.mxu1 %v5135_v50  ;;  %v5316_v49 = vsub.s32 0, %v220_v33 }
  0x87   :  { %293 = vmatpush2.msra.mxu0 %v175_v51  ;;  %466 = vmatprep.subr.mxu1 %v5138_v52  ;;  %v5318_v51 = vsub.s32 1, %v220_v33 }
  0x88   :  { %294 = vmatprep.subr.mxu0 %v173_v53  ;;  %298 = vmatprep.mubr.f32.mxu0 %v5068_v4  ;;  %v5173_v4 = vld [vmem:[#allocation10 + $0x160] sm:$0xff]  ;;  %6827 = vst [vmem:[#allocation30_spill] sm:$0xff] %v5316_v49  ;;  %v222_v53 = vrot.slane %v217_v37, %v5316_v49 }
  0x89   :  { %295 = vmatpush2.msra.mxu0 %v172_v54  ;;  %467 = vmatpush1.msra.mxu1 %v5142_v55  ;;  %6828 = vst [vmem:[#allocation31_spill] sm:$0xff] %v5318_v51  ;;  %v226_v54 = vrot.slane %v217_v37, %v5318_v51 }
  0x8a   :  { %296 = vmatprep.subr.mxu0 %v170_v56  ;;  %468 = vmatprep.subr.mxu1 %v5145_v57 }
  0x8b   :  { %297 = vmatpush2.msra.mxu0 %v169_v58  ;;  %469 = vmatpush1.msra.mxu1 %v5148_v59 }
  0x8c   :  { %299 = vmatmul.mubr.f32.vlgmr.msra.gmra.mxu0 %v5072_v8  ;;  %470 = vmatprep.subr.mxu1 %v5151_v60  ;;  %v5191_v8 = vld [vmem:[#allocation10 + $0x118] sm:$0xff] }
  0x8d   :  { %471 = vmatpush1.msra.mxu1 %v5154_v61  ;;  %508 = vmatprep.mubr.f32.mxu1 %v6765_v2 }
  0x8e   :  { %472 = vmatprep.subr.mxu1 %v5157_v62  ;;  %3916 = vmatprep.subr.mxu0 %v6765_v2 }
  0x8f   :  { %473 = vmatpush1.msra.mxu1 %v5161_v63  ;;  %3917 = vmatpush3.msra.mxu0 %v5163_v0 }
  0x90   :  { %474 = vmatprep.subr.mxu1 %v5166_v1  ;;  %3918 = vmatprep.subr.mxu0 %v6765_v2 }
  0x91   :  { %475 = vmatpush1.msra.mxu1 %v5170_v3  ;;  %3919 = vmatpush3.msra.mxu0 %v5173_v4 }
  0x92   :  { %509 = vmatmul.mubr.f32.vlgmr.msra.gmra.mxu1 %v6765_v2  ;;  %3920 = vmatprep.subr.mxu0 %v6765_v2 }
  0x93   :  { %3921 = vmatpush3.msra.mxu0 %v5179_v5  ;;  %3948 = vmatprep.mubr.msk.f32.mxu0 %vm4976_vm0, %v6765_v2 }
  0x94   :  { %3922 = vmatprep.subr.mxu0 %v6765_v2  ;;  %614 = vmatprep.subr.mxu1 %v5070_v6 }
  0x95   :  { %3923 = vmatpush3.msra.mxu0 %v5185_v7  ;;  %615 = vmatpush1.msra.mxu1 %v5075_v10 }
  0x96   :  { %3924 = vmatprep.subr.mxu0 %v6765_v2  ;;  %616 = vmatprep.subr.mxu1 %v5078_v12 }
  0x97   :  { %3925 = vmatpush3.msra.mxu0 %v5191_v8  ;;  %617 = vmatpush1.msra.mxu1 %v5081_v14 }
  0x98   :  { %3926 = vmatprep.subr.mxu0 %v6765_v2  ;;  %618 = vmatprep.subr.mxu1 %v5084_v16 }
  0x99   :  { %3927 = vmatpush3.msra.mxu0 %v5197_v9  ;;  %619 = vmatpush1.msra.mxu1 %v5087_v18 }
  0x9a   :  { %3928 = vmatprep.subr.mxu0 %v6765_v2  ;;  %620 = vmatprep.subr.mxu1 %v5090_v20 }
  0x9b   :  { %3929 = vmatpush3.msra.mxu0 %v5203_v11  ;;  %621 = vmatpush1.msra.mxu1 %v5093_v22 }
  0x9c   :  { %3930 = vmatprep.subr.mxu0 %v6765_v2  ;;  %622 = vmatprep.subr.mxu1 %v5096_v24 }
  0x9d   :  { %3931 = vmatpush3.msra.mxu0 %v5209_v13  ;;  %623 = vmatpush1.msra.mxu1 %v5099_v26 }
  0x9e   :  { %3932 = vmatprep.subr.mxu0 %v6765_v2  ;;  %624 = vmatprep.subr.mxu1 %v5102_v28 }
  0x9f   :  { %3933 = vmatpush3.msra.mxu0 %v5215_v15  ;;  %625 = vmatpush1.msra.mxu1 %v5105_v30 }
  0xa0   :  { %3934 = vmatprep.subr.mxu0 %v6765_v2  ;;  %626 = vmatprep.subr.mxu1 %v5108_v32 }
  0xa1   :  { %3935 = vmatpush3.msra.mxu0 %v5221_v17  ;;  %627 = vmatpush1.msra.mxu1 %v5111_v34 }
  0xa2   :  { %3936 = vmatprep.subr.mxu0 %v6765_v2  ;;  %628 = vmatprep.subr.mxu1 %v5114_v36 }
  0xa3   :  { %3937 = vmatpush3.msra.mxu0 %v5227_v19  ;;  %629 = vmatpush1.msra.mxu1 %v5117_v38 }
  0xa4   :  { %3938 = vmatprep.subr.mxu0 %v6765_v2  ;;  %630 = vmatprep.subr.mxu1 %v5120_v40 }
  0xa5   :  { %3939 = vmatpush3.msra.mxu0 %v5233_v21  ;;  %631 = vmatpush1.msra.mxu1 %v5123_v42 }
  0xa6   :  { %3940 = vmatprep.subr.mxu0 %v6765_v2  ;;  %632 = vmatprep.subr.mxu1 %v5126_v44 }
  0xa7   :  { %3941 = vmatpush3.msra.mxu0 %v5239_v23  ;;  %633 = vmatpush1.msra.mxu1 %v5129_v46 }
  0xa8   :  { %3942 = vmatprep.subr.mxu0 %v6765_v2  ;;  %634 = vmatprep.subr.mxu1 %v5132_v48 }
  0xa9   :  { %3943 = vmatpush3.msra.mxu0 %v5245_v25  ;;  %635 = vmatpush1.msra.mxu1 %v5135_v50 }
  0xaa   :  { %3944 = vmatprep.subr.mxu0 %v6765_v2  ;;  %636 = vmatprep.subr.mxu1 %v5138_v52 }
  0xab   :  { %3945 = vmatpush3.msra.mxu0 %v5251_v27  ;;  %637 = vmatpush1.msra.mxu1 %v5142_v55 }
  0xac   :  { %3946 = vmatprep.subr.mxu0 %v6765_v2  ;;  %638 = vmatprep.subr.mxu1 %v5145_v57 }
  0xad   :  { %3947 = vmatpush3.msra.mxu0 %v5257_v29  ;;  %639 = vmatpush1.msra.mxu1 %v5148_v59 }
  0xae   :  { %3949 = vmatmul.mubr.f32.vlgmr.msra.gmra.mxu0 %v6765_v2  ;;  %3951 = vmatprep.subr.mxu0 %v6765_v2 }
  0xaf   :  { %3952 = vmatpush3.msra.mxu0 %v5163_v0  ;;  %640 = vmatprep.subr.mxu1 %v5151_v60 }
  0xb0   :  { %3953 = vmatprep.subr.mxu0 %v6765_v2  ;;  %641 = vmatpush1.msra.mxu1 %v5154_v61 }
  0xb1   :  { %3954 = vmatpush3.msra.mxu0 %v5173_v4  ;;  %642 = vmatprep.subr.mxu1 %v5157_v62 }
  0xb2   :  { %3955 = vmatprep.subr.mxu0 %v6765_v2  ;;  %643 = vmatpush1.msra.mxu1 %v5161_v63 }
  0xb3   :  { %3956 = vmatpush3.msra.mxu0 %v5179_v5  ;;  %644 = vmatprep.subr.mxu1 %v5166_v1 }
  0xb4   :  { %3957 = vmatprep.subr.mxu0 %v6765_v2  ;;  %645 = vmatpush1.msra.mxu1 %v5170_v3 }
  0xb5   :  { %3958 = vmatpush3.msra.mxu0 %v5185_v7  ;;  %678 = vmatprep.mubr.f32.mxu1 %v6765_v2 }
  0xb6   :  { %3959 = vmatprep.subr.mxu0 %v6765_v2  ;;  %3983 = vmatprep.mubr.msk.f32.mxu0 %vm4976_vm0, %v6765_v2 }
  0xb7   :  { %3960 = vmatpush3.msra.mxu0 %v5191_v8  ;;  %784 = vmatprep.subr.mxu1 %v5070_v6 }
  0xb8   :  { %3961 = vmatprep.subr.mxu0 %v6765_v2 }
  0xb9   :  { %3962 = vmatpush3.msra.mxu0 %v5197_v9 }
  0xba   :  { %3963 = vmatprep.subr.mxu0 %v6765_v2 }
  0xbb   :  { %3964 = vmatpush3.msra.mxu0 %v5203_v11 }
  0xbc   :  { %3965 = vmatprep.subr.mxu0 %v6765_v2 }
  0xbd   :  { %3966 = vmatpush3.msra.mxu0 %v5209_v13 }
  0xbe   :  { %3967 = vmatprep.subr.mxu0 %v6765_v2 }
  0xbf   :  { %3968 = vmatpush3.msra.mxu0 %v5215_v15 }
  0xc0   :  { %3969 = vmatprep.subr.mxu0 %v6765_v2 }
  0xc1   :  { %3970 = vmatpush3.msra.mxu0 %v5221_v17 }
  0xc2   :  { %3971 = vmatprep.subr.mxu0 %v6765_v2 }
  0xc3   :  { %3972 = vmatpush3.msra.mxu0 %v5227_v19 }
  0xc4   :  { %3973 = vmatprep.subr.mxu0 %v6765_v2 }
  0xc5   :  { %3974 = vmatpush3.msra.mxu0 %v5233_v21 }
  0xc6   :  { %3975 = vmatprep.subr.mxu0 %v6765_v2 }
  0xc7   :  { %3976 = vmatpush3.msra.mxu0 %v5239_v23 }
  0xc8   :  { %3977 = vmatprep.subr.mxu0 %v6765_v2 }
  0xc9   :  { %3978 = vmatpush3.msra.mxu0 %v5245_v25 }
  0xca   :  { %3979 = vmatprep.subr.mxu0 %v6765_v2 }
  0xcb   :  { %3980 = vmatpush3.msra.mxu0 %v5251_v27 }
  0xcc   :  { %3981 = vmatprep.subr.mxu0 %v6765_v2 }
  0xcd   :  { %3982 = vmatpush3.msra.mxu0 %v5257_v29 }
  0xce   :  { %3986 = vmatprep.subr.mxu0 %v6765_v2 }
 0x131   :  { %v3607_v39 = vpop.f32.mrf.mxu1 }
 0x133   :  { %v3608_v43 = vpop.f32.mrf.mxu1 }
 0x134   :  { %v3609_v45 = vadd.f32 %v3608_v43, %v3607_v39  ;;  %v5326_v39 = vrot.slane %v426_v31, %v5316_v49 }
 0x136   :  { %v372_v47 = vadd.f32 %v3609_v45, %v230_v41  ;;  %6829 = vst [vmem:[#allocation32_spill] sm:$0xff] %v5326_v39  ;;  %v5330_v45 = vrot.slane %v426_v31, %v5318_v51 }
 0x138   :  { %377 = vst [vmem:[#allocation2 + $0x10] sm:$0xff] %v372_v47 }
 0x14c   :  { %v300_v56 = vpop.f32.mrf.mxu0 }
 0x14d   :  { %v301_v58 = vadd.f32 %v300_v56, %v222_v53 }
 0x14e   :  { %v302_v2 = vpop.f32.mrf.mxu0 }
 0x14f   :  { %375 = vst [vmem:[#allocation2] sm:$0xff] %v301_v58  ;;  %v303_v6 = vadd.f32 %v302_v2, %v226_v54 }
 0x151   :  { %376 = vst [vmem:[#allocation2 + $0x8] sm:$0xff] %v303_v6 }
 0x152   :  { %v510_v41 = vpop.f32.mrf.mxu1 }
 0x153   :  { %v511_v33 = vadd.f32 %v510_v41, %v5326_v39  ;;  %v5334_v41 = vrot.slane %v426_v31, %v5310_v35  ;;  %v6833_v31 = vld [vmem:[#allocation28_spill] sm:$0xff] }
 0x154   :  { %v512_v47 = vpop.f32.mrf.mxu1 }
 0x155   :  { %v513_v29 = vadd.f32 %v512_v47, %v5330_v45 }
 0x158   :  { %v427_v43 = vld [vmem:[#allocation2] ss:$8 sm:$0x7] }
 0x159   :  { %v585_v37 = vadd.f32 %v511_v33, %v427_v43  ;;  %v593_v56 = vrot.slane %v427_v43, 1  ;;  %v603_v1 = vrot.slane %v427_v43, 2 }
 0x15b   :  { %v3542_v53 = vmul.f32 -1.442695, %v585_v37  ;;  %v595_v58 = vadd.f32 %v593_v56, %v513_v29 }
 0x15d   :  { %4559 = vpow2.f32 %v3542_v53  ;;  %v3543_v2 = vmul.f32 -1.442695, %v595_v58 }
 0x15f   :  { %4561 = vpow2.f32 %v3543_v2 }
 0x16a   :  { %v4560_v54 = vpop.eup %4559 }
 0x16b   :  { %v589_v49 = vadd.f32 1.0, %v4560_v54 }
 0x16c   :  { %v4562_v51 = vpop.eup %4561 }
 0x16d   :  { %4563 = vrcp.f32 %v589_v49  ;;  %v599_v39 = vadd.f32 1.0, %v4562_v51  ;;  %v6832_v51 = vld [vmem:[#allocation26_spill] sm:$0xff] }
 0x16e   :  { %v581_v6 = vpop.f32.mrf.mxu0 }
 0x16f   :  { %v582_v33 = vadd.f32 %v581_v6, %v5334_v41  ;;  %4565 = vrcp.f32 %v599_v39  ;;  %v6834_v39 = vld [vmem:[#allocation22_spill] sm:$0xff] }
 0x170   :  { %v3950_v3 = vpop.f32.mrf.mxu0 }
 0x171   :  { %v6831_v3 = vld [vmem:[#allocation25_spill] sm:$0xff] }
 0x17a   :  { %v4564_v37 = vpop.eup %4563 }
 0x17b   :  { %v602_v53 = vmul.f32 %v4564_v37, %v582_v33  ;;  %v6835_v33 = vld [vmem:[#allocation32_spill] sm:$0xff] }
 0x17c   :  { %v4566_v29 = vpop.eup %4565 }
 0x17d   :  { %v605_v47 = vadd.f32 %v603_v1, %v602_v53  ;;  %v607_v56 = vsub.f32 1.0, %v4566_v29  ;;  %v609_v49 = vmul.f32 0.0, %v4566_v29  ;;  %v6830_v1 = vmov 0.0   ;;  %v613_v53 = vld [vmem:[#allocation2 + $0x1] ss:$8 sm:$0x7] }
 0x17f   :  { %4567 = vtanh.f32 %v605_v47 }
 0x18c   :  { %v4568_v58 = vpop.eup %4567 }
 0x18d   :  { %v608_v2 = vmul.f32 %v4568_v58, %v607_v56 }
 0x18f   :  { %v5337_v54 = vadd.f32 %v609_v49, %v608_v2  ;;  %v763_v49 = vrot.slane %v613_v53, 1 }
 0x191   :  { %611 = vst [vmem:[#allocation3] sm:$0x1] %v5337_v54  ;;  %679 = vmatmul.mubr.f32.vlgmr.msra.gmra.mxu1 %v5337_v54  ;;  %3984 = vmatmul.mubr.f32.vlgmr.msra.gmra.mxu0 %v5337_v54 }
 0x192   :  { %785 = vmatpush1.msra.mxu1 %v5075_v10  ;;  %3987 = vmatpush3.msra.mxu0 %v5163_v0 }
 0x193   :  { %786 = vmatprep.subr.mxu1 %v5078_v12  ;;  %3988 = vmatprep.subr.mxu0 %v6830_v1 }
 0x194   :  { %787 = vmatpush1.msra.mxu1 %v5081_v14  ;;  %3989 = vmatpush3.msra.mxu0 %v5173_v4 }
 0x195   :  { %788 = vmatprep.subr.mxu1 %v5084_v16  ;;  %3990 = vmatprep.subr.mxu0 %v6830_v1 }
 0x196   :  { %789 = vmatpush1.msra.mxu1 %v5087_v18  ;;  %3991 = vmatpush3.msra.mxu0 %v5179_v5 }
 0x197   :  { %790 = vmatprep.subr.mxu1 %v5090_v20  ;;  %3992 = vmatprep.subr.mxu0 %v6830_v1 }
 0x198   :  { %791 = vmatpush1.msra.mxu1 %v5093_v22  ;;  %3993 = vmatpush3.msra.mxu0 %v5185_v7 }
 0x199   :  { %792 = vmatprep.subr.mxu1 %v5096_v24  ;;  %3994 = vmatprep.subr.mxu0 %v6830_v1 }
 0x19a   :  { %793 = vmatpush1.msra.mxu1 %v5099_v26  ;;  %3995 = vmatpush3.msra.mxu0 %v5191_v8 }
 0x19b   :  { %794 = vmatprep.subr.mxu1 %v5102_v28  ;;  %3996 = vmatprep.subr.mxu0 %v6830_v1 }
 0x19c   :  { %795 = vmatpush1.msra.mxu1 %v5105_v30  ;;  %3997 = vmatpush3.msra.mxu0 %v5197_v9 }
 0x19d   :  { %796 = vmatprep.subr.mxu1 %v5108_v32  ;;  %3998 = vmatprep.subr.mxu0 %v6830_v1 }
 0x19e   :  { %797 = vmatpush1.msra.mxu1 %v5111_v34  ;;  %3999 = vmatpush3.msra.mxu0 %v5203_v11 }
 0x19f   :  { %798 = vmatprep.subr.mxu1 %v5114_v36  ;;  %4000 = vmatprep.subr.mxu0 %v6830_v1 }
 0x1a0   :  { %799 = vmatpush1.msra.mxu1 %v5117_v38  ;;  %4001 = vmatpush3.msra.mxu0 %v5209_v13 }
 0x1a1   :  { %800 = vmatprep.subr.mxu1 %v5120_v40  ;;  %4002 = vmatprep.subr.mxu0 %v6830_v1 }
 0x1a2   :  { %801 = vmatpush1.msra.mxu1 %v5123_v42  ;;  %4003 = vmatpush3.msra.mxu0 %v5215_v15 }
 0x1a3   :  { %802 = vmatprep.subr.mxu1 %v5126_v44  ;;  %4004 = vmatprep.subr.mxu0 %v6830_v1 }
 0x1a4   :  { %803 = vmatpush1.msra.mxu1 %v5129_v46  ;;  %4005 = vmatpush3.msra.mxu0 %v5221_v17 }
 0x1a5   :  { %804 = vmatprep.subr.mxu1 %v5132_v48  ;;  %4006 = vmatprep.subr.mxu0 %v6830_v1 }
 0x1a6   :  { %805 = vmatpush1.msra.mxu1 %v5135_v50  ;;  %4007 = vmatpush3.msra.mxu0 %v5227_v19 }
 0x1a7   :  { %806 = vmatprep.subr.mxu1 %v5138_v52  ;;  %4008 = vmatprep.subr.mxu0 %v6830_v1 }
 0x1a8   :  { %807 = vmatpush1.msra.mxu1 %v5142_v55  ;;  %4009 = vmatpush3.msra.mxu0 %v5233_v21 }
 0x1a9   :  { %808 = vmatprep.subr.mxu1 %v5145_v57  ;;  %4010 = vmatprep.subr.mxu0 %v6830_v1 }
 0x1aa   :  { %809 = vmatpush1.msra.mxu1 %v5148_v59  ;;  %4011 = vmatpush3.msra.mxu0 %v5239_v23 }
 0x1ab   :  { %810 = vmatprep.subr.mxu1 %v5151_v60  ;;  %4012 = vmatprep.subr.mxu0 %v6830_v1 }
 0x1ac   :  { %811 = vmatpush1.msra.mxu1 %v5154_v61  ;;  %4013 = vmatpush3.msra.mxu0 %v5245_v25 }
 0x1ad   :  { %812 = vmatprep.subr.mxu1 %v5157_v62  ;;  %4014 = vmatprep.subr.mxu0 %v6830_v1  ;;  %v773_v62 = vrot.slane %v613_v53, 2 }
 0x1ae   :  { %813 = vmatpush1.msra.mxu1 %v5161_v63  ;;  %4015 = vmatpush3.msra.mxu0 %v5251_v27 }
 0x1af   :  { %814 = vmatprep.subr.mxu1 %v6831_v3  ;;  %4016 = vmatprep.subr.mxu0 %v6830_v1 }
 0x1b0   :  { %815 = vmatpush1.msra.mxu1 %v6832_v51  ;;  %848 = vmatprep.mubr.f32.mxu1 %v6830_v1 }
 0x1b1   :  { %4017 = vmatpush3.msra.mxu0 %v6833_v31  ;;  %4018 = vmatprep.mubr.msk.f32.mxu0 %vm4976_vm0, %v6830_v1 }
 0x1b2   :  { %954 = vmatprep.subr.mxu1 %v6834_v39  ;;  %4021 = vmatprep.subr.mxu0 %v6830_v1 }
 0x251   :  { %v680_v43 = vpop.f32.mrf.mxu1  ;;  %v751_v6 = vpop.f32.mrf.mxu0 }
 0x252   :  { %v681_v37 = vadd.f32 %v680_v43, %v6835_v33  ;;  %v752_v63 = vadd.f32 %v751_v6, %v5334_v41 }
 0x253   :  { %v682_v47 = vpop.f32.mrf.mxu1  ;;  %v3985_v29 = vpop.f32.mrf.mxu0 }
 0x254   :  { %v755_v56 = vadd.f32 %v681_v37, %v613_v53  ;;  %v683_v2 = vadd.f32 %v682_v47, %v5330_v45  ;;  %v6843_v53 = vld [vmem:[#allocation32_spill] sm:$0xff] }
 0x256   :  { %v3544_v58 = vmul.f32 -1.442695, %v755_v56  ;;  %v765_v35 = vadd.f32 %v763_v49, %v683_v2  ;;  %v783_v49 = vld [vmem:[#allocation2 + $0x2] ss:$8 sm:$0x7] }
 0x258   :  { %4569 = vpow2.f32 %v3544_v58  ;;  %v3545_v31 = vmul.f32 -1.442695, %v765_v35 }
 0x25a   :  { %4571 = vpow2.f32 %v3545_v31 }
 0x265   :  { %v4570_v51 = vpop.eup %4569 }
 0x266   :  { %v759_v39 = vadd.f32 1.0, %v4570_v51  ;;  %v6841_v51 = vld [vmem:[#allocation28_spill] sm:$0xff] }
 0x267   :  { %v4572_v3 = vpop.eup %4571 }
 0x268   :  { %4573 = vrcp.f32 %v759_v39  ;;  %v769_v27 = vadd.f32 1.0, %v4572_v3  ;;  %v6840_v3 = vld [vmem:[#allocation26_spill] sm:$0xff] }
 0x269   :  { %v6842_v39 = vld [vmem:[#allocation22_spill] sm:$0xff] }
 0x26a   :  { %4575 = vrcp.f32 %v769_v27  ;;  %v6838_v27 = vld [vmem:[#allocation27_spill] sm:$0xff] }
 0x275   :  { %v4574_v43 = vpop.eup %4573 }
 0x276   :  { %v772_v33 = vmul.f32 %v4574_v43, %v752_v63  ;;  %v6837_v63 = vld [vmem:[#allocation24_spill] sm:$0xff] }
 0x277   :  { %v4576_v29 = vpop.eup %4575 }
 0x278   :  { %v775_v37 = vadd.f32 %v773_v62, %v772_v33  ;;  %v777_v47 = vsub.f32 1.0, %v4576_v29  ;;  %v779_v35 = vmul.f32 %v4576_v29, %v5337_v54  ;;  %v6836_v62 = vld [vmem:[#allocation23_spill] sm:$0xff]  ;;  %v6839_v54 = vld [vmem:[#allocation25_spill] sm:$0xff] }
 0x27a   :  { %4577 = vtanh.f32 %v775_v37 }
 0x287   :  { %v4578_v56 = vpop.eup %4577 }
 0x288   :  { %v778_v58 = vmul.f32 %v4578_v56, %v777_v47 }
 0x28a   :  { %v5413_v31 = vadd.f32 %v779_v35, %v778_v58  ;;  %v933_v58 = vrot.slane %v783_v49, 1 }
 0x28c   :  { %781 = vst [vmem:[#allocation3 + $0x1] sm:$0x1] %v5413_v31  ;;  %849 = vmatmul.mubr.f32.vlgmr.msra.gmra.mxu1 %v5413_v31  ;;  %4019 = vmatmul.mubr.f32.vlgmr.msra.gmra.mxu0 %v5413_v31 }
 0x28d   :  { %955 = vmatpush1.msra.mxu1 %v5075_v10  ;;  %4022 = vmatpush3.msra.mxu0 %v5163_v0 }
 0x28e   :  { %956 = vmatprep.subr.mxu1 %v5078_v12  ;;  %4023 = vmatprep.subr.mxu0 %v6830_v1 }
 0x28f   :  { %957 = vmatpush1.msra.mxu1 %v5081_v14  ;;  %4024 = vmatpush3.msra.mxu0 %v5173_v4 }
 0x290   :  { %958 = vmatprep.subr.mxu1 %v5084_v16  ;;  %4025 = vmatprep.subr.mxu0 %v6830_v1 }
 0x291   :  { %959 = vmatpush1.msra.mxu1 %v5087_v18  ;;  %4026 = vmatpush3.msra.mxu0 %v5179_v5 }
 0x292   :  { %960 = vmatprep.subr.mxu1 %v5090_v20  ;;  %4027 = vmatprep.subr.mxu0 %v6830_v1 }
 0x293   :  { %961 = vmatpush1.msra.mxu1 %v5093_v22  ;;  %4028 = vmatpush3.msra.mxu0 %v5185_v7 }
 0x294   :  { %962 = vmatprep.subr.mxu1 %v5096_v24  ;;  %4029 = vmatprep.subr.mxu0 %v6830_v1 }
 0x295   :  { %963 = vmatpush1.msra.mxu1 %v5099_v26  ;;  %4030 = vmatpush3.msra.mxu0 %v5191_v8 }
 0x296   :  { %964 = vmatprep.subr.mxu1 %v5102_v28  ;;  %4031 = vmatprep.subr.mxu0 %v6830_v1 }
 0x297   :  { %965 = vmatpush1.msra.mxu1 %v5105_v30  ;;  %4032 = vmatpush3.msra.mxu0 %v5197_v9 }
 0x298   :  { %966 = vmatprep.subr.mxu1 %v5108_v32  ;;  %4033 = vmatprep.subr.mxu0 %v6830_v1 }
 0x299   :  { %967 = vmatpush1.msra.mxu1 %v5111_v34  ;;  %4034 = vmatpush3.msra.mxu0 %v5203_v11 }
 0x29a   :  { %968 = vmatprep.subr.mxu1 %v5114_v36  ;;  %4035 = vmatprep.subr.mxu0 %v6830_v1 }
 0x29b   :  { %969 = vmatpush1.msra.mxu1 %v5117_v38  ;;  %4036 = vmatpush3.msra.mxu0 %v5209_v13 }
 0x29c   :  { %970 = vmatprep.subr.mxu1 %v5120_v40  ;;  %4037 = vmatprep.subr.mxu0 %v6830_v1 }
 0x29d   :  { %971 = vmatpush1.msra.mxu1 %v5123_v42  ;;  %4038 = vmatpush3.msra.mxu0 %v5215_v15 }
 0x29e   :  { %972 = vmatprep.subr.mxu1 %v5126_v44  ;;  %4039 = vmatprep.subr.mxu0 %v6830_v1 }
 0x29f   :  { %973 = vmatpush1.msra.mxu1 %v5129_v46  ;;  %4040 = vmatpush3.msra.mxu0 %v5221_v17 }
 0x2a0   :  { %974 = vmatprep.subr.mxu1 %v5132_v48  ;;  %4041 = vmatprep.subr.mxu0 %v6830_v1 }
 0x2a1   :  { %975 = vmatpush1.msra.mxu1 %v5135_v50  ;;  %4042 = vmatpush3.msra.mxu0 %v5227_v19 }
 0x2a2   :  { %976 = vmatprep.subr.mxu1 %v5138_v52  ;;  %4043 = vmatprep.subr.mxu0 %v6830_v1 }
 0x2a3   :  { %977 = vmatpush1.msra.mxu1 %v5142_v55  ;;  %4044 = vmatpush3.msra.mxu0 %v5233_v21 }
 0x2a4   :  { %978 = vmatprep.subr.mxu1 %v5145_v57  ;;  %4045 = vmatprep.subr.mxu0 %v6830_v1 }
 0x2a5   :  { %979 = vmatpush1.msra.mxu1 %v5148_v59  ;;  %4046 = vmatpush3.msra.mxu0 %v5239_v23 }
 0x2a6   :  { %980 = vmatprep.subr.mxu1 %v5151_v60  ;;  %4047 = vmatprep.subr.mxu0 %v6830_v1 }
 0x2a7   :  { %981 = vmatpush1.msra.mxu1 %v5154_v61  ;;  %4048 = vmatpush3.msra.mxu0 %v5245_v25 }
 0x2a8   :  { %982 = vmatprep.subr.mxu1 %v6836_v62  ;;  %4049 = vmatprep.subr.mxu0 %v6830_v1  ;;  %v943_v62 = vrot.slane %v783_v49, 2 }
 0x2a9   :  { %983 = vmatpush1.msra.mxu1 %v6837_v63  ;;  %4050 = vmatpush3.msra.mxu0 %v6838_v27 }
 0x2aa   :  { %984 = vmatprep.subr.mxu1 %v6839_v54  ;;  %4051 = vmatprep.subr.mxu0 %v6830_v1 }
 0x2ab   :  { %985 = vmatpush1.msra.mxu1 %v6840_v3  ;;  %1018 = vmatprep.mubr.f32.mxu1 %v6830_v1 }
 0x2ac   :  { %4052 = vmatpush3.msra.mxu0 %v6841_v51  ;;  %4053 = vmatprep.mubr.msk.f32.mxu0 %vm4976_vm0, %v6830_v1 }
 0x2ad   :  { %1124 = vmatprep.subr.mxu1 %v6842_v39  ;;  %4056 = vmatprep.subr.mxu0 %v6830_v1 }
 0x34c   :  { %v850_v6 = vpop.f32.mrf.mxu1  ;;  %v921_v33 = vpop.f32.mrf.mxu0 }
 0x34d   :  { %v851_v2 = vadd.f32 %v850_v6, %v6843_v53  ;;  %v922_v63 = vadd.f32 %v921_v33, %v5334_v41 }
 0x34e   :  { %v852_v43 = vpop.f32.mrf.mxu1  ;;  %v4020_v37 = vpop.f32.mrf.mxu0 }
 0x34f   :  { %v925_v29 = vadd.f32 %v851_v2, %v783_v49  ;;  %v853_v56 = vadd.f32 %v852_v43, %v5330_v45  ;;  %v5572_v49 = vld [vmem:[#allocation10 + $0x168] sm:$0xff] }
 0x351   :  { %v3546_v47 = vmul.f32 -1.442695, %v925_v29  ;;  %v935_v35 = vadd.f32 %v933_v58, %v853_v56  ;;  %v5576_v58 = vld [vmem:[#allocation10 + $0x158] sm:$0xff] }
 0x353   :  { %4579 = vpow2.f32 %v3546_v47  ;;  %v3547_v51 = vmul.f32 -1.442695, %v935_v35  ;;  %v5580_v35 = vld [vmem:[#allocation10 + $0x150] sm:$0xff] }
 0x355   :  { %4581 = vpow2.f32 %v3547_v51 }
 0x360   :  { %v4580_v3 = vpop.eup %4579 }
 0x361   :  { %v929_v39 = vadd.f32 1.0, %v4580_v3 }
 0x362   :  { %v4582_v54 = vpop.eup %4581 }
 0x363   :  { %4583 = vrcp.f32 %v929_v39  ;;  %v939_v27 = vadd.f32 1.0, %v4582_v54  ;;  %v5584_v39 = vld [vmem:[#allocation10 + $0x140] sm:$0xff] }
 0x365   :  { %4585 = vrcp.f32 %v939_v27 }
 0x370   :  { %v4584_v6 = vpop.eup %4583 }
 0x371   :  { %v942_v53 = vmul.f32 %v4584_v6, %v922_v63  ;;  %v5588_v6 = vld [vmem:[#allocation10 + $0x138] sm:$0xff] }
 0x372   :  { %v4586_v37 = vpop.eup %4585 }
 0x373   :  { %v945_v2 = vadd.f32 %v943_v62, %v942_v53  ;;  %v947_v43 = vsub.f32 1.0, %v4586_v37  ;;  %v949_v56 = vmul.f32 %v4586_v37, %v5413_v31  ;;  %v5604_v37 = vld [vmem:[#allocation10 + $0x108] sm:$0xff] }
 0x375   :  { %4587 = vtanh.f32 %v945_v2  ;;  %v5596_v2 = vld [vmem:[#allocation10 + $0x120] sm:$0xff] }
 0x382   :  { %v4588_v29 = vpop.eup %4587 }
 0x383   :  { %v948_v47 = vmul.f32 %v4588_v29, %v947_v43  ;;  %v5612_v43 = vld [vmem:[#allocation10 + $0xf0] sm:$0xff]  ;;  %v5620_v29 = vld [vmem:[#allocation10 + $0xd8] sm:$0xff] }
 0x385   :  { %v5489_v51 = vadd.f32 %v949_v56, %v948_v47  ;;  %v5628_v47 = vld [vmem:[#allocation10 + $0xc0] sm:$0xff]  ;;  %v5636_v56 = vld [vmem:[#allocation10 + $0xa8] sm:$0xff] }
 0x387   :  { %951 = vst [vmem:[#allocation3 + $0x2] sm:$0x1] %v5489_v51  ;;  %1019 = vmatmul.mubr.f32.vlgmr.msra.gmra.mxu1 %v5489_v51  ;;  %4054 = vmatmul.mubr.f32.vlgmr.msra.gmra.mxu0 %v5489_v51 }
 0x388   :  { %1125 = vmatpush1.msra.mxu1 %v5075_v10  ;;  %4057 = vmatpush3.msra.mxu0 %v5163_v0  ;;  %v6844_v10 = vld [vmem:[#allocation23_spill] sm:$0xff] }
 0x389   :  { %1126 = vmatprep.subr.mxu1 %v5078_v12  ;;  %4058 = vmatprep.subr.mxu0 %v6830_v1  ;;  %v6845_v12 = vld [vmem:[#allocation24_spill] sm:$0xff] }
 0x38a   :  { %1127 = vmatpush1.msra.mxu1 %v5081_v14  ;;  %4059 = vmatpush3.msra.mxu0 %v5173_v4  ;;  %v6846_v14 = vld [vmem:[#allocation27_spill] sm:$0xff] }
 0x38b   :  { %1128 = vmatprep.subr.mxu1 %v5084_v16  ;;  %4060 = vmatprep.subr.mxu0 %v6830_v1  ;;  %v6847_v16 = vld [vmem:[#allocation25_spill] sm:$0xff] }
 0x38c   :  { %1129 = vmatpush1.msra.mxu1 %v5087_v18  ;;  %4061 = vmatpush3.msra.mxu0 %v5179_v5  ;;  %v6848_v18 = vld [vmem:[#allocation26_spill] sm:$0xff] }
 0x38d   :  { %1130 = vmatprep.subr.mxu1 %v5090_v20  ;;  %4062 = vmatprep.subr.mxu0 %v6830_v1  ;;  %v6849_v20 = vld [vmem:[#allocation28_spill] sm:$0xff] }
 0x38e   :  { %1131 = vmatpush1.msra.mxu1 %v5093_v22  ;;  %4063 = vmatpush3.msra.mxu0 %v5185_v7  ;;  %v5559_v22 = vld [vmem:[#allocation10 + $0x170] sm:$0xff] }
 0x38f   :  { %1132 = vmatprep.subr.mxu1 %v5096_v24  ;;  %4064 = vmatprep.subr.mxu0 %v6830_v1 }
 0x390   :  { %1133 = vmatpush1.msra.mxu1 %v5099_v26  ;;  %4065 = vmatpush3.msra.mxu0 %v5191_v8 }
 0x391   :  { %1134 = vmatprep.subr.mxu1 %v5102_v28  ;;  %4066 = vmatprep.subr.mxu0 %v6830_v1  ;;  %v6850_v28 = vld [vmem:[#allocation32_spill] sm:$0xff] }
 0x392   :  { %1135 = vmatpush1.msra.mxu1 %v5105_v30  ;;  %4067 = vmatpush3.msra.mxu0 %v5197_v9 }
 0x393   :  { %1136 = vmatprep.subr.mxu1 %v5108_v32  ;;  %4068 = vmatprep.subr.mxu0 %v6830_v1  ;;  %v953_v32 = vld [vmem:[#allocation2 + $0x3] ss:$8 sm:$0x7] }
 0x394   :  { %1137 = vmatpush1.msra.mxu1 %v5111_v34  ;;  %4069 = vmatpush3.msra.mxu0 %v5203_v11  ;;  %v1113_v31 = vrot.slane %v953_v32, 2 }
 0x395   :  { %1138 = vmatprep.subr.mxu1 %v5114_v36  ;;  %4070 = vmatprep.subr.mxu0 %v6830_v1 }
 0x396   :  { %1139 = vmatpush1.msra.mxu1 %v5117_v38  ;;  %4071 = vmatpush3.msra.mxu0 %v5209_v13 }
 0x397   :  { %1140 = vmatprep.subr.mxu1 %v5120_v40  ;;  %4072 = vmatprep.subr.mxu0 %v6830_v1 }
 0x398   :  { %1141 = vmatpush1.msra.mxu1 %v5123_v42  ;;  %4073 = vmatpush3.msra.mxu0 %v5215_v15 }
 0x399   :  { %1142 = vmatprep.subr.mxu1 %v5126_v44  ;;  %4074 = vmatprep.subr.mxu0 %v6830_v1  ;;  %v1103_v44 = vrot.slane %v953_v32, 1 }
 0x39a   :  { %1143 = vmatpush1.msra.mxu1 %v5129_v46  ;;  %4075 = vmatpush3.msra.mxu0 %v5221_v17 }
 0x39b   :  { %1144 = vmatprep.subr.mxu1 %v5132_v48  ;;  %4076 = vmatprep.subr.mxu0 %v6830_v1 }
 0x39c   :  { %1145 = vmatpush1.msra.mxu1 %v5135_v50  ;;  %4077 = vmatpush3.msra.mxu0 %v5227_v19 }
 0x39d   :  { %1146 = vmatprep.subr.mxu1 %v5138_v52  ;;  %4078 = vmatprep.subr.mxu0 %v6830_v1 }
 0x39e   :  { %1147 = vmatpush1.msra.mxu1 %v5142_v55  ;;  %4079 = vmatpush3.msra.mxu0 %v5233_v21 }
 0x39f   :  { %1148 = vmatprep.subr.mxu1 %v5145_v57  ;;  %4080 = vmatprep.subr.mxu0 %v6830_v1 }
 0x3a0   :  { %1149 = vmatpush1.msra.mxu1 %v5148_v59  ;;  %4081 = vmatpush3.msra.mxu0 %v5239_v23 }
 0x3a1   :  { %1150 = vmatprep.subr.mxu1 %v5151_v60  ;;  %4082 = vmatprep.subr.mxu0 %v6830_v1 }
 0x3a2   :  { %1151 = vmatpush1.msra.mxu1 %v5154_v61  ;;  %4083 = vmatpush3.msra.mxu0 %v5245_v25 }
 0x3a3   :  { %1152 = vmatprep.subr.mxu1 %v6844_v10  ;;  %4084 = vmatprep.subr.mxu0 %v6830_v1  ;;  %v5652_v10 = vld [vmem:[#allocation10 + $0x78] sm:$0xff] }
 0x3a4   :  { %1153 = vmatpush1.msra.mxu1 %v6845_v12  ;;  %4085 = vmatpush3.msra.mxu0 %v6846_v14  ;;  %v5660_v12 = vld [vmem:[#allocation10 + $0x60] sm:$0xff] }
 0x3a5   :  { %1154 = vmatprep.subr.mxu1 %v6847_v16  ;;  %4086 = vmatprep.subr.mxu0 %v6830_v1  ;;  %v5668_v16 = vld [vmem:[#allocation10 + $0x48] sm:$0xff] }
 0x3a6   :  { %1155 = vmatpush1.msra.mxu1 %v6848_v18  ;;  %1188 = vmatprep.mubr.f32.mxu1 %v6830_v1  ;;  %v5676_v18 = vld [vmem:[#allocation10 + $0x30] sm:$0xff] }
 0x3a7   :  { %4087 = vmatpush3.msra.mxu0 %v6849_v20  ;;  %4088 = vmatprep.mubr.msk.f32.mxu0 %vm4976_vm0, %v6830_v1 }
 0x3a8   :  { %1294 = vmatprep.subr.mxu1 %v5559_v22  ;;  %4091 = vmatprep.subr.mxu0 %v6830_v1 }
 0x447   :  { %v1020_v24 = vpop.f32.mrf.mxu1  ;;  %v1091_v26 = vpop.f32.mrf.mxu0 }
 0x448   :  { %v1021_v30 = vadd.f32 %v1020_v24, %v6850_v28  ;;  %v1092_v59 = vadd.f32 %v1091_v26, %v5334_v41  ;;  %v5684_v24 = vld [vmem:[#allocation10 + $0x18] sm:$0xff]  ;;  %v5692_v26 = vld [vmem:[#allocation10] sm:$0xff] }
 0x449   :  { %v1022_v34 = vpop.f32.mrf.mxu1  ;;  %v4055_v36 = vpop.f32.mrf.mxu0  ;;  %6852 = vst [vmem:[#allocation23_spill] sm:$0xff] %v5684_v24  ;;  %6854 = vst [vmem:[#allocation27_spill] sm:$0xff] %v5692_v26 }
 0x44a   :  { %v1095_v38 = vadd.f32 %v1021_v30, %v953_v32  ;;  %v1023_v42 = vadd.f32 %v1022_v34, %v5330_v45  ;;  %v1123_v32 = vld [vmem:[#allocation2 + $0x4] ss:$8 sm:$0x7] }
 0x44c   :  { %v3548_v40 = vmul.f32 -1.442695, %v1095_v38  ;;  %v1105_v46 = vadd.f32 %v1103_v44, %v1023_v42 }
 0x44e   :  { %4589 = vpow2.f32 %v3548_v40  ;;  %v3549_v48 = vmul.f32 -1.442695, %v1105_v46 }
 0x450   :  { %4591 = vpow2.f32 %v3549_v48 }
 0x45b   :  { %v4590_v50 = vpop.eup %4589 }
 0x45c   :  { %v1099_v52 = vadd.f32 1.0, %v4590_v50 }
 0x45d   :  { %v4592_v55 = vpop.eup %4591 }
 0x45e   :  { %4593 = vrcp.f32 %v1099_v52  ;;  %v1109_v57 = vadd.f32 1.0, %v4592_v55 }
 0x460   :  { %4595 = vrcp.f32 %v1109_v57 }
 0x46b   :  { %v4594_v60 = vpop.eup %4593 }
 0x46c   :  { %v1112_v61 = vmul.f32 %v4594_v60, %v1092_v59 }
 0x46d   :  { %v4596_v63 = vpop.eup %4595 }
 0x46e   :  { %v1115_v62 = vadd.f32 %v1113_v31, %v1112_v61  ;;  %v1117_v27 = vsub.f32 1.0, %v4596_v63  ;;  %v1119_v33 = vmul.f32 %v4596_v63, %v5489_v51  ;;  %v5644_v51 = vld [vmem:[#allocation10 + $0x90] sm:$0xff]  ;;  %v1283_v61 = vrot.slane %v1123_v32, 2 }
 0x470   :  { %4597 = vtanh.f32 %v1115_v62 }
 0x47d   :  { %v4598_v54 = vpop.eup %4597 }
 0x47e   :  { %v1118_v3 = vmul.f32 %v4598_v54, %v1117_v27 }
 0x480   :  { %v5567_v53 = vadd.f32 %v1119_v33, %v1118_v3 }
 0x482   :  { %1121 = vst [vmem:[#allocation3 + $0x3] sm:$0x1] %v5567_v53  ;;  %1189 = vmatmul.mubr.f32.vlgmr.msra.gmra.mxu1 %v5567_v53  ;;  %4089 = vmatmul.mubr.f32.vlgmr.msra.gmra.mxu0 %v5567_v53 }
 0x483   :  { %1295 = vmatpush1.msra.mxu1 %v5572_v49  ;;  %4092 = vmatpush3.msra.mxu0 %v5163_v0  ;;  %v5592_v0 = vld [vmem:[#allocation10 + $0x128] sm:$0xff] }
 0x484   :  { %1296 = vmatprep.subr.mxu1 %v5576_v58  ;;  %4093 = vmatprep.subr.mxu0 %v6830_v1 }
 0x485   :  { %1297 = vmatpush1.msra.mxu1 %v5580_v35  ;;  %4094 = vmatpush3.msra.mxu0 %v5173_v4  ;;  %v5600_v4 = vld [vmem:[#allocation10 + $0x110] sm:$0xff] }
 0x486   :  { %1298 = vmatprep.subr.mxu1 %v5584_v39  ;;  %4095 = vmatprep.subr.mxu0 %v6830_v1 }
 0x487   :  { %1299 = vmatpush1.msra.mxu1 %v5588_v6  ;;  %4096 = vmatpush3.msra.mxu0 %v5179_v5  ;;  %v5608_v5 = vld [vmem:[#allocation10 + $0xf8] sm:$0xff] }
 0x488   :  { %1300 = vmatprep.subr.mxu1 %v5592_v0  ;;  %4097 = vmatprep.subr.mxu0 %v6830_v1 }
 0x489   :  { %1301 = vmatpush1.msra.mxu1 %v5596_v2  ;;  %4098 = vmatpush3.msra.mxu0 %v5185_v7  ;;  %v5616_v7 = vld [vmem:[#allocation10 + $0xe0] sm:$0xff] }
 0x48a   :  { %1302 = vmatprep.subr.mxu1 %v5600_v4  ;;  %4099 = vmatprep.subr.mxu0 %v6830_v1 }
 0x48b   :  { %1303 = vmatpush1.msra.mxu1 %v5604_v37  ;;  %4100 = vmatpush3.msra.mxu0 %v5191_v8  ;;  %v5624_v8 = vld [vmem:[#allocation10 + $0xc8] sm:$0xff] }
 0x48c   :  { %1304 = vmatprep.subr.mxu1 %v5608_v5  ;;  %4101 = vmatprep.subr.mxu0 %v6830_v1 }
 0x48d   :  { %1305 = vmatpush1.msra.mxu1 %v5612_v43  ;;  %4102 = vmatpush3.msra.mxu0 %v5197_v9  ;;  %v5632_v9 = vld [vmem:[#allocation10 + $0xb0] sm:$0xff] }
 0x48e   :  { %1306 = vmatprep.subr.mxu1 %v5616_v7  ;;  %4103 = vmatprep.subr.mxu0 %v6830_v1 }
 0x48f   :  { %1307 = vmatpush1.msra.mxu1 %v5620_v29  ;;  %4104 = vmatpush3.msra.mxu0 %v5203_v11  ;;  %v5640_v11 = vld [vmem:[#allocation10 + $0x98] sm:$0xff] }
 0x490   :  { %1308 = vmatprep.subr.mxu1 %v5624_v8  ;;  %4105 = vmatprep.subr.mxu0 %v6830_v1 }
 0x491   :  { %1309 = vmatpush1.msra.mxu1 %v5628_v47  ;;  %4106 = vmatpush3.msra.mxu0 %v5209_v13  ;;  %v5648_v13 = vld [vmem:[#allocation10 + $0x80] sm:$0xff] }
 0x492   :  { %1310 = vmatprep.subr.mxu1 %v5632_v9  ;;  %4107 = vmatprep.subr.mxu0 %v6830_v1 }
 0x493   :  { %1311 = vmatpush1.msra.mxu1 %v5636_v56  ;;  %4108 = vmatpush3.msra.mxu0 %v5215_v15  ;;  %v5656_v15 = vld [vmem:[#allocation10 + $0x68] sm:$0xff] }
 0x494   :  { %1312 = vmatprep.subr.mxu1 %v5640_v11  ;;  %4109 = vmatprep.subr.mxu0 %v6830_v1 }
 0x495   :  { %1313 = vmatpush1.msra.mxu1 %v5644_v51  ;;  %4110 = vmatpush3.msra.mxu0 %v5221_v17  ;;  %v5664_v17 = vld [vmem:[#allocation10 + $0x50] sm:$0xff] }
 0x496   :  { %1314 = vmatprep.subr.mxu1 %v5648_v13  ;;  %4111 = vmatprep.subr.mxu0 %v6830_v1 }
 0x497   :  { %1315 = vmatpush1.msra.mxu1 %v5652_v10  ;;  %4112 = vmatpush3.msra.mxu0 %v5227_v19  ;;  %v5672_v19 = vld [vmem:[#allocation10 + $0x38] sm:$0xff] }
 0x498   :  { %1316 = vmatprep.subr.mxu1 %v5656_v15  ;;  %4113 = vmatprep.subr.mxu0 %v6830_v1 }
 0x499   :  { %1317 = vmatpush1.msra.mxu1 %v5660_v12  ;;  %4114 = vmatpush3.msra.mxu0 %v5233_v21  ;;  %v5680_v21 = vld [vmem:[#allocation10 + $0x20] sm:$0xff] }
 0x49a   :  { %1318 = vmatprep.subr.mxu1 %v5664_v17  ;;  %4115 = vmatprep.subr.mxu0 %v6830_v1  ;;  %6851 = vst [vmem:[#allocation22_spill] sm:$0xff] %v5680_v21 }
 0x49b   :  { %1319 = vmatpush1.msra.mxu1 %v5668_v16  ;;  %4116 = vmatpush3.msra.mxu0 %v5239_v23  ;;  %v5688_v23 = vld [vmem:[#allocation10 + $0x8] sm:$0xff] }
 0x49c   :  { %1320 = vmatprep.subr.mxu1 %v5672_v19  ;;  %4117 = vmatprep.subr.mxu0 %v6830_v1  ;;  %6853 = vst [vmem:[#allocation24_spill] sm:$0xff] %v5688_v23 }
 0x49d   :  { %1321 = vmatpush1.msra.mxu1 %v5676_v18  ;;  %4118 = vmatpush3.msra.mxu0 %v5245_v25 }
 0x49e   :  { %1322 = vmatprep.subr.mxu1 %v5680_v21  ;;  %4119 = vmatprep.subr.mxu0 %v6830_v1 }
 0x49f   :  { %1323 = vmatpush1.msra.mxu1 %v5684_v24  ;;  %4120 = vmatpush3.msra.mxu0 %v6846_v14 }
 0x4a0   :  { %1324 = vmatprep.subr.mxu1 %v5688_v23  ;;  %4121 = vmatprep.subr.mxu0 %v6830_v1 }
 0x4a1   :  { %1325 = vmatpush1.msra.mxu1 %v5692_v26  ;;  %1358 = vmatprep.mubr.f32.mxu1 %v6830_v1 }
 0x4a2   :  { %4122 = vmatpush3.msra.mxu0 %v6849_v20  ;;  %4123 = vmatprep.mubr.msk.f32.mxu0 %vm4976_vm0, %v6830_v1  ;;  %v1273_v20 = vrot.slane %v1123_v32, 1 }
 0x4a3   :  { %1464 = vmatprep.subr.mxu1 %v5559_v22  ;;  %4126 = vmatprep.subr.mxu0 %v6830_v1 }
 0x542   :  { %v1190_v25 = vpop.f32.mrf.mxu1  ;;  %v1261_v14 = vpop.f32.mrf.mxu0 }
 0x543   :  { %v1191_v30 = vadd.f32 %v1190_v25, %v6850_v28  ;;  %v1262_v57 = vadd.f32 %v1261_v14, %v5334_v41  ;;  %v5711_v25 = vld [vmem:[#allocation10 + $0x178] sm:$0xff]  ;;  %v5723_v14 = vld [vmem:[#allocation10 + $0x148] sm:$0xff] }
 0x544   :  { %v1192_v34 = vpop.f32.mrf.mxu1  ;;  %v4090_v36 = vpop.f32.mrf.mxu0 }
 0x545   :  { %v1265_v38 = vadd.f32 %v1191_v30, %v1123_v32  ;;  %v1193_v42 = vadd.f32 %v1192_v34, %v5330_v45  ;;  %v5729_v30 = vld [vmem:[#allocation10 + $0x130] sm:$0xff]  ;;  %v5735_v32 = vld [vmem:[#allocation10 + $0x118] sm:$0xff]  ;;  %v5741_v34 = vld [vmem:[#allocation10 + $0x100] sm:$0xff] }
 0x546   :  { %v5747_v36 = vld [vmem:[#allocation10 + $0xe8] sm:$0xff] }
 0x547   :  { %v3550_v40 = vmul.f32 -1.442695, %v1265_v38  ;;  %v1275_v44 = vadd.f32 %v1273_v20, %v1193_v42  ;;  %v5753_v38 = vld [vmem:[#allocation10 + $0xd0] sm:$0xff]  ;;  %v5765_v42 = vld [vmem:[#allocation10 + $0xa0] sm:$0xff]  ;;  %v5771_v20 = vld [vmem:[#allocation10 + $0x88] sm:$0xff] }
 0x549   :  { %4599 = vpow2.f32 %v3550_v40  ;;  %v3551_v46 = vmul.f32 -1.442695, %v1275_v44  ;;  %v5759_v40 = vld [vmem:[#allocation10 + $0xb8] sm:$0xff]  ;;  %v5777_v44 = vld [vmem:[#allocation10 + $0x70] sm:$0xff] }
 0x54b   :  { %4601 = vpow2.f32 %v3551_v46  ;;  %v5783_v46 = vld [vmem:[#allocation10 + $0x58] sm:$0xff] }
 0x556   :  { %v4600_v48 = vpop.eup %4599 }
 0x557   :  { %v1269_v50 = vadd.f32 1.0, %v4600_v48  ;;  %v5789_v48 = vld [vmem:[#allocation10 + $0x40] sm:$0xff] }
 0x558   :  { %v4602_v52 = vpop.eup %4601 }
 0x559   :  { %4603 = vrcp.f32 %v1269_v50  ;;  %v1279_v55 = vadd.f32 1.0, %v4602_v52  ;;  %v5795_v50 = vld [vmem:[#allocation10 + $0x28] sm:$0xff]  ;;  %v5802_v52 = vld [vmem:[#allocation10 + $0x10] sm:$0xff] }
 0x55a   :  { %6855 = vst [vmem:[#allocation25_spill] sm:$0xff] %v5795_v50  ;;  %6856 = vst [vmem:[#allocation26_spill] sm:$0xff] %v5802_v52 }
 0x55b   :  { %4605 = vrcp.f32 %v1279_v55 }
 0x566   :  { %v4604_v59 = vpop.eup %4603 }
 0x567   :  { %v1282_v60 = vmul.f32 %v4604_v59, %v1262_v57 }
 0x568   :  { %v4606_v62 = vpop.eup %4605 }
 0x569   :  { %v1285_v31 = vadd.f32 %v1283_v61, %v1282_v60  ;;  %v1287_v63 = vsub.f32 1.0, %v4606_v62  ;;  %v1289_v3 = vmul.f32 %v4606_v62, %v5567_v53  ;;  %v5717_v53 = vld [vmem:[#allocation10 + $0x160] sm:$0xff]  ;;  %v1293_v60 = vld [vmem:[#allocation2 + $0x5] ss:$8 sm:$0x7] }
 0x56b   :  { %4607 = vtanh.f32 %v1285_v31 }
 0x578   :  { %v4608_v27 = vpop.eup %4607 }
 0x579   :  { %v1288_v54 = vmul.f32 %v4608_v27, %v1287_v63 }
 0x57b   :  { %v5705_v33 = vadd.f32 %v1289_v3, %v1288_v54  ;;  %v1443_v54 = vrot.slane %v1293_v60, 1 }
 0x57d   :  { %1291 = vst [vmem:[#allocation3 + $0x4] sm:$0x1] %v5705_v33  ;;  %1359 = vmatmul.mubr.f32.vlgmr.msra.gmra.mxu1 %v5705_v33  ;;  %4124 = vmatmul.mubr.f32.vlgmr.msra.gmra.mxu0 %v5705_v33 }
 0x57e   :  { %1465 = vmatpush1.msra.mxu1 %v5572_v49  ;;  %4127 = vmatpush3.msra.mxu0 %v5711_v25 }
 0x57f   :  { %1466 = vmatprep.subr.mxu1 %v5576_v58  ;;  %4128 = vmatprep.subr.mxu0 %v6830_v1 }
 0x580   :  { %1467 = vmatpush1.msra.mxu1 %v5580_v35  ;;  %4129 = vmatpush3.msra.mxu0 %v5717_v53 }
 0x581   :  { %1468 = vmatprep.subr.mxu1 %v5584_v39  ;;  %4130 = vmatprep.subr.mxu0 %v6830_v1 }
 0x582   :  { %1469 = vmatpush1.msra.mxu1 %v5588_v6  ;;  %4131 = vmatpush3.msra.mxu0 %v5723_v14 }
 0x583   :  { %1470 = vmatprep.subr.mxu1 %v5592_v0  ;;  %4132 = vmatprep.subr.mxu0 %v6830_v1 }
 0x584   :  { %1471 = vmatpush1.msra.mxu1 %v5596_v2  ;;  %4133 = vmatpush3.msra.mxu0 %v5729_v30 }
 0x585   :  { %1472 = vmatprep.subr.mxu1 %v5600_v4  ;;  %4134 = vmatprep.subr.mxu0 %v6830_v1 }
 0x586   :  { %1473 = vmatpush1.msra.mxu1 %v5604_v37  ;;  %4135 = vmatpush3.msra.mxu0 %v5735_v32 }
 0x587   :  { %1474 = vmatprep.subr.mxu1 %v5608_v5  ;;  %4136 = vmatprep.subr.mxu0 %v6830_v1 }
 0x588   :  { %1475 = vmatpush1.msra.mxu1 %v5612_v43  ;;  %4137 = vmatpush3.msra.mxu0 %v5741_v34 }
 0x589   :  { %1476 = vmatprep.subr.mxu1 %v5616_v7  ;;  %4138 = vmatprep.subr.mxu0 %v6830_v1 }
 0x58a   :  { %1477 = vmatpush1.msra.mxu1 %v5620_v29  ;;  %4139 = vmatpush3.msra.mxu0 %v5747_v36 }
 0x58b   :  { %1478 = vmatprep.subr.mxu1 %v5624_v8  ;;  %4140 = vmatprep.subr.mxu0 %v6830_v1 }
 0x58c   :  { %1479 = vmatpush1.msra.mxu1 %v5628_v47  ;;  %4141 = vmatpush3.msra.mxu0 %v5753_v38 }
 0x58d   :  { %1480 = vmatprep.subr.mxu1 %v5632_v9  ;;  %4142 = vmatprep.subr.mxu0 %v6830_v1 }
 0x58e   :  { %1481 = vmatpush1.msra.mxu1 %v5636_v56  ;;  %4143 = vmatpush3.msra.mxu0 %v5759_v40 }
 0x58f   :  { %1482 = vmatprep.subr.mxu1 %v5640_v11  ;;  %4144 = vmatprep.subr.mxu0 %v6830_v1 }
 0x590   :  { %1483 = vmatpush1.msra.mxu1 %v5644_v51  ;;  %4145 = vmatpush3.msra.mxu0 %v5765_v42 }
 0x591   :  { %1484 = vmatprep.subr.mxu1 %v5648_v13  ;;  %4146 = vmatprep.subr.mxu0 %v6830_v1 }
 0x592   :  { %1485 = vmatpush1.msra.mxu1 %v5652_v10  ;;  %4147 = vmatpush3.msra.mxu0 %v5771_v20 }
 0x593   :  { %1486 = vmatprep.subr.mxu1 %v5656_v15  ;;  %4148 = vmatprep.subr.mxu0 %v6830_v1 }
 0x594   :  { %1487 = vmatpush1.msra.mxu1 %v5660_v12  ;;  %4149 = vmatpush3.msra.mxu0 %v5777_v44 }
 0x595   :  { %1488 = vmatprep.subr.mxu1 %v5664_v17  ;;  %4150 = vmatprep.subr.mxu0 %v6830_v1 }
 0x596   :  { %1489 = vmatpush1.msra.mxu1 %v5668_v16  ;;  %4151 = vmatpush3.msra.mxu0 %v5783_v46 }
 0x597   :  { %1490 = vmatprep.subr.mxu1 %v5672_v19  ;;  %4152 = vmatprep.subr.mxu0 %v6830_v1 }
 0x598   :  { %1491 = vmatpush1.msra.mxu1 %v5676_v18  ;;  %4153 = vmatpush3.msra.mxu0 %v5789_v48 }
 0x599   :  { %1492 = vmatprep.subr.mxu1 %v5680_v21  ;;  %4154 = vmatprep.subr.mxu0 %v6830_v1  ;;  %v1453_v21 = vrot.slane %v1293_v60, 2 }
 0x59a   :  { %1493 = vmatpush1.msra.mxu1 %v5684_v24  ;;  %4155 = vmatpush3.msra.mxu0 %v5795_v50 }
 0x59b   :  { %1494 = vmatprep.subr.mxu1 %v5688_v23  ;;  %4156 = vmatprep.subr.mxu0 %v6830_v1 }
 0x59c   :  { %1495 = vmatpush1.msra.mxu1 %v5692_v26  ;;  %1528 = vmatprep.mubr.f32.mxu1 %v6830_v1 }
 0x59d   :  { %4157 = vmatpush3.msra.mxu0 %v5802_v52  ;;  %4158 = vmatprep.mubr.msk.f32.mxu0 %vm4976_vm0, %v6830_v1 }
 0x59e   :  { %1634 = vmatprep.subr.mxu1 %v5559_v22  ;;  %4161 = vmatprep.subr.mxu0 %v6830_v1 }
 0x63d   :  { %v1360_v55 = vpop.f32.mrf.mxu1  ;;  %v1431_v57 = vpop.f32.mrf.mxu0 }
 0x63e   :  { %v1361_v59 = vadd.f32 %v1360_v55, %v6850_v28  ;;  %v1432_v24 = vadd.f32 %v1431_v57, %v5334_v41  ;;  %v1834_v57 = vld [vmem:[#allocation11 + $0xf8] sm:$0xff] }
 0x63f   :  { %v1362_v61 = vpop.f32.mrf.mxu1  ;;  %v4125_v31 = vpop.f32.mrf.mxu0 }
 0x640   :  { %v1435_v62 = vadd.f32 %v1361_v59, %v1293_v60  ;;  %v1363_v27 = vadd.f32 %v1362_v61, %v5330_v45  ;;  %v1838_v60 = vld [vmem:[#allocation11 + $0x118] sm:$0xff] }
 0x642   :  { %v3552_v63 = vmul.f32 -1.442695, %v1435_v62  ;;  %v1445_v3 = vadd.f32 %v1443_v54, %v1363_v27  ;;  %v1833_v54 = vld [vmem:[#allocation11 + $0xf0] sm:$0xff] }
 0x644   :  { %4609 = vpow2.f32 %v3552_v63  ;;  %v3553_v52 = vmul.f32 -1.442695, %v1445_v3  ;;  %v1831_v3 = vld [vmem:[#allocation11 + $0xe0] sm:$0xff] }
 0x646   :  { %4611 = vpow2.f32 %v3553_v52 }
 0x651   :  { %v4610_v26 = vpop.eup %4609 }
 0x652   :  { %v1439_v22 = vadd.f32 1.0, %v4610_v26 }
 0x653   :  { %v4612_v23 = vpop.eup %4611 }
 0x654   :  { %4613 = vrcp.f32 %v1439_v22  ;;  %v1449_v50 = vadd.f32 1.0, %v4612_v23  ;;  %v1835_v22 = vld [vmem:[#allocation11 + $0x100] sm:$0xff] }
 0x656   :  { %4615 = vrcp.f32 %v1449_v50  ;;  %v1836_v50 = vld [vmem:[#allocation11 + $0x108] sm:$0xff] }
 0x661   :  { %v4614_v55 = vpop.eup %4613 }
 0x662   :  { %v1452_v28 = vmul.f32 %v4614_v55, %v1432_v24  ;;  %v1830_v55 = vld [vmem:[#allocation11 + $0xd8] sm:$0xff] }
 0x663   :  { %v4616_v31 = vpop.eup %4615 }
 0x664   :  { %v1455_v59 = vadd.f32 %v1453_v21, %v1452_v28  ;;  %v1457_v61 = vsub.f32 1.0, %v4616_v31  ;;  %v1459_v27 = vmul.f32 %v4616_v31, %v5705_v33  ;;  %v6857_v28 = vld [vmem:[#allocation22_spill] sm:$0xff] }
 0x665   :  { %v1832_v31 = vld [vmem:[#allocation11 + $0xe8] sm:$0xff] }
 0x666   :  { %4617 = vtanh.f32 %v1455_v59  ;;  %v1828_v59 = vld [vmem:[#allocation11 + $0xc8] sm:$0xff] }
 0x673   :  { %v4618_v62 = vpop.eup %4617 }
 0x674   :  { %v1458_v63 = vmul.f32 %v4618_v62, %v1457_v61  ;;  %v1827_v61 = vld [vmem:[#allocation11 + $0xc0] sm:$0xff]  ;;  %v1825_v62 = vld [vmem:[#allocation11 + $0xb0] sm:$0xff] }
 0x676   :  { %v5813_v52 = vadd.f32 %v1459_v27, %v1458_v63  ;;  %v1829_v63 = vld [vmem:[#allocation11 + $0xd0] sm:$0xff]  ;;  %v1824_v27 = vld [vmem:[#allocation11 + $0xa8] sm:$0xff] }
 0x678   :  { %1461 = vst [vmem:[#allocation3 + $0x5] sm:$0x1] %v5813_v52  ;;  %1529 = vmatmul.mubr.f32.vlgmr.msra.gmra.mxu1 %v5813_v52  ;;  %4159 = vmatmul.mubr.f32.vlgmr.msra.gmra.mxu0 %v5813_v52 }
 0x679   :  { %1635 = vmatpush1.msra.mxu1 %v5572_v49  ;;  %4162 = vmatpush3.msra.mxu0 %v5711_v25  ;;  %v6858_v49 = vld [vmem:[#allocation23_spill] sm:$0xff] }
 0x67a   :  { %1636 = vmatprep.subr.mxu1 %v5576_v58  ;;  %4163 = vmatprep.subr.mxu0 %v6830_v1  ;;  %v6859_v58 = vld [vmem:[#allocation25_spill] sm:$0xff] }
 0x67b   :  { %1637 = vmatpush1.msra.mxu1 %v5580_v35  ;;  %4164 = vmatpush3.msra.mxu0 %v5717_v53  ;;  %v6860_v35 = vld [vmem:[#allocation24_spill] sm:$0xff]  ;;  %v1849_v53 = vld [vmem:[#allocation11 + $0x170] sm:$0xff] }
 0x67c   :  { %1638 = vmatprep.subr.mxu1 %v5584_v39  ;;  %4165 = vmatprep.subr.mxu0 %v6830_v1  ;;  %v6861_v39 = vld [vmem:[#allocation27_spill] sm:$0xff] }
 0x67d   :  { %1639 = vmatpush1.msra.mxu1 %v5588_v6  ;;  %4166 = vmatpush3.msra.mxu0 %v5723_v14  ;;  %v6862_v6 = vld [vmem:[#allocation26_spill] sm:$0xff] }
 0x67e   :  { %1640 = vmatprep.subr.mxu1 %v5592_v0  ;;  %4167 = vmatprep.subr.mxu0 %v6830_v1  ;;  %v1848_v14 = vld [vmem:[#allocation11 + $0x168] sm:$0xff] }
 0x67f   :  { %1641 = vmatpush1.msra.mxu1 %v5596_v2  ;;  %4168 = vmatpush3.msra.mxu0 %v5729_v30  ;;  %v1846_v30 = vld [vmem:[#allocation11 + $0x158] sm:$0xff] }
 0x680   :  { %1642 = vmatprep.subr.mxu1 %v5600_v4  ;;  %4169 = vmatprep.subr.mxu0 %v6830_v1  ;;  %v6863_v4 = vld [vmem:[#allocation32_spill] sm:$0xff] }
 0x681   :  { %1643 = vmatpush1.msra.mxu1 %v5604_v37  ;;  %4170 = vmatpush3.msra.mxu0 %v5735_v32  ;;  %v1850_v32 = vld [vmem:[#allocation11 + $0x178] sm:$0xff] }
 0x682   :  { %1644 = vmatprep.subr.mxu1 %v5608_v5  ;;  %4171 = vmatprep.subr.mxu0 %v6830_v1  ;;  %v1463_v5 = vld [vmem:[#allocation2 + $0x6] ss:$8 sm:$0x7] }
 0x683   :  { %1645 = vmatpush1.msra.mxu1 %v5612_v43  ;;  %4172 = vmatpush3.msra.mxu0 %v5741_v34  ;;  %v1845_v34 = vld [vmem:[#allocation11 + $0x150] sm:$0xff] }
 0x684   :  { %1646 = vmatprep.subr.mxu1 %v5616_v7  ;;  %4173 = vmatprep.subr.mxu0 %v6830_v1 }
 0x685   :  { %1647 = vmatpush1.msra.mxu1 %v5620_v29  ;;  %4174 = vmatpush3.msra.mxu0 %v5747_v36  ;;  %v1843_v36 = vld [vmem:[#allocation11 + $0x140] sm:$0xff] }
 0x686   :  { %1648 = vmatprep.subr.mxu1 %v5624_v8  ;;  %4175 = vmatprep.subr.mxu0 %v6830_v1 }
 0x687   :  { %1649 = vmatpush1.msra.mxu1 %v5628_v47  ;;  %4176 = vmatpush3.msra.mxu0 %v5753_v38  ;;  %v1847_v38 = vld [vmem:[#allocation11 + $0x160] sm:$0xff] }
 0x688   :  { %1650 = vmatprep.subr.mxu1 %v5632_v9  ;;  %4177 = vmatprep.subr.mxu0 %v6830_v1  ;;  %v1613_v9 = vrot.slane %v1463_v5, 1 }
 0x689   :  { %1651 = vmatpush1.msra.mxu1 %v5636_v56  ;;  %4178 = vmatpush3.msra.mxu0 %v5759_v40  ;;  %v1842_v40 = vld [vmem:[#allocation11 + $0x138] sm:$0xff] }
 0x68a   :  { %1652 = vmatprep.subr.mxu1 %v5640_v11  ;;  %4179 = vmatprep.subr.mxu0 %v6830_v1 }
 0x68b   :  { %1653 = vmatpush1.msra.mxu1 %v5644_v51  ;;  %4180 = vmatpush3.msra.mxu0 %v5765_v42  ;;  %v1840_v42 = vld [vmem:[#allocation11 + $0x128] sm:$0xff] }
 0x68c   :  { %1654 = vmatprep.subr.mxu1 %v5648_v13  ;;  %4181 = vmatprep.subr.mxu0 %v6830_v1 }
 0x68d   :  { %1655 = vmatpush1.msra.mxu1 %v5652_v10  ;;  %4182 = vmatpush3.msra.mxu0 %v5771_v20  ;;  %v1844_v20 = vld [vmem:[#allocation11 + $0x148] sm:$0xff] }
 0x68e   :  { %1656 = vmatprep.subr.mxu1 %v5656_v15  ;;  %4183 = vmatprep.subr.mxu0 %v6830_v1 }
 0x68f   :  { %1657 = vmatpush1.msra.mxu1 %v5660_v12  ;;  %4184 = vmatpush3.msra.mxu0 %v5777_v44  ;;  %v1839_v44 = vld [vmem:[#allocation11 + $0x120] sm:$0xff] }
 0x690   :  { %1658 = vmatprep.subr.mxu1 %v5664_v17  ;;  %4185 = vmatprep.subr.mxu0 %v6830_v1 }
 0x691   :  { %1659 = vmatpush1.msra.mxu1 %v5668_v16  ;;  %4186 = vmatpush3.msra.mxu0 %v5783_v46  ;;  %v1837_v46 = vld [vmem:[#allocation11 + $0x110] sm:$0xff] }
 0x692   :  { %1660 = vmatprep.subr.mxu1 %v5672_v19  ;;  %4187 = vmatprep.subr.mxu0 %v6830_v1  ;;  %v1623_v19 = vrot.slane %v1463_v5, 2 }
 0x693   :  { %1661 = vmatpush1.msra.mxu1 %v5676_v18  ;;  %4188 = vmatpush3.msra.mxu0 %v5789_v48  ;;  %v1841_v48 = vld [vmem:[#allocation11 + $0x130] sm:$0xff] }
 0x694   :  { %1662 = vmatprep.subr.mxu1 %v6857_v28  ;;  %4189 = vmatprep.subr.mxu0 %v6830_v1  ;;  %v1826_v28 = vld [vmem:[#allocation11 + $0xb8] sm:$0xff] }
 0x695   :  { %1663 = vmatpush1.msra.mxu1 %v6858_v49  ;;  %4190 = vmatpush3.msra.mxu0 %v6859_v58  ;;  %v1821_v49 = vld [vmem:[#allocation11 + $0x90] sm:$0xff]  ;;  %v1819_v58 = vld [vmem:[#allocation11 + $0x80] sm:$0xff] }
 0x696   :  { %1664 = vmatprep.subr.mxu1 %v6860_v35  ;;  %4191 = vmatprep.subr.mxu0 %v6830_v1  ;;  %v1823_v35 = vld [vmem:[#allocation11 + $0xa0] sm:$0xff] }
 0x697   :  { %1665 = vmatpush1.msra.mxu1 %v6861_v39  ;;  %1698 = vmatprep.mubr.f32.mxu1 %v6830_v1  ;;  %v1818_v39 = vld [vmem:[#allocation11 + $0x78] sm:$0xff] }
 0x698   :  { %4192 = vmatpush3.msra.mxu0 %v6862_v6  ;;  %4193 = vmatprep.mubr.msk.f32.mxu0 %vm4976_vm0, %v6830_v1  ;;  %v1816_v6 = vld [vmem:[#allocation11 + $0x68] sm:$0xff] }
 0x699   :  { %4196 = vmatprep.subr.mxu0 %v6830_v1  ;;  %1868 = vmatprep.subr.mxu1 %v1849_v53 }
 0x738   :  { %v1530_v0 = vpop.f32.mrf.mxu1  ;;  %v1601_v2 = vpop.f32.mrf.mxu0 }
 0x739   :  { %v1531_v37 = vadd.f32 %v1530_v0, %v6863_v4  ;;  %v1602_v12 = vadd.f32 %v1601_v2, %v5334_v41  ;;  %v1820_v0 = vld [vmem:[#allocation11 + $0x88] sm:$0xff]  ;;  %v1815_v2 = vld [vmem:[#allocation11 + $0x60] sm:$0xff] }
 0x73a   :  { %v1532_v43 = vpop.f32.mrf.mxu1  ;;  %v4160_v7 = vpop.f32.mrf.mxu0 }
 0x73b   :  { %v1605_v29 = vadd.f32 %v1531_v37, %v1463_v5  ;;  %v1533_v47 = vadd.f32 %v1532_v43, %v5330_v45  ;;  %v1813_v37 = vld [vmem:[#allocation11 + $0x50] sm:$0xff]  ;;  %v1812_v43 = vld [vmem:[#allocation11 + $0x48] sm:$0xff]  ;;  %v1810_v7 = vld [vmem:[#allocation11 + $0x38] sm:$0xff] }
 0x73c   :  { %v1817_v5 = vld [vmem:[#allocation11 + $0x70] sm:$0xff] }
 0x73d   :  { %v3554_v8 = vmul.f32 -1.442695, %v1605_v29  ;;  %v1615_v56 = vadd.f32 %v1613_v9, %v1533_v47  ;;  %v1814_v29 = vld [vmem:[#allocation11 + $0x58] sm:$0xff]  ;;  %v1807_v47 = vld [vmem:[#allocation11 + $0x20] sm:$0xff] }
 0x73e   :  { %v1811_v9 = vld [vmem:[#allocation11 + $0x40] sm:$0xff] }
 0x73f   :  { %4619 = vpow2.f32 %v3554_v8  ;;  %v3555_v11 = vmul.f32 -1.442695, %v1615_v56  ;;  %v1809_v8 = vld [vmem:[#allocation11 + $0x30] sm:$0xff]  ;;  %v1806_v56 = vld [vmem:[#allocation11 + $0x18] sm:$0xff] }
 0x741   :  { %4621 = vpow2.f32 %v3555_v11  ;;  %v1804_v11 = vld [vmem:[#allocation11 + $0x8] sm:$0xff] }
 0x74c   :  { %v4620_v51 = vpop.eup %4619 }
 0x74d   :  { %v1609_v13 = vadd.f32 1.0, %v4620_v51  ;;  %v1808_v51 = vld [vmem:[#allocation11 + $0x28] sm:$0xff] }
 0x74e   :  { %v4622_v10 = vpop.eup %4621 }
 0x74f   :  { %4623 = vrcp.f32 %v1609_v13  ;;  %v1619_v15 = vadd.f32 1.0, %v4622_v10  ;;  %v1803_v13 = vld [vmem:[#allocation11] sm:$0xff]  ;;  %v1805_v10 = vld [vmem:[#allocation11 + $0x10] sm:$0xff] }
 0x751   :  { %4625 = vrcp.f32 %v1619_v15  ;;  %v5910_v15 = vld [vmem:[#allocation13 + $0x170] sm:$0xff] }
 0x752   :  { %6864 = vst [vmem:[#allocation28_spill] sm:$0xff] %v5910_v15 }
 0x75c   :  { %v4624_v17 = vpop.eup %4623 }
 0x75d   :  { %v1622_v16 = vmul.f32 %v4624_v17, %v1602_v12 }
 0x75e   :  { %v4626_v21 = vpop.eup %4625 }
 0x75f   :  { %v1625_v18 = vadd.f32 %v1623_v19, %v1622_v16  ;;  %v1627_v24 = vsub.f32 1.0, %v4626_v21  ;;  %v1629_v33 = vmul.f32 %v4626_v21, %v5813_v52  ;;  %v1822_v52 = vld [vmem:[#allocation11 + $0x98] sm:$0xff] }
 0x760   :  { %v1633_v19 = vld [vmem:[#allocation2 + $0x7] ss:$8 sm:$0x7] }
 0x761   :  { %4627 = vtanh.f32 %v1625_v18 }
 0x76e   :  { %v4628_v23 = vpop.eup %4627 }
 0x76f   :  { %v1628_v26 = vmul.f32 %v4628_v23, %v1627_v24 }
 0x771   :  { %v5888_v25 = vadd.f32 %v1629_v33, %v1628_v26  ;;  %v1783_v33 = vrot.slane %v1633_v19, 1 }
 0x773   :  { %1631 = vst [vmem:[#allocation3 + $0x6] sm:$0x1] %v5888_v25  ;;  %1699 = vmatmul.mubr.f32.vlgmr.msra.gmra.mxu1 %v5888_v25  ;;  %4194 = vmatmul.mubr.f32.vlgmr.msra.gmra.mxu0 %v5888_v25 }
 0x774   :  { %1932 = vmatprep.mubr.f32.mxu1 %v6830_v1  ;;  %4228 = vmatprep.mubr.msk.f32.mxu0 %vm4976_vm0, %v6830_v1 }
 0x775   :  { %1869 = vmatpush1.msra.mxu1 %v1848_v14  ;;  %4197 = vmatpush3.msra.mxu0 %v1850_v32 }
 0x776   :  { %1870 = vmatprep.subr.mxu1 %v1846_v30  ;;  %4198 = vmatprep.subr.mxu0 %v6830_v1 }
 0x777   :  { %1871 = vmatpush1.msra.mxu1 %v1845_v34  ;;  %4199 = vmatpush3.msra.mxu0 %v1847_v38 }
 0x778   :  { %1872 = vmatprep.subr.mxu1 %v1843_v36  ;;  %4200 = vmatprep.subr.mxu0 %v6830_v1 }
 0x779   :  { %1873 = vmatpush1.msra.mxu1 %v1842_v40  ;;  %4201 = vmatpush3.msra.mxu0 %v1844_v20 }
 0x77a   :  { %1874 = vmatprep.subr.mxu1 %v1840_v42  ;;  %4202 = vmatprep.subr.mxu0 %v6830_v1  ;;  %v1793_v42 = vrot.slane %v1633_v19, 2 }
 0x77b   :  { %1875 = vmatpush1.msra.mxu1 %v1839_v44  ;;  %4203 = vmatpush3.msra.mxu0 %v1841_v48 }
 0x77c   :  { %1876 = vmatprep.subr.mxu1 %v1837_v46  ;;  %4204 = vmatprep.subr.mxu0 %v6830_v1 }
 0x77d   :  { %1877 = vmatpush1.msra.mxu1 %v1836_v50  ;;  %4205 = vmatpush3.msra.mxu0 %v1838_v60  ;;  %v5919_v60 = vld [vmem:[#allocation13 + $0x168] sm:$0xff] }
 0x77e   :  { %1878 = vmatprep.subr.mxu1 %v1834_v57  ;;  %4206 = vmatprep.subr.mxu0 %v6830_v1 }
 0x77f   :  { %1879 = vmatpush1.msra.mxu1 %v1833_v54  ;;  %4207 = vmatpush3.msra.mxu0 %v1835_v22  ;;  %v5925_v22 = vld [vmem:[#allocation13 + $0x150] sm:$0xff] }
 0x780   :  { %1880 = vmatprep.subr.mxu1 %v1831_v3  ;;  %4208 = vmatprep.subr.mxu0 %v6830_v1  ;;  %v5921_v3 = vld [vmem:[#allocation13 + $0x158] sm:$0xff] }
 0x781   :  { %1881 = vmatpush1.msra.mxu1 %v1830_v55  ;;  %4209 = vmatpush3.msra.mxu0 %v1832_v31  ;;  %v5928_v55 = vld [vmem:[#allocation13 + $0x140] sm:$0xff]  ;;  %v5938_v31 = vld [vmem:[#allocation13 + $0x128] sm:$0xff] }
 0x782   :  { %1882 = vmatprep.subr.mxu1 %v1828_v59  ;;  %4210 = vmatprep.subr.mxu0 %v6830_v1  ;;  %v5934_v59 = vld [vmem:[#allocation13 + $0x138] sm:$0xff] }
 0x783   :  { %1883 = vmatpush1.msra.mxu1 %v1827_v61  ;;  %4211 = vmatpush3.msra.mxu0 %v1829_v63  ;;  %v5941_v61 = vld [vmem:[#allocation13 + $0x148] sm:$0xff]  ;;  %v5948_v63 = vld [vmem:[#allocation13 + $0x110] sm:$0xff] }
 0x784   :  { %1884 = vmatprep.subr.mxu1 %v1825_v62  ;;  %4212 = vmatprep.subr.mxu0 %v6830_v1  ;;  %v5944_v62 = vld [vmem:[#allocation13 + $0x120] sm:$0xff] }
 0x785   :  { %1885 = vmatpush1.msra.mxu1 %v1824_v27  ;;  %4213 = vmatpush3.msra.mxu0 %v1826_v28  ;;  %v5951_v27 = vld [vmem:[#allocation13 + $0x130] sm:$0xff]  ;;  %v5958_v28 = vld [vmem:[#allocation13 + $0xf8] sm:$0xff] }
 0x786   :  { %1886 = vmatprep.subr.mxu1 %v1822_v52  ;;  %4214 = vmatprep.subr.mxu0 %v6830_v1  ;;  %v5954_v52 = vld [vmem:[#allocation13 + $0x108] sm:$0xff] }
 0x787   :  { %1887 = vmatpush1.msra.mxu1 %v1821_v49  ;;  %4215 = vmatpush3.msra.mxu0 %v1823_v35  ;;  %v5961_v49 = vld [vmem:[#allocation13 + $0x118] sm:$0xff]  ;;  %v5968_v35 = vld [vmem:[#allocation13 + $0xe0] sm:$0xff] }
 0x788   :  { %1888 = vmatprep.subr.mxu1 %v1819_v58  ;;  %4216 = vmatprep.subr.mxu0 %v6830_v1  ;;  %v5964_v58 = vld [vmem:[#allocation13 + $0xf0] sm:$0xff] }
 0x789   :  { %1889 = vmatpush1.msra.mxu1 %v1818_v39  ;;  %4217 = vmatpush3.msra.mxu0 %v1820_v0  ;;  %v5971_v39 = vld [vmem:[#allocation13 + $0x100] sm:$0xff]  ;;  %v5978_v0 = vld [vmem:[#allocation13 + $0xc8] sm:$0xff] }
 0x78a   :  { %1890 = vmatprep.subr.mxu1 %v1816_v6  ;;  %4218 = vmatprep.subr.mxu0 %v6830_v1  ;;  %v5974_v6 = vld [vmem:[#allocation13 + $0xd8] sm:$0xff] }
 0x78b   :  { %1891 = vmatpush1.msra.mxu1 %v1815_v2  ;;  %4219 = vmatpush3.msra.mxu0 %v1817_v5  ;;  %v5981_v2 = vld [vmem:[#allocation13 + $0xe8] sm:$0xff]  ;;  %v5988_v5 = vld [vmem:[#allocation13 + $0xb0] sm:$0xff] }
 0x78c   :  { %1892 = vmatprep.subr.mxu1 %v1813_v37  ;;  %4220 = vmatprep.subr.mxu0 %v6830_v1  ;;  %v5984_v37 = vld [vmem:[#allocation13 + $0xc0] sm:$0xff] }
 0x78d   :  { %1893 = vmatpush1.msra.mxu1 %v1812_v43  ;;  %4221 = vmatpush3.msra.mxu0 %v1814_v29  ;;  %v5991_v43 = vld [vmem:[#allocation13 + $0xd0] sm:$0xff]  ;;  %v5998_v29 = vld [vmem:[#allocation13 + $0x98] sm:$0xff] }
 0x78e   :  { %1894 = vmatprep.subr.mxu1 %v1810_v7  ;;  %4222 = vmatprep.subr.mxu0 %v6830_v1  ;;  %v5994_v7 = vld [vmem:[#allocation13 + $0xa8] sm:$0xff] }
 0x78f   :  { %1895 = vmatpush1.msra.mxu1 %v1809_v8  ;;  %4223 = vmatpush3.msra.mxu0 %v1811_v9  ;;  %v6001_v8 = vld [vmem:[#allocation13 + $0xb8] sm:$0xff]  ;;  %v6008_v9 = vld [vmem:[#allocation13 + $0x80] sm:$0xff] }
 0x790   :  { %1896 = vmatprep.subr.mxu1 %v1807_v47  ;;  %4224 = vmatprep.subr.mxu0 %v6830_v1  ;;  %v6004_v47 = vld [vmem:[#allocation13 + $0x90] sm:$0xff] }
 0x791   :  { %1897 = vmatpush1.msra.mxu1 %v1806_v56  ;;  %4225 = vmatpush3.msra.mxu0 %v1808_v51  ;;  %v6011_v56 = vld [vmem:[#allocation13 + $0xa0] sm:$0xff]  ;;  %v6018_v51 = vld [vmem:[#allocation13 + $0x68] sm:$0xff] }
 0x792   :  { %1898 = vmatprep.subr.mxu1 %v1804_v11  ;;  %4226 = vmatprep.subr.mxu0 %v6830_v1  ;;  %v6014_v11 = vld [vmem:[#allocation13 + $0x78] sm:$0xff] }
 0x793   :  { %1899 = vmatpush1.msra.mxu1 %v1803_v13  ;;  %4227 = vmatpush3.msra.mxu0 %v1805_v10  ;;  %v6021_v13 = vld [vmem:[#allocation13 + $0x88] sm:$0xff]  ;;  %v6024_v10 = vld [vmem:[#allocation13 + $0x60] sm:$0xff] }
 0x794   :  { %2078 = vmatprep.subr.mxu1 %v5910_v15  ;;  %4231 = vmatprep.subr.mxu0 %v6830_v1 }
 0x833   :  { %v1700_v12 = vpop.f32.mrf.mxu1  ;;  %v1771_v17 = vpop.f32.mrf.mxu0 }
 0x834   :  { %v1701_v16 = vadd.f32 %v1700_v12, %v6863_v4  ;;  %v1772_v38 = vadd.f32 %v1771_v17, %v5334_v41  ;;  %v5923_v41 = vld [vmem:[#allocation13 + $0x178] sm:$0xff]  ;;  %v6028_v12 = vld [vmem:[#allocation13 + $0x50] sm:$0xff] }
 0x835   :  { %v1702_v18 = vpop.f32.mrf.mxu1  ;;  %v4195_v21 = vpop.f32.mrf.mxu0  ;;  %v6031_v17 = vld [vmem:[#allocation13 + $0x70] sm:$0xff] }
 0x836   :  { %v1775_v24 = vadd.f32 %v1701_v16, %v1633_v19  ;;  %v1703_v26 = vadd.f32 %v1702_v18, %v5330_v45  ;;  %v6034_v16 = vld [vmem:[#allocation13 + $0x48] sm:$0xff]  ;;  %v6038_v19 = vld [vmem:[#allocation13 + $0x38] sm:$0xff]  ;;  %v6044_v21 = vld [vmem:[#allocation13 + $0x30] sm:$0xff] }
 0x837   :  { %v6041_v18 = vld [vmem:[#allocation13 + $0x58] sm:$0xff] }
 0x838   :  { %v3556_v23 = vmul.f32 -1.442695, %v1775_v24  ;;  %v1785_v53 = vadd.f32 %v1783_v33, %v1703_v26  ;;  %v6048_v24 = vld [vmem:[#allocation13 + $0x20] sm:$0xff]  ;;  %v6054_v26 = vld [vmem:[#allocation13 + $0x18] sm:$0xff]  ;;  %v6058_v33 = vld [vmem:[#allocation13 + $0x8] sm:$0xff] }
 0x839   :  { %6865 = vst [vmem:[#allocation22_spill] sm:$0xff] %v6048_v24  ;;  %6866 = vst [vmem:[#allocation23_spill] sm:$0xff] %v6054_v26 }
 0x83a   :  { %4629 = vpow2.f32 %v3556_v23  ;;  %v3557_v14 = vmul.f32 -1.442695, %v1785_v53  ;;  %v6051_v23 = vld [vmem:[#allocation13 + $0x40] sm:$0xff]  ;;  %6867 = vst [vmem:[#allocation25_spill] sm:$0xff] %v6058_v33  ;;  %v6061_v53 = vld [vmem:[#allocation13 + $0x28] sm:$0xff] }
 0x83b   :  { %6868 = vst [vmem:[#allocation24_spill] sm:$0xff] %v6061_v53 }
 0x83c   :  { %4631 = vpow2.f32 %v3557_v14  ;;  %v6064_v14 = vld [vmem:[#allocation13] sm:$0xff] }
 0x83d   :  { %6869 = vst [vmem:[#allocation27_spill] sm:$0xff] %v6064_v14 }
 0x847   :  { %v4630_v30 = vpop.eup %4629 }
 0x848   :  { %v1779_v32 = vadd.f32 1.0, %v4630_v30  ;;  %v6069_v30 = vld [vmem:[#allocation13 + $0x10] sm:$0xff] }
 0x849   :  { %v4632_v34 = vpop.eup %4631  ;;  %6870 = vst [vmem:[#allocation26_spill] sm:$0xff] %v6069_v30 }
 0x84a   :  { %4633 = vrcp.f32 %v1779_v32  ;;  %v1789_v36 = vadd.f32 1.0, %v4632_v34  ;;  %v1851_v32 = vld [vmem:[%s6760_s7] sm:$0x7] }
 0x84b   :  { %v6871_v34 = vld [vmem:[#allocation30_spill] sm:$0xff] }
 0x84c   :  { %4635 = vrcp.f32 %v1789_v36  ;;  %v1856_v36 = vrot.slane %v1851_v32, %v6871_v34 }
 0x857   :  { %v4634_v4 = vpop.eup %4633 }
 0x858   :  { %v1792_v40 = vmul.f32 %v4634_v4, %v1772_v38  ;;  %v6872_v38 = vld [vmem:[#allocation29_spill] sm:$0xff] }
 0x859   :  { %v4636_v44 = vpop.eup %4635  ;;  %v1864_v4 = vrot.slane %v1851_v32, %v6872_v38 }
 0x85a   :  { %v1795_v20 = vadd.f32 %v1793_v42, %v1792_v40  ;;  %v1797_v45 = vsub.f32 1.0, %v4636_v44  ;;  %v1799_v50 = vmul.f32 %v4636_v44, %v5888_v25  ;;  %v5931_v25 = vld [vmem:[#allocation13 + $0x160] sm:$0xff]  ;;  %v6873_v40 = vld [vmem:[#allocation31_spill] sm:$0xff] }
 0x85b   :  { %v1860_v42 = vrot.slane %v1851_v32, %v6873_v40 }
 0x85c   :  { %4637 = vtanh.f32 %v1795_v20 }
 0x869   :  { %v4638_v46 = vpop.eup %4637 }
 0x86a   :  { %v1798_v48 = vmul.f32 %v4638_v46, %v1797_v45 }
 0x86c   :  { %v1800_v57 = vadd.f32 %v1799_v50, %v1798_v48 }
 0x86e   :  { %1801 = vst [vmem:[#allocation3 + $0x7] sm:$0x1] %v1800_v57 }
 0x875   :  { %v1802_v54 = vld [vmem:[#allocation3] sm:$0xff] }
 0x876   :  { %1933 = vmatmul.mubr.f32.vlgmr.msra.gmra.mxu1 %v1802_v54  ;;  %4229 = vmatmul.mubr.f32.vlgmr.msra.gmra.mxu0 %v1802_v54  ;;  %v2060_v54 = vld [vmem:[%s6761_s8] sm:$0x7] }
 0x877   :  { %2079 = vmatpush1.msra.mxu1 %v5919_v60  ;;  %2142 = vmatprep.mubr.f32.mxu1 %v6830_v1  ;;  %v6162_v32 = vrot.slane %v2060_v54, %v6873_v40  ;;  %v6167_v40 = vrot.slane %v2060_v54, %v6872_v38  ;;  %v6878_v38 = vld [vmem:[#allocation26_spill] sm:$0xff] }
 0x878   :  { %2080 = vmatprep.subr.mxu1 %v5921_v3  ;;  %4232 = vmatpush3.msra.mxu0 %v5923_v41 }
 0x879   :  { %2081 = vmatpush1.msra.mxu1 %v5925_v22  ;;  %4233 = vmatprep.subr.mxu0 %v6830_v1 }
 0x87a   :  { %2082 = vmatprep.subr.mxu1 %v5928_v55  ;;  %4234 = vmatpush3.msra.mxu0 %v5931_v25 }
 0x87b   :  { %2083 = vmatpush1.msra.mxu1 %v5934_v59  ;;  %4235 = vmatprep.subr.mxu0 %v6830_v1 }
 0x87c   :  { %2084 = vmatprep.subr.mxu1 %v5938_v31  ;;  %4236 = vmatpush3.msra.mxu0 %v5941_v61 }
 0x87d   :  { %2085 = vmatpush1.msra.mxu1 %v5944_v62  ;;  %4237 = vmatprep.subr.mxu0 %v6830_v1 }
 0x87e   :  { %2086 = vmatprep.subr.mxu1 %v5948_v63  ;;  %4238 = vmatpush3.msra.mxu0 %v5951_v27 }
 0x87f   :  { %2087 = vmatpush1.msra.mxu1 %v5954_v52  ;;  %4239 = vmatprep.subr.mxu0 %v6830_v1 }
 0x880   :  { %2088 = vmatprep.subr.mxu1 %v5958_v28  ;;  %4240 = vmatpush3.msra.mxu0 %v5961_v49 }
 0x881   :  { %2089 = vmatpush1.msra.mxu1 %v5964_v58  ;;  %4241 = vmatprep.subr.mxu0 %v6830_v1 }
 0x882   :  { %2090 = vmatprep.subr.mxu1 %v5968_v35  ;;  %4242 = vmatpush3.msra.mxu0 %v5971_v39 }
 0x883   :  { %2091 = vmatpush1.msra.mxu1 %v5974_v6  ;;  %4243 = vmatprep.subr.mxu0 %v6830_v1 }
 0x884   :  { %2092 = vmatprep.subr.mxu1 %v5978_v0  ;;  %4244 = vmatpush3.msra.mxu0 %v5981_v2 }
 0x885   :  { %2093 = vmatpush1.msra.mxu1 %v5984_v37  ;;  %4245 = vmatprep.subr.mxu0 %v6830_v1 }
 0x886   :  { %2094 = vmatprep.subr.mxu1 %v5988_v5  ;;  %4246 = vmatpush3.msra.mxu0 %v5991_v43 }
 0x887   :  { %2095 = vmatpush1.msra.mxu1 %v5994_v7  ;;  %4247 = vmatprep.subr.mxu0 %v6830_v1 }
 0x888   :  { %2096 = vmatprep.subr.mxu1 %v5998_v29  ;;  %4248 = vmatpush3.msra.mxu0 %v6001_v8 }
 0x889   :  { %2097 = vmatpush1.msra.mxu1 %v6004_v47  ;;  %4249 = vmatprep.subr.mxu0 %v6830_v1 }
 0x88a   :  { %2098 = vmatprep.subr.mxu1 %v6008_v9  ;;  %4250 = vmatpush3.msra.mxu0 %v6011_v56 }
 0x88b   :  { %2099 = vmatpush1.msra.mxu1 %v6014_v11  ;;  %4251 = vmatprep.subr.mxu0 %v6830_v1 }
 0x88c   :  { %2100 = vmatprep.subr.mxu1 %v6018_v51  ;;  %4252 = vmatpush3.msra.mxu0 %v6021_v13 }
 0x88d   :  { %2101 = vmatpush1.msra.mxu1 %v6024_v10  ;;  %4253 = vmatprep.subr.mxu0 %v6830_v1 }
 0x88e   :  { %2102 = vmatprep.subr.mxu1 %v6028_v12  ;;  %4254 = vmatpush3.msra.mxu0 %v6031_v17 }
 0x88f   :  { %2103 = vmatpush1.msra.mxu1 %v6034_v16  ;;  %4255 = vmatprep.subr.mxu0 %v6830_v1 }
 0x890   :  { %2104 = vmatprep.subr.mxu1 %v6038_v19  ;;  %4256 = vmatpush3.msra.mxu0 %v6041_v18 }
 0x891   :  { %2105 = vmatpush1.msra.mxu1 %v6044_v21  ;;  %4257 = vmatprep.subr.mxu0 %v6830_v1 }
 0x892   :  { %2106 = vmatprep.subr.mxu1 %v6048_v24  ;;  %4258 = vmatpush3.msra.mxu0 %v6051_v23 }
 0x893   :  { %2107 = vmatpush1.msra.mxu1 %v6054_v26  ;;  %4259 = vmatprep.subr.mxu0 %v6830_v1 }
 0x894   :  { %2108 = vmatprep.subr.mxu1 %v6058_v33  ;;  %4260 = vmatpush3.msra.mxu0 %v6061_v53 }
 0x895   :  { %2109 = vmatpush1.msra.mxu1 %v6064_v14  ;;  %4261 = vmatprep.subr.mxu0 %v6830_v1 }
 0x896   :  { %2143 = vmatmul.mubr.f32.vlgmr.msra.gmra.mxu1 %v6830_v1  ;;  %4262 = vmatpush3.msra.mxu0 %v6069_v30 }
 0x897   :  { %4263 = vmatprep.mubr.msk.f32.mxu0 %vm4976_vm0, %v6830_v1  ;;  %2247 = vmatprep.subr.mxu1 %v5910_v15 }
 0x898   :  { %4264 = vmatmul.mubr.f32.vlgmr.msra.gmra.mxu0 %v6830_v1  ;;  %4266 = vmatprep.subr.mxu0 %v6830_v1 }
 0x899   :  { %2248 = vmatpush1.msra.mxu1 %v5919_v60  ;;  %4267 = vmatpush3.msra.mxu0 %v5923_v41 }
 0x89a   :  { %2249 = vmatprep.subr.mxu1 %v5921_v3  ;;  %4268 = vmatprep.subr.mxu0 %v6830_v1 }
 0x89b   :  { %2250 = vmatpush1.msra.mxu1 %v5925_v22  ;;  %4269 = vmatpush3.msra.mxu0 %v5931_v25 }
 0x89c   :  { %2251 = vmatprep.subr.mxu1 %v5928_v55  ;;  %4270 = vmatprep.subr.mxu0 %v6830_v1 }
 0x89d   :  { %2252 = vmatpush1.msra.mxu1 %v5934_v59  ;;  %4271 = vmatpush3.msra.mxu0 %v5941_v61 }
 0x89e   :  { %2253 = vmatprep.subr.mxu1 %v5938_v31  ;;  %4272 = vmatprep.subr.mxu0 %v6830_v1 }
 0x89f   :  { %2254 = vmatpush1.msra.mxu1 %v5944_v62  ;;  %4273 = vmatpush3.msra.mxu0 %v5951_v27 }
 0x8a0   :  { %2255 = vmatprep.subr.mxu1 %v5948_v63  ;;  %4274 = vmatprep.subr.mxu0 %v6830_v1 }
 0x8a1   :  { %2256 = vmatpush1.msra.mxu1 %v5954_v52  ;;  %4275 = vmatpush3.msra.mxu0 %v5961_v49 }
 0x8a2   :  { %2257 = vmatprep.subr.mxu1 %v5958_v28  ;;  %4276 = vmatprep.subr.mxu0 %v6830_v1 }
 0x8a3   :  { %2258 = vmatpush1.msra.mxu1 %v5964_v58  ;;  %4277 = vmatpush3.msra.mxu0 %v5971_v39 }
 0x8a4   :  { %2259 = vmatprep.subr.mxu1 %v5968_v35  ;;  %4278 = vmatprep.subr.mxu0 %v6830_v1 }
 0x8a5   :  { %2260 = vmatpush1.msra.mxu1 %v5974_v6  ;;  %4279 = vmatpush3.msra.mxu0 %v5981_v2 }
 0x8a6   :  { %2261 = vmatprep.subr.mxu1 %v5978_v0  ;;  %4280 = vmatprep.subr.mxu0 %v6830_v1 }
 0x8a7   :  { %2262 = vmatpush1.msra.mxu1 %v5984_v37  ;;  %4281 = vmatpush3.msra.mxu0 %v5991_v43 }
 0x8a8   :  { %2263 = vmatprep.subr.mxu1 %v5988_v5  ;;  %4282 = vmatprep.subr.mxu0 %v6830_v1 }
 0x8a9   :  { %2264 = vmatpush1.msra.mxu1 %v5994_v7  ;;  %4283 = vmatpush3.msra.mxu0 %v6001_v8 }
 0x8aa   :  { %2265 = vmatprep.subr.mxu1 %v5998_v29  ;;  %4284 = vmatprep.subr.mxu0 %v6830_v1 }
 0x8ab   :  { %2266 = vmatpush1.msra.mxu1 %v6004_v47  ;;  %4285 = vmatpush3.msra.mxu0 %v6011_v56 }
 0x8ac   :  { %2267 = vmatprep.subr.mxu1 %v6008_v9  ;;  %4286 = vmatprep.subr.mxu0 %v6830_v1 }
 0x8ad   :  { %2268 = vmatpush1.msra.mxu1 %v6014_v11  ;;  %4287 = vmatpush3.msra.mxu0 %v6021_v13 }
 0x8ae   :  { %2269 = vmatprep.subr.mxu1 %v6018_v51  ;;  %4288 = vmatprep.subr.mxu0 %v6830_v1 }
 0x8af   :  { %2270 = vmatpush1.msra.mxu1 %v6024_v10  ;;  %4289 = vmatpush3.msra.mxu0 %v6031_v17 }
 0x8b0   :  { %2271 = vmatprep.subr.mxu1 %v6028_v12  ;;  %4290 = vmatprep.subr.mxu0 %v6830_v1 }
 0x8b1   :  { %2272 = vmatpush1.msra.mxu1 %v6034_v16  ;;  %4291 = vmatpush3.msra.mxu0 %v6041_v18 }
 0x8b2   :  { %2273 = vmatprep.subr.mxu1 %v6038_v19  ;;  %4292 = vmatprep.subr.mxu0 %v6830_v1 }
 0x8b3   :  { %2274 = vmatpush1.msra.mxu1 %v6044_v21  ;;  %4293 = vmatpush3.msra.mxu0 %v6051_v23 }
 0x8b4   :  { %2275 = vmatprep.subr.mxu1 %v6048_v24  ;;  %4294 = vmatprep.subr.mxu0 %v6830_v1 }
 0x8b5   :  { %2276 = vmatpush1.msra.mxu1 %v6054_v26  ;;  %4295 = vmatpush3.msra.mxu0 %v6061_v53 }
 0x8b6   :  { %2277 = vmatprep.subr.mxu1 %v6058_v33  ;;  %4296 = vmatprep.subr.mxu0 %v6830_v1 }
 0x8b7   :  { %2278 = vmatpush1.msra.mxu1 %v6064_v14  ;;  %2311 = vmatprep.mubr.f32.mxu1 %v6830_v1 }
 0x8b8   :  { %4297 = vmatpush3.msra.mxu0 %v6069_v30  ;;  %4298 = vmatprep.mubr.msk.f32.mxu0 %vm4976_vm0, %v6830_v1 }
 0x8b9   :  { %2416 = vmatprep.subr.mxu1 %v5910_v15  ;;  %4301 = vmatprep.subr.mxu0 %v6830_v1  ;;  %v6159_v15 = vrot.slane %v2060_v54, %v6871_v34  ;;  %v6879_v54 = vld [vmem:[#allocation28_spill] sm:$0xff] }
 0x8bb   :  { %6874 = vst [vmem:[#allocation32_spill] sm:$0xff] %v6159_v15 }
 0x936   :  { %v1934_v20 = vpop.f32.mrf.mxu1  ;;  %v2005_v44 = vpop.f32.mrf.mxu0 }
 0x937   :  { %v1935_v45 = vadd.f32 %v1934_v20, %v1856_v36  ;;  %v2006_v46 = vadd.f32 %v2005_v44, %v1864_v4 }
 0x938   :  { %v1936_v48 = vpop.f32.mrf.mxu1  ;;  %v4230_v50 = vpop.f32.mrf.mxu0 }
 0x939   :  { %2009 = vst [vmem:[#allocation2] sm:$0xff] %v1935_v45  ;;  %2011 = vst [vmem:[#allocation2 + $0x10] sm:$0xff] %v2006_v46  ;;  %v1937_v57 = vadd.f32 %v1936_v48, %v1860_v42 }
 0x93b   :  { %2010 = vst [vmem:[#allocation2 + $0x8] sm:$0xff] %v1937_v57 }
 0x942   :  { %v2061_v4 = vld [vmem:[#allocation2] ss:$8 sm:$0x7] }
 0x943   :  { %v2227_v50 = vrot.slane %v2061_v4, 1 }
 0x956   :  { %v2144_v30 = vpop.f32.mrf.mxu1 }
 0x957   :  { %v2145_v36 = vadd.f32 %v2144_v30, %v6159_v15 }
 0x958   :  { %v2146_v20 = vpop.f32.mrf.mxu1  ;;  %v2215_v44 = vpop.f32.mrf.mxu0 }
 0x959   :  { %v2219_v45 = vadd.f32 %v2145_v36, %v2061_v4  ;;  %v2147_v48 = vadd.f32 %v2146_v20, %v6162_v32  ;;  %v2216_v53 = vadd.f32 %v2215_v44, %v6167_v40 }
 0x95a   :  { %v4265_v46 = vpop.f32.mrf.mxu0 }
 0x95b   :  { %v3558_v42 = vmul.f32 -1.442695, %v2219_v45  ;;  %v2229_v57 = vadd.f32 %v2227_v50, %v2147_v48  ;;  %v2237_v46 = vrot.slane %v2061_v4, 2 }
 0x95d   :  { %4639 = vpow2.f32 %v3558_v42  ;;  %v3559_v14 = vmul.f32 -1.442695, %v2229_v57 }
 0x95f   :  { %4641 = vpow2.f32 %v3559_v14 }
 0x96a   :  { %v4640_v34 = vpop.eup %4639 }
 0x96b   :  { %v2223_v33 = vadd.f32 1.0, %v4640_v34 }
 0x96c   :  { %v4642_v30 = vpop.eup %4641 }
 0x96d   :  { %4643 = vrcp.f32 %v2223_v33  ;;  %v2233_v15 = vadd.f32 1.0, %v4642_v30  ;;  %v6876_v33 = vld [vmem:[#allocation25_spill] sm:$0xff]  ;;  %v6880_v30 = vld [vmem:[#allocation32_spill] sm:$0xff] }
 0x96f   :  { %4645 = vrcp.f32 %v2233_v15  ;;  %v6875_v15 = vld [vmem:[#allocation24_spill] sm:$0xff] }
 0x97a   :  { %v4644_v36 = vpop.eup %4643 }
 0x97b   :  { %v2236_v45 = vmul.f32 %v4644_v36, %v2216_v53  ;;  %v6877_v53 = vld [vmem:[#allocation27_spill] sm:$0xff] }
 0x97c   :  { %v4646_v42 = vpop.eup %4645 }
 0x97d   :  { %v2239_v20 = vadd.f32 %v2237_v46, %v2236_v45  ;;  %v2241_v48 = vsub.f32 1.0, %v4646_v42  ;;  %v2243_v57 = vmul.f32 0.0, %v4646_v42  ;;  %v2246_v45 = vld [vmem:[#allocation2 + $0x1] ss:$8 sm:$0x7] }
 0x97f   :  { %4647 = vtanh.f32 %v2239_v20 }
 0x98c   :  { %v4648_v50 = vpop.eup %4647 }
 0x98d   :  { %v2242_v14 = vmul.f32 %v4648_v50, %v2241_v48 }
 0x98f   :  { %v6170_v34 = vadd.f32 %v2243_v57, %v2242_v14  ;;  %v2396_v14 = vrot.slane %v2246_v45, 1 }
 0x991   :  { %2245 = vst [vmem:[#allocation4] sm:$0x1] %v6170_v34  ;;  %2312 = vmatmul.mubr.f32.vlgmr.msra.gmra.mxu1 %v6170_v34  ;;  %4299 = vmatmul.mubr.f32.vlgmr.msra.gmra.mxu0 %v6170_v34 }
 0x992   :  { %2417 = vmatpush1.msra.mxu1 %v5919_v60  ;;  %4302 = vmatpush3.msra.mxu0 %v5923_v41 }
 0x993   :  { %2418 = vmatprep.subr.mxu1 %v5921_v3  ;;  %4303 = vmatprep.subr.mxu0 %v6830_v1 }
 0x994   :  { %2419 = vmatpush1.msra.mxu1 %v5925_v22  ;;  %4304 = vmatpush3.msra.mxu0 %v5931_v25 }
 0x995   :  { %2420 = vmatprep.subr.mxu1 %v5928_v55  ;;  %4305 = vmatprep.subr.mxu0 %v6830_v1 }
 0x996   :  { %2421 = vmatpush1.msra.mxu1 %v5934_v59  ;;  %4306 = vmatpush3.msra.mxu0 %v5941_v61 }
 0x997   :  { %2422 = vmatprep.subr.mxu1 %v5938_v31  ;;  %4307 = vmatprep.subr.mxu0 %v6830_v1 }
 0x998   :  { %2423 = vmatpush1.msra.mxu1 %v5944_v62  ;;  %4308 = vmatpush3.msra.mxu0 %v5951_v27 }
 0x999   :  { %2424 = vmatprep.subr.mxu1 %v5948_v63  ;;  %4309 = vmatprep.subr.mxu0 %v6830_v1 }
 0x99a   :  { %2425 = vmatpush1.msra.mxu1 %v5954_v52  ;;  %4310 = vmatpush3.msra.mxu0 %v5961_v49 }
 0x99b   :  { %2426 = vmatprep.subr.mxu1 %v5958_v28  ;;  %4311 = vmatprep.subr.mxu0 %v6830_v1 }
 0x99c   :  { %2427 = vmatpush1.msra.mxu1 %v5964_v58  ;;  %4312 = vmatpush3.msra.mxu0 %v5971_v39 }
 0x99d   :  { %2428 = vmatprep.subr.mxu1 %v5968_v35  ;;  %4313 = vmatprep.subr.mxu0 %v6830_v1 }
 0x99e   :  { %2429 = vmatpush1.msra.mxu1 %v5974_v6  ;;  %4314 = vmatpush3.msra.mxu0 %v5981_v2 }
 0x99f   :  { %2430 = vmatprep.subr.mxu1 %v5978_v0  ;;  %4315 = vmatprep.subr.mxu0 %v6830_v1 }
 0x9a0   :  { %2431 = vmatpush1.msra.mxu1 %v5984_v37  ;;  %4316 = vmatpush3.msra.mxu0 %v5991_v43 }
 0x9a1   :  { %2432 = vmatprep.subr.mxu1 %v5988_v5  ;;  %4317 = vmatprep.subr.mxu0 %v6830_v1 }
 0x9a2   :  { %2433 = vmatpush1.msra.mxu1 %v5994_v7  ;;  %4318 = vmatpush3.msra.mxu0 %v6001_v8 }
 0x9a3   :  { %2434 = vmatprep.subr.mxu1 %v5998_v29  ;;  %4319 = vmatprep.subr.mxu0 %v6830_v1 }
 0x9a4   :  { %2435 = vmatpush1.msra.mxu1 %v6004_v47  ;;  %4320 = vmatpush3.msra.mxu0 %v6011_v56 }
 0x9a5   :  { %2436 = vmatprep.subr.mxu1 %v6008_v9  ;;  %4321 = vmatprep.subr.mxu0 %v6830_v1 }
 0x9a6   :  { %2437 = vmatpush1.msra.mxu1 %v6014_v11  ;;  %4322 = vmatpush3.msra.mxu0 %v6021_v13 }
 0x9a7   :  { %2438 = vmatprep.subr.mxu1 %v6018_v51  ;;  %4323 = vmatprep.subr.mxu0 %v6830_v1 }
 0x9a8   :  { %2439 = vmatpush1.msra.mxu1 %v6024_v10  ;;  %4324 = vmatpush3.msra.mxu0 %v6031_v17 }
 0x9a9   :  { %2440 = vmatprep.subr.mxu1 %v6028_v12  ;;  %4325 = vmatprep.subr.mxu0 %v6830_v1 }
 0x9aa   :  { %2441 = vmatpush1.msra.mxu1 %v6034_v16  ;;  %4326 = vmatpush3.msra.mxu0 %v6041_v18 }
 0x9ab   :  { %2442 = vmatprep.subr.mxu1 %v6038_v19  ;;  %4327 = vmatprep.subr.mxu0 %v6830_v1 }
 0x9ac   :  { %2443 = vmatpush1.msra.mxu1 %v6044_v21  ;;  %4328 = vmatpush3.msra.mxu0 %v6051_v23 }
 0x9ad   :  { %2444 = vmatprep.subr.mxu1 %v6048_v24  ;;  %4329 = vmatprep.subr.mxu0 %v6830_v1  ;;  %v2406_v24 = vrot.slane %v2246_v45, 2 }
 0x9ae   :  { %2445 = vmatpush1.msra.mxu1 %v6054_v26  ;;  %4330 = vmatpush3.msra.mxu0 %v6875_v15 }
 0x9af   :  { %2446 = vmatprep.subr.mxu1 %v6876_v33  ;;  %4331 = vmatprep.subr.mxu0 %v6830_v1 }
 0x9b0   :  { %2447 = vmatpush1.msra.mxu1 %v6877_v53  ;;  %2480 = vmatprep.mubr.f32.mxu1 %v6830_v1 }
 0x9b1   :  { %4332 = vmatpush3.msra.mxu0 %v6878_v38  ;;  %4333 = vmatprep.mubr.msk.f32.mxu0 %vm4976_vm0, %v6830_v1 }
 0x9b2   :  { %2585 = vmatprep.subr.mxu1 %v6879_v54  ;;  %4336 = vmatprep.subr.mxu0 %v6830_v1 }
 0xa51   :  { %v2313_v4 = vpop.f32.mrf.mxu1  ;;  %v2384_v44 = vpop.f32.mrf.mxu0 }
 0xa52   :  { %v2314_v36 = vadd.f32 %v2313_v4, %v6880_v30  ;;  %v2385_v26 = vadd.f32 %v2384_v44, %v6167_v40 }
 0xa53   :  { %v2315_v46 = vpop.f32.mrf.mxu1  ;;  %v4300_v20 = vpop.f32.mrf.mxu0 }
 0xa54   :  { %v2388_v42 = vadd.f32 %v2314_v36, %v2246_v45  ;;  %v2316_v50 = vadd.f32 %v2315_v46, %v6162_v32  ;;  %v6888_v45 = vld [vmem:[#allocation32_spill] sm:$0xff] }
 0xa56   :  { %v3560_v48 = vmul.f32 -1.442695, %v2388_v42  ;;  %v2398_v57 = vadd.f32 %v2396_v14, %v2316_v50 }
 0xa58   :  { %4649 = vpow2.f32 %v3560_v48  ;;  %v3561_v38 = vmul.f32 -1.442695, %v2398_v57  ;;  %v2415_v57 = vld [vmem:[#allocation2 + $0x2] ss:$8 sm:$0x7] }
 0xa5a   :  { %4651 = vpow2.f32 %v3561_v38 }
 0xa65   :  { %v4650_v53 = vpop.eup %4649 }
 0xa66   :  { %v2392_v54 = vadd.f32 1.0, %v4650_v53  ;;  %v6886_v53 = vld [vmem:[#allocation26_spill] sm:$0xff] }
 0xa67   :  { %v4652_v33 = vpop.eup %4651 }
 0xa68   :  { %4653 = vrcp.f32 %v2392_v54  ;;  %v2402_v15 = vadd.f32 1.0, %v4652_v33  ;;  %v6885_v33 = vld [vmem:[#allocation27_spill] sm:$0xff]  ;;  %v6887_v54 = vld [vmem:[#allocation28_spill] sm:$0xff] }
 0xa6a   :  { %4655 = vrcp.f32 %v2402_v15  ;;  %v6884_v15 = vld [vmem:[#allocation25_spill] sm:$0xff] }
 0xa75   :  { %v4654_v4 = vpop.eup %4653 }
 0xa76   :  { %v2405_v30 = vmul.f32 %v4654_v4, %v2385_v26  ;;  %v6882_v26 = vld [vmem:[#allocation23_spill] sm:$0xff] }
 0xa77   :  { %v4656_v20 = vpop.eup %4655 }
 0xa78   :  { %v2408_v36 = vadd.f32 %v2406_v24, %v2405_v30  ;;  %v2410_v46 = vsub.f32 1.0, %v4656_v20  ;;  %v2412_v50 = vmul.f32 %v4656_v20, %v6170_v34  ;;  %v6881_v24 = vld [vmem:[#allocation22_spill] sm:$0xff]  ;;  %v6883_v34 = vld [vmem:[#allocation24_spill] sm:$0xff] }
 0xa7a   :  { %4657 = vtanh.f32 %v2408_v36 }
 0xa87   :  { %v4658_v42 = vpop.eup %4657 }
 0xa88   :  { %v2411_v48 = vmul.f32 %v4658_v42, %v2410_v46 }
 0xa8a   :  { %v6246_v38 = vadd.f32 %v2412_v50, %v2411_v48  ;;  %v2565_v48 = vrot.slane %v2415_v57, 1 }
 0xa8c   :  { %2414 = vst [vmem:[#allocation4 + $0x1] sm:$0x1] %v6246_v38  ;;  %2481 = vmatmul.mubr.f32.vlgmr.msra.gmra.mxu1 %v6246_v38  ;;  %4334 = vmatmul.mubr.f32.vlgmr.msra.gmra.mxu0 %v6246_v38 }
 0xa8d   :  { %2586 = vmatpush1.msra.mxu1 %v5919_v60  ;;  %4337 = vmatpush3.msra.mxu0 %v5923_v41 }
 0xa8e   :  { %2587 = vmatprep.subr.mxu1 %v5921_v3  ;;  %4338 = vmatprep.subr.mxu0 %v6830_v1 }
 0xa8f   :  { %2588 = vmatpush1.msra.mxu1 %v5925_v22  ;;  %4339 = vmatpush3.msra.mxu0 %v5931_v25 }
 0xa90   :  { %2589 = vmatprep.subr.mxu1 %v5928_v55  ;;  %4340 = vmatprep.subr.mxu0 %v6830_v1 }
 0xa91   :  { %2590 = vmatpush1.msra.mxu1 %v5934_v59  ;;  %4341 = vmatpush3.msra.mxu0 %v5941_v61 }
 0xa92   :  { %2591 = vmatprep.subr.mxu1 %v5938_v31  ;;  %4342 = vmatprep.subr.mxu0 %v6830_v1 }
 0xa93   :  { %2592 = vmatpush1.msra.mxu1 %v5944_v62  ;;  %4343 = vmatpush3.msra.mxu0 %v5951_v27 }
 0xa94   :  { %2593 = vmatprep.subr.mxu1 %v5948_v63  ;;  %4344 = vmatprep.subr.mxu0 %v6830_v1 }
 0xa95   :  { %2594 = vmatpush1.msra.mxu1 %v5954_v52  ;;  %4345 = vmatpush3.msra.mxu0 %v5961_v49 }
 0xa96   :  { %2595 = vmatprep.subr.mxu1 %v5958_v28  ;;  %4346 = vmatprep.subr.mxu0 %v6830_v1 }
 0xa97   :  { %2596 = vmatpush1.msra.mxu1 %v5964_v58  ;;  %4347 = vmatpush3.msra.mxu0 %v5971_v39 }
 0xa98   :  { %2597 = vmatprep.subr.mxu1 %v5968_v35  ;;  %4348 = vmatprep.subr.mxu0 %v6830_v1 }
 0xa99   :  { %2598 = vmatpush1.msra.mxu1 %v5974_v6  ;;  %4349 = vmatpush3.msra.mxu0 %v5981_v2 }
 0xa9a   :  { %2599 = vmatprep.subr.mxu1 %v5978_v0  ;;  %4350 = vmatprep.subr.mxu0 %v6830_v1 }
 0xa9b   :  { %2600 = vmatpush1.msra.mxu1 %v5984_v37  ;;  %4351 = vmatpush3.msra.mxu0 %v5991_v43 }
 0xa9c   :  { %2601 = vmatprep.subr.mxu1 %v5988_v5  ;;  %4352 = vmatprep.subr.mxu0 %v6830_v1 }
 0xa9d   :  { %2602 = vmatpush1.msra.mxu1 %v5994_v7  ;;  %4353 = vmatpush3.msra.mxu0 %v6001_v8 }
 0xa9e   :  { %2603 = vmatprep.subr.mxu1 %v5998_v29  ;;  %4354 = vmatprep.subr.mxu0 %v6830_v1 }
 0xa9f   :  { %2604 = vmatpush1.msra.mxu1 %v6004_v47  ;;  %4355 = vmatpush3.msra.mxu0 %v6011_v56 }
 0xaa0   :  { %2605 = vmatprep.subr.mxu1 %v6008_v9  ;;  %4356 = vmatprep.subr.mxu0 %v6830_v1 }
 0xaa1   :  { %2606 = vmatpush1.msra.mxu1 %v6014_v11  ;;  %4357 = vmatpush3.msra.mxu0 %v6021_v13 }
 0xaa2   :  { %2607 = vmatprep.subr.mxu1 %v6018_v51  ;;  %4358 = vmatprep.subr.mxu0 %v6830_v1 }
 0xaa3   :  { %2608 = vmatpush1.msra.mxu1 %v6024_v10  ;;  %4359 = vmatpush3.msra.mxu0 %v6031_v17 }
 0xaa4   :  { %2609 = vmatprep.subr.mxu1 %v6028_v12  ;;  %4360 = vmatprep.subr.mxu0 %v6830_v1 }
 0xaa5   :  { %2610 = vmatpush1.msra.mxu1 %v6034_v16  ;;  %4361 = vmatpush3.msra.mxu0 %v6041_v18 }
 0xaa6   :  { %2611 = vmatprep.subr.mxu1 %v6038_v19  ;;  %4362 = vmatprep.subr.mxu0 %v6830_v1 }
 0xaa7   :  { %2612 = vmatpush1.msra.mxu1 %v6044_v21  ;;  %4363 = vmatpush3.msra.mxu0 %v6051_v23 }
 0xaa8   :  { %2613 = vmatprep.subr.mxu1 %v6881_v24  ;;  %4364 = vmatprep.subr.mxu0 %v6830_v1  ;;  %v2575_v24 = vrot.slane %v2415_v57, 2 }
 0xaa9   :  { %2614 = vmatpush1.msra.mxu1 %v6882_v26  ;;  %4365 = vmatpush3.msra.mxu0 %v6883_v34 }
 0xaaa   :  { %2615 = vmatprep.subr.mxu1 %v6884_v15  ;;  %4366 = vmatprep.subr.mxu0 %v6830_v1 }
 0xaab   :  { %2616 = vmatpush1.msra.mxu1 %v6885_v33  ;;  %2649 = vmatprep.mubr.f32.mxu1 %v6830_v1 }
 0xaac   :  { %4367 = vmatpush3.msra.mxu0 %v6886_v53  ;;  %4368 = vmatprep.mubr.msk.f32.mxu0 %vm4976_vm0, %v6830_v1 }
 0xaad   :  { %2754 = vmatprep.subr.mxu1 %v6887_v54  ;;  %4371 = vmatprep.subr.mxu0 %v6830_v1 }
 0xb4c   :  { %v2482_v44 = vpop.f32.mrf.mxu1  ;;  %v2553_v30 = vpop.f32.mrf.mxu0 }
 0xb4d   :  { %v2483_v14 = vadd.f32 %v2482_v44, %v6888_v45  ;;  %v2554_v26 = vadd.f32 %v2553_v30, %v6167_v40  ;;  %v6408_v30 = vld [vmem:[#allocation13 + $0x178] sm:$0xff] }
 0xb4e   :  { %v2484_v4 = vpop.f32.mrf.mxu1  ;;  %v4335_v36 = vpop.f32.mrf.mxu0 }
 0xb4f   :  { %v2557_v20 = vadd.f32 %v2483_v14, %v2415_v57  ;;  %v2485_v42 = vadd.f32 %v2484_v4, %v6162_v32  ;;  %v6415_v57 = vld [vmem:[#allocation13 + $0x150] sm:$0xff] }
 0xb51   :  { %v3562_v46 = vmul.f32 -1.442695, %v2557_v20  ;;  %v2567_v50 = vadd.f32 %v2565_v48, %v2485_v42  ;;  %v6418_v48 = vld [vmem:[#allocation13 + $0x160] sm:$0xff] }
 0xb53   :  { %4659 = vpow2.f32 %v3562_v46  ;;  %v3563_v53 = vmul.f32 -1.442695, %v2567_v50  ;;  %v6421_v50 = vld [vmem:[#allocation13 + $0x140] sm:$0xff] }
 0xb55   :  { %4661 = vpow2.f32 %v3563_v53 }
 0xb60   :  { %v4660_v33 = vpop.eup %4659 }
 0xb61   :  { %v2561_v54 = vadd.f32 1.0, %v4660_v33  ;;  %v6405_v33 = vld [vmem:[#allocation13 + $0x168] sm:$0xff] }
 0xb62   :  { %v4662_v15 = vpop.eup %4661 }
 0xb63   :  { %4663 = vrcp.f32 %v2561_v54  ;;  %v2571_v34 = vadd.f32 1.0, %v4662_v15  ;;  %v6425_v54 = vld [vmem:[#allocation13 + $0x138] sm:$0xff] }
 0xb65   :  { %4665 = vrcp.f32 %v2571_v34 }
 0xb70   :  { %v4664_v44 = vpop.eup %4663 }
 0xb71   :  { %v2574_v45 = vmul.f32 %v4664_v44, %v2554_v26  ;;  %v6428_v44 = vld [vmem:[#allocation13 + $0x148] sm:$0xff] }
 0xb72   :  { %v4666_v36 = vpop.eup %4665 }
 0xb73   :  { %v2577_v14 = vadd.f32 %v2575_v24, %v2574_v45  ;;  %v2579_v4 = vsub.f32 1.0, %v4666_v36  ;;  %v2581_v42 = vmul.f32 %v4666_v36, %v6246_v38  ;;  %v6411_v45 = vld [vmem:[#allocation13 + $0x158] sm:$0xff]  ;;  %v6435_v36 = vld [vmem:[#allocation13 + $0x120] sm:$0xff] }
 0xb75   :  { %4667 = vtanh.f32 %v2577_v14  ;;  %v6431_v14 = vld [vmem:[#allocation13 + $0x128] sm:$0xff] }
 0xb82   :  { %v4668_v20 = vpop.eup %4667 }
 0xb83   :  { %v2580_v46 = vmul.f32 %v4668_v20, %v2579_v4  ;;  %v6438_v4 = vld [vmem:[#allocation13 + $0x130] sm:$0xff] }
 0xb84   :  { %v6441_v20 = vld [vmem:[#allocation13 + $0x110] sm:$0xff] }
 0xb85   :  { %v6322_v53 = vadd.f32 %v2581_v42, %v2580_v46  ;;  %v6445_v46 = vld [vmem:[#allocation13 + $0x108] sm:$0xff]  ;;  %v6448_v42 = vld [vmem:[#allocation13 + $0x118] sm:$0xff] }
 0xb87   :  { %2583 = vst [vmem:[#allocation4 + $0x2] sm:$0x1] %v6322_v53  ;;  %2650 = vmatmul.mubr.f32.vlgmr.msra.gmra.mxu1 %v6322_v53  ;;  %4369 = vmatmul.mubr.f32.vlgmr.msra.gmra.mxu0 %v6322_v53 }
 0xb88   :  { %2755 = vmatpush1.msra.mxu1 %v5919_v60  ;;  %4372 = vmatpush3.msra.mxu0 %v5923_v41  ;;  %v6889_v60 = vld [vmem:[#allocation22_spill] sm:$0xff]  ;;  %v6891_v41 = vld [vmem:[#allocation24_spill] sm:$0xff] }
 0xb89   :  { %2756 = vmatprep.subr.mxu1 %v5921_v3  ;;  %4373 = vmatprep.subr.mxu0 %v6830_v1  ;;  %v6890_v3 = vld [vmem:[#allocation23_spill] sm:$0xff] }
 0xb8a   :  { %2757 = vmatpush1.msra.mxu1 %v5925_v22  ;;  %4374 = vmatpush3.msra.mxu0 %v5931_v25  ;;  %v6892_v22 = vld [vmem:[#allocation25_spill] sm:$0xff]  ;;  %v6894_v25 = vld [vmem:[#allocation26_spill] sm:$0xff] }
 0xb8b   :  { %2758 = vmatprep.subr.mxu1 %v5928_v55  ;;  %4375 = vmatprep.subr.mxu0 %v6830_v1  ;;  %v6893_v55 = vld [vmem:[#allocation27_spill] sm:$0xff] }
 0xb8c   :  { %2759 = vmatpush1.msra.mxu1 %v5934_v59  ;;  %4376 = vmatpush3.msra.mxu0 %v5941_v61  ;;  %v6392_v59 = vld [vmem:[#allocation13 + $0x170] sm:$0xff] }
 0xb8d   :  { %2760 = vmatprep.subr.mxu1 %v5938_v31  ;;  %4377 = vmatprep.subr.mxu0 %v6830_v1 }
 0xb8e   :  { %2761 = vmatpush1.msra.mxu1 %v5944_v62  ;;  %4378 = vmatpush3.msra.mxu0 %v5951_v27  ;;  %v6895_v62 = vld [vmem:[#allocation32_spill] sm:$0xff] }
 0xb8f   :  { %2762 = vmatprep.subr.mxu1 %v5948_v63  ;;  %4379 = vmatprep.subr.mxu0 %v6830_v1  ;;  %v2584_v27 = vld [vmem:[#allocation2 + $0x3] ss:$8 sm:$0x7] }
 0xb90   :  { %2763 = vmatpush1.msra.mxu1 %v5954_v52  ;;  %4380 = vmatpush3.msra.mxu0 %v5961_v49 }
 0xb91   :  { %2764 = vmatprep.subr.mxu1 %v5958_v28  ;;  %4381 = vmatprep.subr.mxu0 %v6830_v1 }
 0xb92   :  { %2765 = vmatpush1.msra.mxu1 %v5964_v58  ;;  %4382 = vmatpush3.msra.mxu0 %v5971_v39  ;;  %v2734_v39 = vrot.slane %v2584_v27, 1 }
 0xb93   :  { %2766 = vmatprep.subr.mxu1 %v5968_v35  ;;  %4383 = vmatprep.subr.mxu0 %v6830_v1 }
 0xb94   :  { %2767 = vmatpush1.msra.mxu1 %v5974_v6  ;;  %4384 = vmatpush3.msra.mxu0 %v5981_v2 }
 0xb95   :  { %2768 = vmatprep.subr.mxu1 %v5978_v0  ;;  %4385 = vmatprep.subr.mxu0 %v6830_v1 }
 0xb96   :  { %2769 = vmatpush1.msra.mxu1 %v5984_v37  ;;  %4386 = vmatpush3.msra.mxu0 %v5991_v43 }
 0xb97   :  { %2770 = vmatprep.subr.mxu1 %v5988_v5  ;;  %4387 = vmatprep.subr.mxu0 %v6830_v1 }
 0xb98   :  { %2771 = vmatpush1.msra.mxu1 %v5994_v7  ;;  %4388 = vmatpush3.msra.mxu0 %v6001_v8 }
 0xb99   :  { %2772 = vmatprep.subr.mxu1 %v5998_v29  ;;  %4389 = vmatprep.subr.mxu0 %v6830_v1 }
 0xb9a   :  { %2773 = vmatpush1.msra.mxu1 %v6004_v47  ;;  %4390 = vmatpush3.msra.mxu0 %v6011_v56  ;;  %v2744_v47 = vrot.slane %v2584_v27, 2 }
 0xb9b   :  { %2774 = vmatprep.subr.mxu1 %v6008_v9  ;;  %4391 = vmatprep.subr.mxu0 %v6830_v1 }
 0xb9c   :  { %2775 = vmatpush1.msra.mxu1 %v6014_v11  ;;  %4392 = vmatpush3.msra.mxu0 %v6021_v13 }
 0xb9d   :  { %2776 = vmatprep.subr.mxu1 %v6018_v51  ;;  %4393 = vmatprep.subr.mxu0 %v6830_v1 }
 0xb9e   :  { %2777 = vmatpush1.msra.mxu1 %v6024_v10  ;;  %4394 = vmatpush3.msra.mxu0 %v6031_v17 }
 0xb9f   :  { %2778 = vmatprep.subr.mxu1 %v6028_v12  ;;  %4395 = vmatprep.subr.mxu0 %v6830_v1 }
 0xba0   :  { %2779 = vmatpush1.msra.mxu1 %v6034_v16  ;;  %4396 = vmatpush3.msra.mxu0 %v6041_v18 }
 0xba1   :  { %2780 = vmatprep.subr.mxu1 %v6038_v19  ;;  %4397 = vmatprep.subr.mxu0 %v6830_v1 }
 0xba2   :  { %2781 = vmatpush1.msra.mxu1 %v6044_v21  ;;  %4398 = vmatpush3.msra.mxu0 %v6051_v23 }
 0xba3   :  { %2782 = vmatprep.subr.mxu1 %v6889_v60  ;;  %4399 = vmatprep.subr.mxu0 %v6830_v1 }
 0xba4   :  { %2783 = vmatpush1.msra.mxu1 %v6890_v3  ;;  %4400 = vmatpush3.msra.mxu0 %v6891_v41 }
 0xba5   :  { %2784 = vmatprep.subr.mxu1 %v6892_v22  ;;  %4401 = vmatprep.subr.mxu0 %v6830_v1 }
 0xba6   :  { %2785 = vmatpush1.msra.mxu1 %v6893_v55  ;;  %2818 = vmatprep.mubr.f32.mxu1 %v6830_v1 }
 0xba7   :  { %4402 = vmatpush3.msra.mxu0 %v6894_v25  ;;  %4403 = vmatprep.mubr.msk.f32.mxu0 %vm4976_vm0, %v6830_v1 }
 0xba8   :  { %2923 = vmatprep.subr.mxu1 %v6392_v59  ;;  %4406 = vmatprep.subr.mxu0 %v6830_v1 }
 0xc47   :  { %v2651_v31 = vpop.f32.mrf.mxu1  ;;  %v2722_v61 = vpop.f32.mrf.mxu0 }
 0xc48   :  { %v2652_v63 = vadd.f32 %v2651_v31, %v6895_v62  ;;  %v2723_v7 = vadd.f32 %v2722_v61, %v6167_v40  ;;  %v6455_v31 = vld [vmem:[#allocation13 + $0xf0] sm:$0xff]  ;;  %v6458_v61 = vld [vmem:[#allocation13 + $0x100] sm:$0xff] }
 0xc49   :  { %v2653_v52 = vpop.f32.mrf.mxu1  ;;  %v4370_v28 = vpop.f32.mrf.mxu0 }
 0xc4a   :  { %v2726_v49 = vadd.f32 %v2652_v63, %v2584_v27  ;;  %v2654_v35 = vadd.f32 %v2653_v52, %v6162_v32  ;;  %v6461_v63 = vld [vmem:[#allocation13 + $0xe0] sm:$0xff]  ;;  %v6465_v27 = vld [vmem:[#allocation13 + $0xd8] sm:$0xff]  ;;  %v6468_v52 = vld [vmem:[#allocation13 + $0xe8] sm:$0xff] }
 0xc4b   :  { %v6471_v28 = vld [vmem:[#allocation13 + $0xc8] sm:$0xff] }
 0xc4c   :  { %v3564_v58 = vmul.f32 -1.442695, %v2726_v49  ;;  %v2736_v6 = vadd.f32 %v2734_v39, %v2654_v35  ;;  %v6475_v49 = vld [vmem:[#allocation13 + $0xc0] sm:$0xff]  ;;  %v6481_v35 = vld [vmem:[#allocation13 + $0xb0] sm:$0xff]  ;;  %v6485_v39 = vld [vmem:[#allocation13 + $0xa8] sm:$0xff] }
 0xc4e   :  { %4669 = vpow2.f32 %v3564_v58  ;;  %v3565_v0 = vmul.f32 -1.442695, %v2736_v6  ;;  %v6478_v58 = vld [vmem:[#allocation13 + $0xd0] sm:$0xff]  ;;  %v6488_v6 = vld [vmem:[#allocation13 + $0xb8] sm:$0xff] }
 0xc50   :  { %4671 = vpow2.f32 %v3565_v0  ;;  %v6491_v0 = vld [vmem:[#allocation13 + $0x98] sm:$0xff] }
 0xc5b   :  { %v4670_v2 = vpop.eup %4669 }
 0xc5c   :  { %v2730_v37 = vadd.f32 1.0, %v4670_v2  ;;  %v6495_v2 = vld [vmem:[#allocation13 + $0x90] sm:$0xff] }
 0xc5d   :  { %v4672_v5 = vpop.eup %4671 }
 0xc5e   :  { %4673 = vrcp.f32 %v2730_v37  ;;  %v2740_v43 = vadd.f32 1.0, %v4672_v5  ;;  %v6499_v37 = vld [vmem:[#allocation13 + $0x80] sm:$0xff]  ;;  %v6503_v5 = vld [vmem:[#allocation13 + $0x78] sm:$0xff] }
 0xc60   :  { %4675 = vrcp.f32 %v2740_v43 }
 0xc6b   :  { %v4674_v29 = vpop.eup %4673 }
 0xc6c   :  { %v2743_v8 = vmul.f32 %v4674_v29, %v2723_v7 }
 0xc6d   :  { %v4676_v11 = vpop.eup %4675 }
 0xc6e   :  { %v2746_v9 = vadd.f32 %v2744_v47, %v2743_v8  ;;  %v2748_v38 = vsub.f32 1.0, %v4676_v11  ;;  %v2750_v34 = vmul.f32 %v4676_v11, %v6322_v53  ;;  %v6451_v53 = vld [vmem:[#allocation13 + $0xf8] sm:$0xff] }
 0xc70   :  { %4677 = vtanh.f32 %v2746_v9 }
 0xc7d   :  { %v4678_v24 = vpop.eup %4677 }
 0xc7e   :  { %v2749_v26 = vmul.f32 %v4678_v24, %v2748_v38 }
 0xc80   :  { %v6400_v15 = vadd.f32 %v2750_v34, %v2749_v26  ;;  %v6578_v34 = vld [vmem:[#allocation13 + $0xa0] sm:$0xff] }
 0xc82   :  { %2752 = vst [vmem:[#allocation4 + $0x3] sm:$0x1] %v6400_v15  ;;  %2819 = vmatmul.mubr.f32.vlgmr.msra.gmra.mxu1 %v6400_v15  ;;  %4404 = vmatmul.mubr.f32.vlgmr.msra.gmra.mxu0 %v6400_v15 }
 0xc83   :  { %2924 = vmatpush1.msra.mxu1 %v6405_v33  ;;  %4407 = vmatpush3.msra.mxu0 %v6408_v30 }
 0xc84   :  { %2925 = vmatprep.subr.mxu1 %v6411_v45  ;;  %4408 = vmatprep.subr.mxu0 %v6830_v1 }
 0xc85   :  { %2926 = vmatpush1.msra.mxu1 %v6415_v57  ;;  %4409 = vmatpush3.msra.mxu0 %v6418_v48 }
 0xc86   :  { %2927 = vmatprep.subr.mxu1 %v6421_v50  ;;  %4410 = vmatprep.subr.mxu0 %v6830_v1 }
 0xc87   :  { %2928 = vmatpush1.msra.mxu1 %v6425_v54  ;;  %4411 = vmatpush3.msra.mxu0 %v6428_v44 }
 0xc88   :  { %2929 = vmatprep.subr.mxu1 %v6431_v14  ;;  %4412 = vmatprep.subr.mxu0 %v6830_v1 }
 0xc89   :  { %2930 = vmatpush1.msra.mxu1 %v6435_v36  ;;  %4413 = vmatpush3.msra.mxu0 %v6438_v4 }
 0xc8a   :  { %2931 = vmatprep.subr.mxu1 %v6441_v20  ;;  %4414 = vmatprep.subr.mxu0 %v6830_v1 }
 0xc8b   :  { %2932 = vmatpush1.msra.mxu1 %v6445_v46  ;;  %4415 = vmatpush3.msra.mxu0 %v6448_v42 }
 0xc8c   :  { %2933 = vmatprep.subr.mxu1 %v6451_v53  ;;  %4416 = vmatprep.subr.mxu0 %v6830_v1 }
 0xc8d   :  { %2934 = vmatpush1.msra.mxu1 %v6455_v31  ;;  %4417 = vmatpush3.msra.mxu0 %v6458_v61 }
 0xc8e   :  { %2935 = vmatprep.subr.mxu1 %v6461_v63  ;;  %4418 = vmatprep.subr.mxu0 %v6830_v1 }
 0xc8f   :  { %2936 = vmatpush1.msra.mxu1 %v6465_v27  ;;  %4419 = vmatpush3.msra.mxu0 %v6468_v52 }
 0xc90   :  { %2937 = vmatprep.subr.mxu1 %v6471_v28  ;;  %4420 = vmatprep.subr.mxu0 %v6830_v1 }
 0xc91   :  { %2938 = vmatpush1.msra.mxu1 %v6475_v49  ;;  %4421 = vmatpush3.msra.mxu0 %v6478_v58 }
 0xc92   :  { %2939 = vmatprep.subr.mxu1 %v6481_v35  ;;  %4422 = vmatprep.subr.mxu0 %v6830_v1 }
 0xc93   :  { %2940 = vmatpush1.msra.mxu1 %v6485_v39  ;;  %4423 = vmatpush3.msra.mxu0 %v6488_v6 }
 0xc94   :  { %2941 = vmatprep.subr.mxu1 %v6491_v0  ;;  %4424 = vmatprep.subr.mxu0 %v6830_v1 }
 0xc95   :  { %2942 = vmatpush1.msra.mxu1 %v6495_v2  ;;  %4425 = vmatpush3.msra.mxu0 %v6011_v56 }
 0xc96   :  { %2943 = vmatprep.subr.mxu1 %v6499_v37  ;;  %4426 = vmatprep.subr.mxu0 %v6830_v1 }
 0xc97   :  { %2944 = vmatpush1.msra.mxu1 %v6503_v5  ;;  %4427 = vmatpush3.msra.mxu0 %v6021_v13 }
 0xc98   :  { %2945 = vmatprep.subr.mxu1 %v6018_v51  ;;  %4428 = vmatprep.subr.mxu0 %v6830_v1 }
 0xc99   :  { %2946 = vmatpush1.msra.mxu1 %v6024_v10  ;;  %4429 = vmatpush3.msra.mxu0 %v6031_v17  ;;  %v2753_v10 = vld [vmem:[#allocation2 + $0x4] ss:$8 sm:$0x7] }
 0xc9a   :  { %2947 = vmatprep.subr.mxu1 %v6028_v12  ;;  %4430 = vmatprep.subr.mxu0 %v6830_v1  ;;  %v2913_v29 = vrot.slane %v2753_v10, 2 }
 0xc9b   :  { %2948 = vmatpush1.msra.mxu1 %v6034_v16  ;;  %4431 = vmatpush3.msra.mxu0 %v6041_v18 }
 0xc9c   :  { %2949 = vmatprep.subr.mxu1 %v6038_v19  ;;  %4432 = vmatprep.subr.mxu0 %v6830_v1 }
 0xc9d   :  { %2950 = vmatpush1.msra.mxu1 %v6044_v21  ;;  %4433 = vmatpush3.msra.mxu0 %v6051_v23  ;;  %v2903_v21 = vrot.slane %v2753_v10, 1 }
 0xc9e   :  { %2951 = vmatprep.subr.mxu1 %v6889_v60  ;;  %4434 = vmatprep.subr.mxu0 %v6830_v1 }
 0xc9f   :  { %2952 = vmatpush1.msra.mxu1 %v6890_v3  ;;  %4435 = vmatpush3.msra.mxu0 %v6891_v41 }
 0xca0   :  { %2953 = vmatprep.subr.mxu1 %v6892_v22  ;;  %4436 = vmatprep.subr.mxu0 %v6830_v1 }
 0xca1   :  { %2954 = vmatpush1.msra.mxu1 %v6893_v55  ;;  %2987 = vmatprep.mubr.f32.mxu1 %v6830_v1 }
 0xca2   :  { %4437 = vmatpush3.msra.mxu0 %v6894_v25  ;;  %4438 = vmatprep.mubr.msk.f32.mxu0 %vm4976_vm0, %v6830_v1 }
 0xca3   :  { %3092 = vmatprep.subr.mxu1 %v6392_v59  ;;  %4441 = vmatprep.subr.mxu0 %v6830_v1 }
 0xd42   :  { %v2820_v56 = vpop.f32.mrf.mxu1  ;;  %v2891_v51 = vpop.f32.mrf.mxu0 }
 0xd43   :  { %v2821_v13 = vadd.f32 %v2820_v56, %v6895_v62  ;;  %v2892_v25 = vadd.f32 %v2891_v51, %v6167_v40  ;;  %v6587_v56 = vld [vmem:[#allocation13 + $0x68] sm:$0xff]  ;;  %v6591_v51 = vld [vmem:[#allocation13 + $0x60] sm:$0xff] }
 0xd44   :  { %v2822_v12 = vpop.f32.mrf.mxu1  ;;  %v4405_v17 = vpop.f32.mrf.mxu0 }
 0xd45   :  { %v2895_v16 = vadd.f32 %v2821_v13, %v2753_v10  ;;  %v2823_v18 = vadd.f32 %v2822_v12, %v6162_v32  ;;  %v6594_v13 = vld [vmem:[#allocation13 + $0x70] sm:$0xff]  ;;  %v6601_v12 = vld [vmem:[#allocation13 + $0x48] sm:$0xff]  ;;  %v6604_v17 = vld [vmem:[#allocation13 + $0x58] sm:$0xff] }
 0xd46   :  { %v6597_v10 = vld [vmem:[#allocation13 + $0x50] sm:$0xff] }
 0xd47   :  { %v3566_v19 = vmul.f32 -1.442695, %v2895_v16  ;;  %v2905_v23 = vadd.f32 %v2903_v21, %v2823_v18  ;;  %v6607_v16 = vld [vmem:[#allocation13 + $0x38] sm:$0xff]  ;;  %v6614_v18 = vld [vmem:[#allocation13 + $0x40] sm:$0xff] }
 0xd48   :  { %v6617_v21 = vld [vmem:[#allocation13 + $0x20] sm:$0xff] }
 0xd49   :  { %4679 = vpow2.f32 %v3566_v19  ;;  %v3567_v60 = vmul.f32 -1.442695, %v2905_v23  ;;  %v6611_v19 = vld [vmem:[#allocation13 + $0x30] sm:$0xff]  ;;  %6896 = vst [vmem:[#allocation30_spill] sm:$0xff] %v6617_v21  ;;  %v6621_v23 = vld [vmem:[#allocation13 + $0x18] sm:$0xff] }
 0xd4a   :  { %6897 = vst [vmem:[#allocation29_spill] sm:$0xff] %v6621_v23 }
 0xd4b   :  { %4681 = vpow2.f32 %v3567_v60  ;;  %v6624_v60 = vld [vmem:[#allocation13 + $0x28] sm:$0xff] }
 0xd4c   :  { %6898 = vst [vmem:[#allocation31_spill] sm:$0xff] %v6624_v60 }
 0xd56   :  { %v4680_v3 = vpop.eup %4679 }
 0xd57   :  { %v2899_v41 = vadd.f32 1.0, %v4680_v3  ;;  %v6627_v3 = vld [vmem:[#allocation13 + $0x8] sm:$0xff] }
 0xd58   :  { %v4682_v22 = vpop.eup %4681  ;;  %6899 = vst [vmem:[#allocation28_spill] sm:$0xff] %v6627_v3 }
 0xd59   :  { %4683 = vrcp.f32 %v2899_v41  ;;  %v2909_v55 = vadd.f32 1.0, %v4682_v22  ;;  %v6631_v41 = vld [vmem:[#allocation13] sm:$0xff]  ;;  %v6635_v22 = vld [vmem:[#allocation13 + $0x10] sm:$0xff] }
 0xd5a   :  { %6900 = vst [vmem:[#allocation22_spill] sm:$0xff] %v6631_v41  ;;  %6901 = vst [vmem:[#allocation23_spill] sm:$0xff] %v6635_v22 }
 0xd5b   :  { %4685 = vrcp.f32 %v2909_v55 }
 0xd66   :  { %v4684_v43 = vpop.eup %4683 }
 0xd67   :  { %v2912_v7 = vmul.f32 %v4684_v43, %v2892_v25 }
 0xd68   :  { %v4686_v47 = vpop.eup %4685 }
 0xd69   :  { %v2915_v8 = vadd.f32 %v2913_v29, %v2912_v7  ;;  %v2917_v9 = vsub.f32 1.0, %v4686_v47  ;;  %v2919_v24 = vmul.f32 %v4686_v47, %v6400_v15  ;;  %v6584_v15 = vld [vmem:[#allocation13 + $0x88] sm:$0xff] }
 0xd6a   :  { %v2922_v7 = vld [vmem:[#allocation2 + $0x5] ss:$8 sm:$0x7] }
 0xd6b   :  { %4687 = vtanh.f32 %v2915_v8 }
 0xd78   :  { %v4688_v11 = vpop.eup %4687 }
 0xd79   :  { %v2918_v38 = vmul.f32 %v4688_v11, %v2917_v9 }
 0xd7b   :  { %v6536_v26 = vadd.f32 %v2919_v24, %v2918_v38  ;;  %v3072_v38 = vrot.slane %v2922_v7, 1 }
 0xd7d   :  { %2921 = vst [vmem:[#allocation4 + $0x4] sm:$0x1] %v6536_v26  ;;  %2988 = vmatmul.mubr.f32.vlgmr.msra.gmra.mxu1 %v6536_v26  ;;  %4439 = vmatmul.mubr.f32.vlgmr.msra.gmra.mxu0 %v6536_v26 }
 0xd7e   :  { %3093 = vmatpush1.msra.mxu1 %v6405_v33  ;;  %4442 = vmatpush3.msra.mxu0 %v6408_v30 }
 0xd7f   :  { %3094 = vmatprep.subr.mxu1 %v6411_v45  ;;  %4443 = vmatprep.subr.mxu0 %v6830_v1 }
 0xd80   :  { %3095 = vmatpush1.msra.mxu1 %v6415_v57  ;;  %4444 = vmatpush3.msra.mxu0 %v6418_v48 }
 0xd81   :  { %3096 = vmatprep.subr.mxu1 %v6421_v50  ;;  %4445 = vmatprep.subr.mxu0 %v6830_v1 }
 0xd82   :  { %3097 = vmatpush1.msra.mxu1 %v6425_v54  ;;  %4446 = vmatpush3.msra.mxu0 %v6428_v44 }
 0xd83   :  { %3098 = vmatprep.subr.mxu1 %v6431_v14  ;;  %4447 = vmatprep.subr.mxu0 %v6830_v1 }
 0xd84   :  { %3099 = vmatpush1.msra.mxu1 %v6435_v36  ;;  %4448 = vmatpush3.msra.mxu0 %v6438_v4 }
 0xd85   :  { %3100 = vmatprep.subr.mxu1 %v6441_v20  ;;  %4449 = vmatprep.subr.mxu0 %v6830_v1 }
 0xd86   :  { %3101 = vmatpush1.msra.mxu1 %v6445_v46  ;;  %4450 = vmatpush3.msra.mxu0 %v6448_v42 }
 0xd87   :  { %3102 = vmatprep.subr.mxu1 %v6451_v53  ;;  %4451 = vmatprep.subr.mxu0 %v6830_v1 }
 0xd88   :  { %3103 = vmatpush1.msra.mxu1 %v6455_v31  ;;  %4452 = vmatpush3.msra.mxu0 %v6458_v61 }
 0xd89   :  { %3104 = vmatprep.subr.mxu1 %v6461_v63  ;;  %4453 = vmatprep.subr.mxu0 %v6830_v1 }
 0xd8a   :  { %3105 = vmatpush1.msra.mxu1 %v6465_v27  ;;  %4454 = vmatpush3.msra.mxu0 %v6468_v52 }
 0xd8b   :  { %3106 = vmatprep.subr.mxu1 %v6471_v28  ;;  %4455 = vmatprep.subr.mxu0 %v6830_v1 }
 0xd8c   :  { %3107 = vmatpush1.msra.mxu1 %v6475_v49  ;;  %4456 = vmatpush3.msra.mxu0 %v6478_v58 }
 0xd8d   :  { %3108 = vmatprep.subr.mxu1 %v6481_v35  ;;  %4457 = vmatprep.subr.mxu0 %v6830_v1 }
 0xd8e   :  { %3109 = vmatpush1.msra.mxu1 %v6485_v39  ;;  %4458 = vmatpush3.msra.mxu0 %v6488_v6 }
 0xd8f   :  { %3110 = vmatprep.subr.mxu1 %v6491_v0  ;;  %4459 = vmatprep.subr.mxu0 %v6830_v1 }
 0xd90   :  { %3111 = vmatpush1.msra.mxu1 %v6495_v2  ;;  %4460 = vmatpush3.msra.mxu0 %v6578_v34 }
 0xd91   :  { %3112 = vmatprep.subr.mxu1 %v6499_v37  ;;  %4461 = vmatprep.subr.mxu0 %v6830_v1 }
 0xd92   :  { %3113 = vmatpush1.msra.mxu1 %v6503_v5  ;;  %4462 = vmatpush3.msra.mxu0 %v6584_v15 }
 0xd93   :  { %3114 = vmatprep.subr.mxu1 %v6587_v56  ;;  %4463 = vmatprep.subr.mxu0 %v6830_v1 }
 0xd94   :  { %3115 = vmatpush1.msra.mxu1 %v6591_v51  ;;  %4464 = vmatpush3.msra.mxu0 %v6594_v13 }
 0xd95   :  { %3116 = vmatprep.subr.mxu1 %v6597_v10  ;;  %4465 = vmatprep.subr.mxu0 %v6830_v1 }
 0xd96   :  { %3117 = vmatpush1.msra.mxu1 %v6601_v12  ;;  %4466 = vmatpush3.msra.mxu0 %v6604_v17 }
 0xd97   :  { %3118 = vmatprep.subr.mxu1 %v6607_v16  ;;  %4467 = vmatprep.subr.mxu0 %v6830_v1 }
 0xd98   :  { %3119 = vmatpush1.msra.mxu1 %v6611_v19  ;;  %4468 = vmatpush3.msra.mxu0 %v6614_v18 }
 0xd99   :  { %3120 = vmatprep.subr.mxu1 %v6617_v21  ;;  %4469 = vmatprep.subr.mxu0 %v6830_v1  ;;  %v3082_v21 = vrot.slane %v2922_v7, 2 }
 0xd9a   :  { %3121 = vmatpush1.msra.mxu1 %v6621_v23  ;;  %4470 = vmatpush3.msra.mxu0 %v6624_v60 }
 0xd9b   :  { %3122 = vmatprep.subr.mxu1 %v6627_v3  ;;  %4471 = vmatprep.subr.mxu0 %v6830_v1 }
 0xd9c   :  { %3123 = vmatpush1.msra.mxu1 %v6631_v41  ;;  %3156 = vmatprep.mubr.f32.mxu1 %v6830_v1 }
 0xd9d   :  { %4472 = vmatpush3.msra.mxu0 %v6635_v22  ;;  %4473 = vmatprep.mubr.msk.f32.mxu0 %vm4976_vm0, %v6830_v1 }
 0xd9e   :  { %3261 = vmatprep.subr.mxu1 %v6392_v59  ;;  %4476 = vmatprep.subr.mxu0 %v6830_v1 }
 0xe3d   :  { %v2989_v55 = vpop.f32.mrf.mxu1  ;;  %v3060_v25 = vpop.f32.mrf.mxu0 }
 0xe3e   :  { %v2990_v43 = vadd.f32 %v2989_v55, %v6895_v62  ;;  %v3061_v23 = vadd.f32 %v3060_v25, %v6167_v40  ;;  %v3431_v25 = vld [vmem:[#allocation14 + $0x8] sm:$0xff] }
 0xe3f   :  { %v2991_v29 = vpop.f32.mrf.mxu1  ;;  %v4440_v8 = vpop.f32.mrf.mxu0 }
 0xe40   :  { %v3064_v47 = vadd.f32 %v2990_v43, %v2922_v7  ;;  %v2992_v11 = vadd.f32 %v2991_v29, %v6162_v32  ;;  %v3430_v7 = vld [vmem:[#allocation14] sm:$0xff] }
 0xe42   :  { %v3568_v9 = vmul.f32 -1.442695, %v3064_v47  ;;  %v3074_v24 = vadd.f32 %v3072_v38, %v2992_v11 }
 0xe44   :  { %4689 = vpow2.f32 %v3568_v9  ;;  %v3569_v22 = vmul.f32 -1.442695, %v3074_v24 }
 0xe46   :  { %4691 = vpow2.f32 %v3569_v22 }
 0xe51   :  { %v4690_v41 = vpop.eup %4689 }
 0xe52   :  { %v3068_v59 = vadd.f32 1.0, %v4690_v41  ;;  %v3432_v41 = vld [vmem:[#allocation14 + $0x10] sm:$0xff] }
 0xe53   :  { %v4692_v3 = vpop.eup %4691 }
 0xe54   :  { %4693 = vrcp.f32 %v3068_v59  ;;  %v3078_v60 = vadd.f32 1.0, %v4692_v3  ;;  %v3433_v3 = vld [vmem:[#allocation14 + $0x18] sm:$0xff] }
 0xe56   :  { %4695 = vrcp.f32 %v3078_v60  ;;  %v3434_v60 = vld [vmem:[#allocation14 + $0x20] sm:$0xff] }
 0xe61   :  { %v4694_v55 = vpop.eup %4693 }
 0xe62   :  { %v3081_v62 = vmul.f32 %v4694_v55, %v3061_v23  ;;  %v3435_v23 = vld [vmem:[#allocation14 + $0x28] sm:$0xff] }
 0xe63   :  { %v4696_v8 = vpop.eup %4695  ;;  %v3260_v55 = vld [vmem:[#allocation2 + $0x7] ss:$8 sm:$0x7] }
 0xe64   :  { %v3084_v43 = vadd.f32 %v3082_v21, %v3081_v62  ;;  %v3086_v29 = vsub.f32 1.0, %v4696_v8  ;;  %v3088_v11 = vmul.f32 %v4696_v8, %v6536_v26  ;;  %v6902_v62 = vld [vmem:[#allocation30_spill] sm:$0xff]  ;;  %v3436_v21 = vld [vmem:[#allocation14 + $0x30] sm:$0xff] }
 0xe66   :  { %4697 = vtanh.f32 %v3084_v43 }
 0xe73   :  { %v4698_v47 = vpop.eup %4697 }
 0xe74   :  { %v3087_v9 = vmul.f32 %v4698_v47, %v3086_v29 }
 0xe76   :  { %v6646_v22 = vadd.f32 %v3088_v11, %v3087_v9  ;;  %v3410_v11 = vrot.slane %v3260_v55, 1 }
 0xe78   :  { %3090 = vst [vmem:[#allocation4 + $0x5] sm:$0x1] %v6646_v22  ;;  %3157 = vmatmul.mubr.f32.vlgmr.msra.gmra.mxu1 %v6646_v22  ;;  %4474 = vmatmul.mubr.f32.vlgmr.msra.gmra.mxu0 %v6646_v22 }
 0xe79   :  { %3262 = vmatpush1.msra.mxu1 %v6405_v33  ;;  %4477 = vmatpush3.msra.mxu0 %v6408_v30  ;;  %v6903_v33 = vld [vmem:[#allocation29_spill] sm:$0xff]  ;;  %v6904_v30 = vld [vmem:[#allocation31_spill] sm:$0xff] }
 0xe7a   :  { %3263 = vmatprep.subr.mxu1 %v6411_v45  ;;  %4478 = vmatprep.subr.mxu0 %v6830_v1  ;;  %v6905_v45 = vld [vmem:[#allocation28_spill] sm:$0xff] }
 0xe7b   :  { %3264 = vmatpush1.msra.mxu1 %v6415_v57  ;;  %4479 = vmatpush3.msra.mxu0 %v6418_v48  ;;  %v6906_v57 = vld [vmem:[#allocation22_spill] sm:$0xff]  ;;  %v6907_v48 = vld [vmem:[#allocation23_spill] sm:$0xff] }
 0xe7c   :  { %3265 = vmatprep.subr.mxu1 %v6421_v50  ;;  %4480 = vmatprep.subr.mxu0 %v6830_v1 }
 0xe7d   :  { %3266 = vmatpush1.msra.mxu1 %v6425_v54  ;;  %4481 = vmatpush3.msra.mxu0 %v6428_v44  ;;  %v6908_v44 = vld [vmem:[#allocation32_spill] sm:$0xff] }
 0xe7e   :  { %3267 = vmatprep.subr.mxu1 %v6431_v14  ;;  %4482 = vmatprep.subr.mxu0 %v6830_v1 }
 0xe7f   :  { %3268 = vmatpush1.msra.mxu1 %v6435_v36  ;;  %4483 = vmatpush3.msra.mxu0 %v6438_v4  ;;  %v3091_v36 = vld [vmem:[#allocation2 + $0x6] ss:$8 sm:$0x7] }
 0xe80   :  { %3269 = vmatprep.subr.mxu1 %v6441_v20  ;;  %4484 = vmatprep.subr.mxu0 %v6830_v1 }
 0xe81   :  { %3270 = vmatpush1.msra.mxu1 %v6445_v46  ;;  %4485 = vmatpush3.msra.mxu0 %v6448_v42 }
 0xe82   :  { %3271 = vmatprep.subr.mxu1 %v6451_v53  ;;  %4486 = vmatprep.subr.mxu0 %v6830_v1 }
 0xe83   :  { %3272 = vmatpush1.msra.mxu1 %v6455_v31  ;;  %4487 = vmatpush3.msra.mxu0 %v6458_v61  ;;  %v3241_v31 = vrot.slane %v3091_v36, 1 }
 0xe84   :  { %3273 = vmatprep.subr.mxu1 %v6461_v63  ;;  %4488 = vmatprep.subr.mxu0 %v6830_v1 }
 0xe85   :  { %3274 = vmatpush1.msra.mxu1 %v6465_v27  ;;  %4489 = vmatpush3.msra.mxu0 %v6468_v52 }
 0xe86   :  { %3275 = vmatprep.subr.mxu1 %v6471_v28  ;;  %4490 = vmatprep.subr.mxu0 %v6830_v1 }
 0xe87   :  { %3276 = vmatpush1.msra.mxu1 %v6475_v49  ;;  %4491 = vmatpush3.msra.mxu0 %v6478_v58 }
 0xe88   :  { %3277 = vmatprep.subr.mxu1 %v6481_v35  ;;  %4492 = vmatprep.subr.mxu0 %v6830_v1 }
 0xe89   :  { %3278 = vmatpush1.msra.mxu1 %v6485_v39  ;;  %4493 = vmatpush3.msra.mxu0 %v6488_v6  ;;  %v3251_v6 = vrot.slane %v3091_v36, 2 }
 0xe8a   :  { %3279 = vmatprep.subr.mxu1 %v6491_v0  ;;  %4494 = vmatprep.subr.mxu0 %v6830_v1 }
 0xe8b   :  { %3280 = vmatpush1.msra.mxu1 %v6495_v2  ;;  %4495 = vmatpush3.msra.mxu0 %v6578_v34 }
 0xe8c   :  { %3281 = vmatprep.subr.mxu1 %v6499_v37  ;;  %4496 = vmatprep.subr.mxu0 %v6830_v1 }
 0xe8d   :  { %3282 = vmatpush1.msra.mxu1 %v6503_v5  ;;  %4497 = vmatpush3.msra.mxu0 %v6584_v15 }
 0xe8e   :  { %3283 = vmatprep.subr.mxu1 %v6587_v56  ;;  %4498 = vmatprep.subr.mxu0 %v6830_v1  ;;  %v3445_v56 = vld [vmem:[#allocation14 + $0x78] sm:$0xff] }
 0xe8f   :  { %3284 = vmatpush1.msra.mxu1 %v6591_v51  ;;  %4499 = vmatpush3.msra.mxu0 %v6594_v13  ;;  %v3444_v51 = vld [vmem:[#allocation14 + $0x70] sm:$0xff]  ;;  %v3443_v13 = vld [vmem:[#allocation14 + $0x68] sm:$0xff] }
 0xe90   :  { %3285 = vmatprep.subr.mxu1 %v6597_v10  ;;  %4500 = vmatprep.subr.mxu0 %v6830_v1  ;;  %v3442_v10 = vld [vmem:[#allocation14 + $0x60] sm:$0xff] }
 0xe91   :  { %3286 = vmatpush1.msra.mxu1 %v6601_v12  ;;  %4501 = vmatpush3.msra.mxu0 %v6604_v17  ;;  %v3441_v12 = vld [vmem:[#allocation14 + $0x58] sm:$0xff]  ;;  %v3440_v17 = vld [vmem:[#allocation14 + $0x50] sm:$0xff] }
 0xe92   :  { %3287 = vmatprep.subr.mxu1 %v6607_v16  ;;  %4502 = vmatprep.subr.mxu0 %v6830_v1  ;;  %v3439_v16 = vld [vmem:[#allocation14 + $0x48] sm:$0xff] }
 0xe93   :  { %3288 = vmatpush1.msra.mxu1 %v6611_v19  ;;  %4503 = vmatpush3.msra.mxu0 %v6614_v18  ;;  %v3438_v19 = vld [vmem:[#allocation14 + $0x40] sm:$0xff]  ;;  %v3437_v18 = vld [vmem:[#allocation14 + $0x38] sm:$0xff] }
 0xe94   :  { %3289 = vmatprep.subr.mxu1 %v6902_v62  ;;  %4504 = vmatprep.subr.mxu0 %v6830_v1 }
 0xe95   :  { %3290 = vmatpush1.msra.mxu1 %v6903_v33  ;;  %4505 = vmatpush3.msra.mxu0 %v6904_v30 }
 0xe96   :  { %3291 = vmatprep.subr.mxu1 %v6905_v45  ;;  %4506 = vmatprep.subr.mxu0 %v6830_v1 }
 0xe97   :  { %3292 = vmatpush1.msra.mxu1 %v6906_v57  ;;  %3325 = vmatprep.mubr.f32.mxu1 %v6830_v1 }
 0xe98   :  { %4507 = vmatpush3.msra.mxu0 %v6907_v48  ;;  %4508 = vmatprep.mubr.msk.f32.mxu0 %vm4976_vm0, %v6830_v1 }
 0xe99   :  { %4511 = vmatprep.subr.mxu1 %v6830_v1 }
 0xf38   :  { %v3158_v50 = vpop.f32.mrf.mxu1  ;;  %v3229_v54 = vpop.f32.mrf.mxu0 }
 0xf39   :  { %v3159_v14 = vadd.f32 %v3158_v50, %v6908_v44  ;;  %v3230_v58 = vadd.f32 %v3229_v54, %v6167_v40  ;;  %v3420_v54 = vrot.slane %v3260_v55, 2 }
 0xf3a   :  { %v3160_v4 = vpop.f32.mrf.mxu1  ;;  %v4475_v20 = vpop.f32.mrf.mxu0 }
 0xf3b   :  { %v3233_v46 = vadd.f32 %v3159_v14, %v3091_v36  ;;  %v3161_v53 = vadd.f32 %v3160_v4, %v6162_v32 }
 0xf3d   :  { %v3570_v42 = vmul.f32 -1.442695, %v3233_v46  ;;  %v3243_v61 = vadd.f32 %v3241_v31, %v3161_v53 }
 0xf3f   :  { %4699 = vpow2.f32 %v3570_v42  ;;  %v3571_v63 = vmul.f32 -1.442695, %v3243_v61 }
 0xf41   :  { %4701 = vpow2.f32 %v3571_v63 }
 0xf4c   :  { %v4700_v27 = vpop.eup %4699 }
 0xf4d   :  { %v3237_v52 = vadd.f32 1.0, %v4700_v27 }
 0xf4e   :  { %v4702_v28 = vpop.eup %4701 }
 0xf4f   :  { %4703 = vrcp.f32 %v3237_v52  ;;  %v3247_v49 = vadd.f32 1.0, %v4702_v28 }
 0xf51   :  { %4705 = vrcp.f32 %v3247_v49 }
 0xf5c   :  { %v4704_v35 = vpop.eup %4703 }
 0xf5d   :  { %v3250_v39 = vmul.f32 %v4704_v35, %v3230_v58 }
 0xf5e   :  { %v4706_v2 = vpop.eup %4705 }
 0xf5f   :  { %v3253_v0 = vadd.f32 %v3251_v6, %v3250_v39  ;;  %v3255_v37 = vsub.f32 1.0, %v4706_v2  ;;  %v3257_v34 = vmul.f32 %v4706_v2, %v6646_v22 }
 0xf61   :  { %4707 = vtanh.f32 %v3253_v0 }
 0xf6e   :  { %v4708_v5 = vpop.eup %4707 }
 0xf6f   :  { %v3256_v26 = vmul.f32 %v4708_v5, %v3255_v37 }
 0xf71   :  { %v6721_v15 = vadd.f32 %v3257_v34, %v3256_v26 }
 0xf73   :  { %3259 = vst [vmem:[#allocation4 + $0x6] sm:$0x1] %v6721_v15  ;;  %3326 = vmatmul.mubr.f32.vlgmr.msra.gmra.mxu1 %v6721_v15  ;;  %4509 = vmatmul.mubr.f32.vlgmr.msra.gmra.mxu0 %v6721_v15 }
 0xf74   :  { %4543 = vmatprep.mubr.msk.f32.mxu1 %vm4976_vm0, %v6830_v1  ;;  %4512 = vmatpush3.msra.mxu1 %v3445_v56 }
 0xf75   :  { %4513 = vmatprep.subr.mxu1 %v6830_v1 }
 0xf76   :  { %4514 = vmatpush3.msra.mxu1 %v3444_v51 }
 0xf77   :  { %4515 = vmatprep.subr.mxu1 %v6830_v1 }
 0xf78   :  { %4516 = vmatpush3.msra.mxu1 %v3443_v13 }
 0xf79   :  { %4517 = vmatprep.subr.mxu1 %v6830_v1 }
 0xf7a   :  { %4518 = vmatpush3.msra.mxu1 %v3442_v10 }
 0xf7b   :  { %4519 = vmatprep.subr.mxu1 %v6830_v1 }
 0xf7c   :  { %4520 = vmatpush3.msra.mxu1 %v3441_v12 }
 0xf7d   :  { %4521 = vmatprep.subr.mxu1 %v6830_v1 }
 0xf7e   :  { %4522 = vmatpush3.msra.mxu1 %v3440_v17 }
 0xf7f   :  { %4523 = vmatprep.subr.mxu1 %v6830_v1 }
 0xf80   :  { %4524 = vmatpush3.msra.mxu1 %v3439_v16 }
 0xf81   :  { %4525 = vmatprep.subr.mxu1 %v6830_v1 }
 0xf82   :  { %4526 = vmatpush3.msra.mxu1 %v3438_v19 }
 0xf83   :  { %4527 = vmatprep.subr.mxu1 %v6830_v1 }
 0xf84   :  { %4528 = vmatpush3.msra.mxu1 %v3437_v18 }
 0xf85   :  { %4529 = vmatprep.subr.mxu1 %v6830_v1 }
 0xf86   :  { %4530 = vmatpush3.msra.mxu1 %v3436_v21 }
 0xf87   :  { %4531 = vmatprep.subr.mxu1 %v6830_v1 }
 0xf88   :  { %4532 = vmatpush3.msra.mxu1 %v3435_v23 }
 0xf89   :  { %4533 = vmatprep.subr.mxu1 %v6830_v1 }
 0xf8a   :  { %4534 = vmatpush3.msra.mxu1 %v3434_v60 }
 0xf8b   :  { %4535 = vmatprep.subr.mxu1 %v6830_v1 }
 0xf8c   :  { %4536 = vmatpush3.msra.mxu1 %v3433_v3 }
 0xf8d   :  { %4537 = vmatprep.subr.mxu1 %v6830_v1 }
 0xf8e   :  { %4538 = vmatpush3.msra.mxu1 %v3432_v41 }
 0xf8f   :  { %4539 = vmatprep.subr.mxu1 %v6830_v1 }
 0xf90   :  { %4540 = vmatpush3.msra.mxu1 %v3431_v25 }
 0xf91   :  { %4541 = vmatprep.subr.mxu1 %v6830_v1 }
 0xf92   :  { %4542 = vmatpush3.msra.mxu1 %v3430_v7 }
0x1033   :  { %v3327_v38 = vpop.f32.mrf.mxu1  ;;  %v3398_v24 = vpop.f32.mrf.mxu0 }
0x1034   :  { %v3328_v59 = vadd.f32 %v3327_v38, %v6908_v44  ;;  %v3399_v57 = vadd.f32 %v3398_v24, %v6167_v40  ;;  %v3574_v40 = vld [vmem:[%s6763_s10] ss:$0 sm:$0xff] }
0x1035   :  { %v3329_v43 = vpop.f32.mrf.mxu1  ;;  %v4510_v8 = vpop.f32.mrf.mxu0 }
0x1036   :  { %v3402_v29 = vadd.f32 %v3328_v59, %v3260_v55  ;;  %v3330_v9 = vadd.f32 %v3329_v43, %v6162_v32 }
0x1038   :  { %v3572_v47 = vmul.f32 -1.442695, %v3402_v29  ;;  %v3412_v22 = vadd.f32 %v3410_v11, %v3330_v9 }
0x103a   :  { %4709 = vpow2.f32 %v3572_v47  ;;  %v3573_v62 = vmul.f32 -1.442695, %v3412_v22 }
0x103c   :  { %4711 = vpow2.f32 %v3573_v62 }
0x1047   :  { %v4710_v33 = vpop.eup %4709 }
0x1048   :  { %v3406_v30 = vadd.f32 1.0, %v4710_v33 }
0x1049   :  { %v4712_v1 = vpop.eup %4711 }
0x104a   :  { %4713 = vrcp.f32 %v3406_v30  ;;  %v3416_v45 = vadd.f32 1.0, %v4712_v1 }
0x104c   :  { %4715 = vrcp.f32 %v3416_v45 }
0x1057   :  { %v4714_v48 = vpop.eup %4713 }
0x1058   :  { %v3419_v50 = vmul.f32 %v4714_v48, %v3399_v57 }
0x1059   :  { %v4716_v14 = vpop.eup %4715 }
0x105a   :  { %v3422_v44 = vadd.f32 %v3420_v54, %v3419_v50  ;;  %v3424_v32 = vsub.f32 1.0, %v4716_v14  ;;  %v3426_v20 = vmul.f32 %v4716_v14, %v6721_v15 }
0x105c   :  { %4717 = vtanh.f32 %v3422_v44 }
0x1069   :  { %v4718_v36 = vpop.eup %4717 }
0x106a   :  { %v3425_v4 = vmul.f32 %v4718_v36, %v3424_v32 }
0x106c   :  { %v3427_v46 = vadd.f32 %v3426_v20, %v3425_v4 }
0x106e   :  { %3428 = vst [vmem:[#allocation4 + $0x7] sm:$0x1] %v3427_v46 }
0x1075   :  { %v3429_v42 = vld [vmem:[#allocation4] sm:$0xff] }
0x1076   :  { %4544 = vmatmul.mubr.f32.vlgmr.msra.gmra.mxu1 %v3429_v42 }
0x1136   :  { %v3519_v53 = vpop.f32.mrf.mxu1 }
0x1137   :  { %v3520_v31 = vadd.f32 %v3574_v40, %v3519_v53 }
0x1138   :  { %v4545_v61 = vpop.f32.mrf.mxu1 }
0x1139   :  { %3523 = vst [vmem:[#allocation16] sm:$0xff] %v3520_v31 }
0x113a   :  { %4946 = shalt.err (!%p4943_p6)
}
0x113b   :  { %3533 = dma.vmem_to_hbm [thread:$0]  %s3531_s13, 128, %s6764_s11, [#allocation7]  }
0x113c   :  { %4963 = dma.done.wait [#allocation7], 128  }
0x113d   :  { %4964 = vsyncadd [#allocation7], 4294967168 }
0x113e   :  { %3537 = vsyncpa [#allocation6], 1 }
0x113f   :  { %3538 = vsyncpa [#allocation9], 1 }
0x1140   :  { %3539 = vsyncpa [#allocation12], 1 }
0x1141   :  { %3540 = vsyncpa [#allocation15], 1 }
0x1142   :  { %3541 = vsyncpa [#allocation7], 1 }

</bundles_post_ra>
